<compile_context>
chip_gen: v7x
topology: tpu7x:2x2x1
jax: 0.10.0
libtpu: 0.0.40
codegen_flags: <defaults>
</compile_context>

<pallas_src>
import numpy as np
import jax
import jax.numpy as jnp
from jax.experimental import pallas as pl
from jax.experimental.pallas import tpu as pltpu

_BN_EPS = 1e-4           # BatchNorm2d(eps=0.0001)
_MXU_MIN_FILTERS = 16    # below this, convs run as VPU broadcast-FMAs


# ------------------------------- kernel body ---------------------------------

def _mish(y):
    """mish(y) = y*tanh(softplus(y)) = y * t(t+2)/(t(t+2)+2), t = exp(y).

    Clamping the exponent at 20 is exact for f32 mish (the factor rounds to 1).
    """
    t = jnp.exp(jnp.minimum(y, 20.0))
    num = t * (t + 2.0)
    return y * num * pl.reciprocal(num + 2.0, approx=False)


def _make_rcsp_kernel(h, w, n, filters, use_mxu):
    f = filters
    hw = h * w
    L = n * hw
    # Column offsets of each CBM inside the consolidated (F, 23F) weight matrix
    # (order: skip, conv0(1x1), conv1(3x3), conv2(1x1), conv3(3x3), last(1x1)).
    off_skip = 0
    off_c0 = off_skip + f
    off_c1 = off_c0 + f
    off_c2 = off_c1 + 9 * f
    off_c3 = off_c2 + f
    off_last = off_c3 + 9 * f

    def kernel(x_ref, w_ref, b_ref, m_ref, o_ref):
        x = x_ref[...]                                      # (F, L) f32
        # Hoist the 9 border-mask rows once; reused by both 3x3 CBMs.
        mask_rows = [m_ref[t:t + 1, :] for t in range(9)]

        def conv_mish(inps, col0, bias_col, k):
            """k x k 'same' conv (+folded-BN bias +Mish) over the channel-concat
            of `inps` (list of (cin_i, L) arrays; the concat is never built)."""
            cin = sum(a.shape[0] for a in inps)
            # masked / shifted taps: (weight-column base, per-input activations)
            if k == 1:
                tap_list = [(0, inps)]
            else:
                pad = k // 2
                tap_list = []
                for dy in range(k):
                    for dx in range(k):
                        t = dy * k + dx
                        offp = (dy - pad) * w + (dx - pad)
                        if offp == 0:
                            shifted = inps                   # centre tap: no shift/mask
                        else:
                            shifted = [pltpu.roll(a, (-offp) % L, axis=1) * mask_rows[t]
                                       for a in inps]
                        tap_list.append((t * cin, shifted))

            if use_mxu:
                # bf16 MXU dots with 3 rotating partial accumulators so
                # consecutive vmatmul pushes pipeline through the MRF instead
                # of chaining through a single vadd.
                parts = [None, None, None]
                idx = 0
                for tcol, shifted in tap_list:
                    cbase = col0 + tcol
                    for a in shifted:
                        wm = w_ref[:, cbase:cbase + a.shape[0]].astype(jnp.bfloat16)
                        d = jnp.dot(wm, a.astype(jnp.bfloat16),
                                    preferred_element_type=jnp.float32)
                        p = idx % 3
                        parts[p] = d if parts[p] is None else parts[p] + d
                        idx += 1
                        cbase += a.shape[0]
            else:
                # Small F: VPU broadcast-FMAs, (Cout,1) column x (1,L) row, all f32.
                parts = [None, None, None, None]
                idx = 0
                for tcol, shifted in tap_list:
                    cbase = col0 + tcol
                    for a in shifted:
                        for ci in range(a.shape[0]):
                            c = cbase + ci
                            term = w_ref[:, c:c + 1] * a[ci:ci + 1, :]
                            p = idx % 4
                            parts[p] = term if parts[p] is None else parts[p] + term
                            idx += 1
                        cbase += a.shape[0]

            acc = None
            for p in parts:
                if p is not None:
                    acc = p if acc is None else acc + p
            return _mish(acc + b_ref[:, bias_col:bias_col + 1])

        shortcut = conv_mish([x], off_skip, 0, 1)            # skip CBM 1x1
        y = conv_mish([x], off_c0, 1, 1)                     # CBM 1x1
        y = conv_mish([y], off_c1, 2, 3)                     # CBM 3x3
        y = conv_mish([y], off_c2, 3, 1)                     # CBM 1x1
        y = conv_mish([y], off_c3, 4, 3)                     # CBM 3x3
        # torch.cat((x, shortcut), dim=1) -> last 1x1 CBM, concat-free.
        o_ref[...] = conv_mish([y, shortcut], off_last, 5, 1)

    return kernel


# ------------------------------ pallas_call wrap ------------------------------

def _border_masks(n, h, w, k=3):
    """(k*k, n*h*w) f32: mask[t, p] = 1 iff tap t of within-image pixel p%hw is in-bounds."""
    pad = k // 2
    pos = np.arange(n * h * w) % (h * w)
    row, col = pos // w, pos % w
    m = np.zeros((k * k, n * h * w), np.float32)
    for dy in range(k):
        for dx in range(k):
            oy, ox = dy - pad, dx - pad
            m[dy * k + dx] = ((row + oy >= 0) & (row + oy < h) &
                              (col + ox >= 0) & (col + ox < w)).astype(np.float32)
    return m


def rcsp_pallas(x_flat, wcat, bcat, h, w, filters):
    """x_flat: (F, N*H*W) f32 -> (F, N*H*W) f32."""
    f, L = x_flat.shape
    n = L // (h * w)
    masks = jnp.asarray(_border_masks(n, h, w, 3))           # trace-time constant
    use_mxu = filters >= _MXU_MIN_FILTERS

    macs = 23 * filters * filters * L                        # sum of cin*k*k over the 6 CBMs
    cost = pl.CostEstimate(
        flops=2 * macs,
        transcendentals=2 * 6 * filters * L,                 # exp + reciprocal per CBM element
        bytes_accessed=int(4 * (2 * f * L + wcat.size + bcat.size + masks.size)))

    return pl.pallas_call(
        _make_rcsp_kernel(h, w, n, filters, use_mxu),
        out_shape=jax.ShapeDtypeStruct((f, L), jnp.float32),
        grid=(1,),
        in_specs=[pl.BlockSpec((f, L), lambda i: (0, 0)),
                  pl.BlockSpec(wcat.shape, lambda i: (0, 0)),
                  pl.BlockSpec(bcat.shape, lambda i: (0, 0)),
                  pl.BlockSpec(masks.shape, lambda i: (0, 0))],
        out_specs=pl.BlockSpec((f, L), lambda i: (0, 0)),
        cost_estimate=cost,
        compiler_params=pltpu.CompilerParams(
            dimension_semantics=("arbitrary",),
            vmem_limit_bytes=32 * 1024 * 1024),
    )(x_flat, wcat, bcat, masks)


@jax.jit
def rcsp_forward(x_nchw, params):
    n, c, h, w = x_nchw.shape
    # NCHW -> (C, N*H*W): fold the batch onto the lane axis (cheap at this size).
    x = jnp.transpose(x_nchw, (1, 0, 2, 3)).reshape(c, n * h * w).astype(jnp.float32)
    y = rcsp_pallas(x, params["w"], params["b"], h, w, c)
    return jnp.transpose(y.reshape(c, n, h, w), (1, 0, 2, 3))


# ------------------------- parameter construction ----------------------------

def _make_cbm_params(key, cin, cout, k):
    """Synthetic CBM params with inference-mode BN folded into the conv.

    Returns (weights (cout, k*k*cin) f32 with column index (dy*k+dx)*cin + ci,
             bias (cout,) f32)."""
    kw, kg, kb, km, kv = jax.random.split(key, 5)
    wgt = 0.1 * jax.random.normal(kw, (cout, cin, k, k), jnp.float32)     # torch OIHW
    gamma = 1.0 + 0.1 * jax.random.normal(kg, (cout,), jnp.float32)
    beta = 0.05 * jax.random.normal(kb, (cout,), jnp.float32)
    running_mean = 0.01 * jax.random.normal(km, (cout,), jnp.float32)
    running_var = 1.0 + jnp.abs(0.1 * jax.random.normal(kv, (cout,), jnp.float32))
    scale = gamma / jnp.sqrt(running_var + _BN_EPS)                       # (cout,)
    bias = beta - running_mean * scale
    wm = (wgt * scale[:, None, None, None]).transpose(0, 2, 3, 1)         # (cout,k,k,cin)
    return wm.reshape(cout, k * k * cin), bias


def make_rcsp_params(key, filters, spp_block=False):
    assert not spp_block, "spp_block=True not supported"  # TODO(synk): SPP path
    keys = jax.random.split(key, 6)
    w_skip, b_skip = _make_cbm_params(keys[0], filters, filters, 1)
    w0, b0 = _make_cbm_params(keys[1], filters, filters, 1)
    w1, b1 = _make_cbm_params(keys[2], filters, filters, 3)
    w2, b2 = _make_cbm_params(keys[3], filters, filters, 1)
    w3, b3 = _make_cbm_params(keys[4], filters, filters, 3)
    w_last, b_last = _make_cbm_params(keys[5], 2 * filters, filters, 1)
    # One consolidated weight matrix (F, 23F) and one bias matrix (F, 6);
    # column order matches the offsets in _make_rcsp_kernel.
    wcat = jnp.concatenate([w_skip, w0, w1, w2, w3, w_last], axis=1)
    bcat = jnp.stack([b_skip, b0, b1, b2, b3, b_last], axis=1)
    return {"w": wcat, "b": bcat}


# ----------------------------- pure-JAX reference -----------------------------

def _rcsp_reference(x_nchw, params, filters):
    f = filters
    wc, bc = params["w"], params["b"]

    def cbm(xin, c0, c1, bcol, k):
        wm = wc[:, c0:c1]
        cin = (c1 - c0) // (k * k)
        w4 = wm.reshape(f, k, k, cin).transpose(0, 3, 1, 2)       # OIHW
        y = jax.lax.conv_general_dilated(
            xin, w4, window_strides=(1, 1), padding="SAME",
            dimension_numbers=("NCHW", "OIHW", "NCHW"))
        y = y + bc[:, bcol][None, :, None, None]
        return y * jnp.tanh(jax.nn.softplus(y))

    sc = cbm(x_nchw, 0, f, 0, 1)
    y = cbm(x_nchw, f, 2 * f, 1, 1)
    y = cbm(y, 2 * f, 11 * f, 2, 3)
    y = cbm(y, 11 * f, 12 * f, 3, 1)
    y = cbm(y, 12 * f, 21 * f, 4, 3)
    y = jnp.concatenate([y, sc], axis=1)
    return cbm(y, 21 * f, 23 * f, 5, 1)


# ---------------------------------- main --------------------------------------

if __name__ == "__main__":
    key = jax.random.PRNGKey(0)
    k_x, k_p = jax.random.split(key)

    batch, filters, H, W = 2, 4, 16, 16
    x = jax.random.normal(k_x, (batch, filters, H, W), jnp.float32)   # NCHW
    params = make_rcsp_params(k_p, filters, spp_block=False)

    out = jax.block_until_ready(rcsp_forward(x, params))
    assert out.shape == (batch, filters, H, W), out.shape
    assert bool(jnp.all(jnp.isfinite(out)))

    # f32 VPU path: validate against the pure-JAX reference.
    ref = _rcsp_reference(x, params, filters)
    np.testing.assert_allclose(np.asarray(out), np.asarray(ref), rtol=2e-3, atol=2e-3)

    print("KERNEL_OK")
</pallas_src>

<mosaic_0001>
module attributes {stable_mosaic.version = 11 : i64} {
  func.func @kernel(%arg0: i32, %arg1: memref<4x512xf32, #tpu.memory_space<vmem>>, %arg2: memref<4x92xf32, #tpu.memory_space<vmem>>, %arg3: memref<4x6xf32, #tpu.memory_space<vmem>>, %arg4: memref<9x512xf32, #tpu.memory_space<vmem>>, %arg5: memref<4x512xf32, #tpu.memory_space<vmem>>) attributes {dimension_semantics = [#tpu.dimension_semantics<arbitrary>], iteration_bounds = array<i64: 1>, scalar_prefetch = 0 : i64, scratch_operands = 0 : i64, tpu.core_type = #tpu.core_type<tc>, window_params = [{pipeline_mode = #tpu.pipeline_mode<synchronous>, transform_indices = @transform_0, window_bounds = array<i64: 4, 512>}, {pipeline_mode = #tpu.pipeline_mode<synchronous>, transform_indices = @transform_1, window_bounds = array<i64: 4, 92>}, {pipeline_mode = #tpu.pipeline_mode<synchronous>, transform_indices = @transform_2, window_bounds = array<i64: 4, 6>}, {pipeline_mode = #tpu.pipeline_mode<synchronous>, transform_indices = @transform_3, window_bounds = array<i64: 9, 512>}, {pipeline_mode = #tpu.pipeline_mode<synchronous>, transform_indices = @transform_4, window_bounds = array<i64: 4, 512>}]} {
    %c0 = arith.constant 0 : index
    %c0_0 = arith.constant 0 : index
    %0 = vector.load %arg1[%c0, %c0_0] : memref<4x512xf32, #tpu.memory_space<vmem>>, vector<4x512xf32>
    %c0_1 = arith.constant 0 : index
    %c0_2 = arith.constant 0 : index
    %1 = vector.load %arg4[%c0_1, %c0_2] : memref<9x512xf32, #tpu.memory_space<vmem>>, vector<1x512xf32>
    %c1 = arith.constant 1 : index
    %c0_3 = arith.constant 0 : index
    %2 = vector.load %arg4[%c1, %c0_3] : memref<9x512xf32, #tpu.memory_space<vmem>>, vector<1x512xf32>
    %c2 = arith.constant 2 : index
    %c0_4 = arith.constant 0 : index
    %3 = vector.load %arg4[%c2, %c0_4] : memref<9x512xf32, #tpu.memory_space<vmem>>, vector<1x512xf32>
    %c3 = arith.constant 3 : index
    %c0_5 = arith.constant 0 : index
    %4 = vector.load %arg4[%c3, %c0_5] : memref<9x512xf32, #tpu.memory_space<vmem>>, vector<1x512xf32>
    %c5 = arith.constant 5 : index
    %c0_6 = arith.constant 0 : index
    %5 = vector.load %arg4[%c5, %c0_6] : memref<9x512xf32, #tpu.memory_space<vmem>>, vector<1x512xf32>
    %c6 = arith.constant 6 : index
    %c0_7 = arith.constant 0 : index
    %6 = vector.load %arg4[%c6, %c0_7] : memref<9x512xf32, #tpu.memory_space<vmem>>, vector<1x512xf32>
    %c7 = arith.constant 7 : index
    %c0_8 = arith.constant 0 : index
    %7 = vector.load %arg4[%c7, %c0_8] : memref<9x512xf32, #tpu.memory_space<vmem>>, vector<1x512xf32>
    %c8 = arith.constant 8 : index
    %c0_9 = arith.constant 0 : index
    %8 = vector.load %arg4[%c8, %c0_9] : memref<9x512xf32, #tpu.memory_space<vmem>>, vector<1x512xf32>
    %c0_10 = arith.constant 0 : index
    %c0_11 = arith.constant 0 : index
    %9 = vector.load %arg2[%c0_10, %c0_11] : memref<4x92xf32, #tpu.memory_space<vmem>>, vector<4x1xf32>
    %10 = vector.extract_strided_slice %0 {offsets = [0, 0], sizes = [1, 512], strides = [1, 1]} : vector<4x512xf32> to vector<1x512xf32>
    %11 = vector.broadcast %9 : vector<4x1xf32> to vector<4x512xf32>
    %12 = vector.broadcast %10 : vector<1x512xf32> to vector<4x512xf32>
    %13 = arith.mulf %11, %12 : vector<4x512xf32>
    %c0_12 = arith.constant 0 : index
    %c1_13 = arith.constant 1 : index
    %14 = vector.load %arg2[%c0_12, %c1_13] : memref<4x92xf32, #tpu.memory_space<vmem>>, vector<4x1xf32>
    %15 = vector.extract_strided_slice %0 {offsets = [1, 0], sizes = [1, 512], strides = [1, 1]} : vector<4x512xf32> to vector<1x512xf32>
    %16 = vector.broadcast %14 : vector<4x1xf32> to vector<4x512xf32>
    %17 = vector.broadcast %15 : vector<1x512xf32> to vector<4x512xf32>
    %18 = arith.mulf %16, %17 : vector<4x512xf32>
    %c0_14 = arith.constant 0 : index
    %c2_15 = arith.constant 2 : index
    %19 = vector.load %arg2[%c0_14, %c2_15] : memref<4x92xf32, #tpu.memory_space<vmem>>, vector<4x1xf32>
    %20 = vector.extract_strided_slice %0 {offsets = [2, 0], sizes = [1, 512], strides = [1, 1]} : vector<4x512xf32> to vector<1x512xf32>
    %21 = vector.broadcast %19 : vector<4x1xf32> to vector<4x512xf32>
    %22 = vector.broadcast %20 : vector<1x512xf32> to vector<4x512xf32>
    %23 = arith.mulf %21, %22 : vector<4x512xf32>
    %c0_16 = arith.constant 0 : index
    %c3_17 = arith.constant 3 : index
    %24 = vector.load %arg2[%c0_16, %c3_17] : memref<4x92xf32, #tpu.memory_space<vmem>>, vector<4x1xf32>
    %25 = vector.extract_strided_slice %0 {offsets = [3, 0], sizes = [1, 512], strides = [1, 1]} : vector<4x512xf32> to vector<1x512xf32>
    %26 = vector.broadcast %24 : vector<4x1xf32> to vector<4x512xf32>
    %27 = vector.broadcast %25 : vector<1x512xf32> to vector<4x512xf32>
    %28 = arith.mulf %26, %27 : vector<4x512xf32>
    %29 = arith.addf %13, %18 : vector<4x512xf32>
    %30 = arith.addf %29, %23 : vector<4x512xf32>
    %31 = arith.addf %30, %28 : vector<4x512xf32>
    %c0_18 = arith.constant 0 : index
    %c0_19 = arith.constant 0 : index
    %32 = vector.load %arg3[%c0_18, %c0_19] : memref<4x6xf32, #tpu.memory_space<vmem>>, vector<4x1xf32>
    %33 = vector.broadcast %32 : vector<4x1xf32> to vector<4x512xf32>
    %34 = arith.addf %31, %33 : vector<4x512xf32>
    %cst = arith.constant 2.000000e+01 : f32
    %35 = vector.broadcast %cst : f32 to vector<4x512xf32>
    %36 = arith.minimumf %34, %35 : vector<4x512xf32>
    %37 = math.exp %36 : vector<4x512xf32>
    %cst_20 = arith.constant 2.000000e+00 : f32
    %38 = vector.broadcast %cst_20 : f32 to vector<4x512xf32>
    %39 = arith.addf %37, %38 : vector<4x512xf32>
    %40 = arith.mulf %37, %39 : vector<4x512xf32>
    %41 = arith.mulf %34, %40 : vector<4x512xf32>
    %cst_21 = arith.constant 2.000000e+00 : f32
    %42 = vector.broadcast %cst_21 : f32 to vector<4x512xf32>
    %43 = arith.addf %40, %42 : vector<4x512xf32>
    %44 = tpu.reciprocal %43 : vector<4x512xf32> -> vector<4x512xf32>
    %45 = arith.mulf %41, %44 : vector<4x512xf32>
    %c0_22 = arith.constant 0 : index
    %c4 = arith.constant 4 : index
    %46 = vector.load %arg2[%c0_22, %c4] : memref<4x92xf32, #tpu.memory_space<vmem>>, vector<4x1xf32>
    %47 = vector.extract_strided_slice %0 {offsets = [0, 0], sizes = [1, 512], strides = [1, 1]} : vector<4x512xf32> to vector<1x512xf32>
    %48 = vector.broadcast %46 : vector<4x1xf32> to vector<4x512xf32>
    %49 = vector.broadcast %47 : vector<1x512xf32> to vector<4x512xf32>
    %50 = arith.mulf %48, %49 : vector<4x512xf32>
    %c0_23 = arith.constant 0 : index
    %c5_24 = arith.constant 5 : index
    %51 = vector.load %arg2[%c0_23, %c5_24] : memref<4x92xf32, #tpu.memory_space<vmem>>, vector<4x1xf32>
    %52 = vector.extract_strided_slice %0 {offsets = [1, 0], sizes = [1, 512], strides = [1, 1]} : vector<4x512xf32> to vector<1x512xf32>
    %53 = vector.broadcast %51 : vector<4x1xf32> to vector<4x512xf32>
    %54 = vector.broadcast %52 : vector<1x512xf32> to vector<4x512xf32>
    %55 = arith.mulf %53, %54 : vector<4x512xf32>
    %c0_25 = arith.constant 0 : index
    %c6_26 = arith.constant 6 : index
    %56 = vector.load %arg2[%c0_25, %c6_26] : memref<4x92xf32, #tpu.memory_space<vmem>>, vector<4x1xf32>
    %57 = vector.extract_strided_slice %0 {offsets = [2, 0], sizes = [1, 512], strides = [1, 1]} : vector<4x512xf32> to vector<1x512xf32>
    %58 = vector.broadcast %56 : vector<4x1xf32> to vector<4x512xf32>
    %59 = vector.broadcast %57 : vector<1x512xf32> to vector<4x512xf32>
    %60 = arith.mulf %58, %59 : vector<4x512xf32>
    %c0_27 = arith.constant 0 : index
    %c7_28 = arith.constant 7 : index
    %61 = vector.load %arg2[%c0_27, %c7_28] : memref<4x92xf32, #tpu.memory_space<vmem>>, vector<4x1xf32>
    %62 = vector.extract_strided_slice %0 {offsets = [3, 0], sizes = [1, 512], strides = [1, 1]} : vector<4x512xf32> to vector<1x512xf32>
    %63 = vector.broadcast %61 : vector<4x1xf32> to vector<4x512xf32>
    %64 = vector.broadcast %62 : vector<1x512xf32> to vector<4x512xf32>
    %65 = arith.mulf %63, %64 : vector<4x512xf32>
    %66 = arith.addf %50, %55 : vector<4x512xf32>
    %67 = arith.addf %66, %60 : vector<4x512xf32>
    %68 = arith.addf %67, %65 : vector<4x512xf32>
    %c0_29 = arith.constant 0 : index
    %c1_30 = arith.constant 1 : index
    %69 = vector.load %arg3[%c0_29, %c1_30] : memref<4x6xf32, #tpu.memory_space<vmem>>, vector<4x1xf32>
    %70 = vector.broadcast %69 : vector<4x1xf32> to vector<4x512xf32>
    %71 = arith.addf %68, %70 : vector<4x512xf32>
    %cst_31 = arith.constant 2.000000e+01 : f32
    %72 = vector.broadcast %cst_31 : f32 to vector<4x512xf32>
    %73 = arith.minimumf %71, %72 : vector<4x512xf32>
    %74 = math.exp %73 : vector<4x512xf32>
    %cst_32 = arith.constant 2.000000e+00 : f32
    %75 = vector.broadcast %cst_32 : f32 to vector<4x512xf32>
    %76 = arith.addf %74, %75 : vector<4x512xf32>
    %77 = arith.mulf %74, %76 : vector<4x512xf32>
    %78 = arith.mulf %71, %77 : vector<4x512xf32>
    %cst_33 = arith.constant 2.000000e+00 : f32
    %79 = vector.broadcast %cst_33 : f32 to vector<4x512xf32>
    %80 = arith.addf %77, %79 : vector<4x512xf32>
    %81 = tpu.reciprocal %80 : vector<4x512xf32> -> vector<4x512xf32>
    %82 = arith.mulf %78, %81 : vector<4x512xf32>
    %c17_i32 = arith.constant 17 : i32
    %83 = tpu.dynamic_rotate %82 by %c17_i32 dim 1 : vector<4x512xf32>, i32 -> vector<4x512xf32>
    %84 = vector.broadcast %1 : vector<1x512xf32> to vector<4x512xf32>
    %85 = arith.mulf %83, %84 : vector<4x512xf32>
    %c16_i32 = arith.constant 16 : i32
    %86 = tpu.dynamic_rotate %82 by %c16_i32 dim 1 : vector<4x512xf32>, i32 -> vector<4x512xf32>
    %87 = vector.broadcast %2 : vector<1x512xf32> to vector<4x512xf32>
    %88 = arith.mulf %86, %87 : vector<4x512xf32>
    %c15_i32 = arith.constant 15 : i32
    %89 = tpu.dynamic_rotate %82 by %c15_i32 dim 1 : vector<4x512xf32>, i32 -> vector<4x512xf32>
    %90 = vector.broadcast %3 : vector<1x512xf32> to vector<4x512xf32>
    %91 = arith.mulf %89, %90 : vector<4x512xf32>
    %c1_i32 = arith.constant 1 : i32
    %92 = tpu.dynamic_rotate %82 by %c1_i32 dim 1 : vector<4x512xf32>, i32 -> vector<4x512xf32>
    %93 = vector.broadcast %4 : vector<1x512xf32> to vector<4x512xf32>
    %94 = arith.mulf %92, %93 : vector<4x512xf32>
    %c511_i32 = arith.constant 511 : i32
    %95 = tpu.dynamic_rotate %82 by %c511_i32 dim 1 : vector<4x512xf32>, i32 -> vector<4x512xf32>
    %96 = vector.broadcast %5 : vector<1x512xf32> to vector<4x512xf32>
    %97 = arith.mulf %95, %96 : vector<4x512xf32>
    %c497_i32 = arith.constant 497 : i32
    %98 = tpu.dynamic_rotate %82 by %c497_i32 dim 1 : vector<4x512xf32>, i32 -> vector<4x512xf32>
    %99 = vector.broadcast %6 : vector<1x512xf32> to vector<4x512xf32>
    %100 = arith.mulf %98, %99 : vector<4x512xf32>
    %c496_i32 = arith.constant 496 : i32
    %101 = tpu.dynamic_rotate %82 by %c496_i32 dim 1 : vector<4x512xf32>, i32 -> vector<4x512xf32>
    %102 = vector.broadcast %7 : vector<1x512xf32> to vector<4x512xf32>
    %103 = arith.mulf %101, %102 : vector<4x512xf32>
    %c495_i32 = arith.constant 495 : i32
    %104 = tpu.dynamic_rotate %82 by %c495_i32 dim 1 : vector<4x512xf32>, i32 -> vector<4x512xf32>
    %105 = vector.broadcast %8 : vector<1x512xf32> to vector<4x512xf32>
    %106 = arith.mulf %104, %105 : vector<4x512xf32>
    %c0_34 = arith.constant 0 : index
    %c8_35 = arith.constant 8 : index
    %107 = vector.load %arg2[%c0_34, %c8_35] : memref<4x92xf32, #tpu.memory_space<vmem>>, vector<4x1xf32>
    %108 = vector.extract_strided_slice %85 {offsets = [0, 0], sizes = [1, 512], strides = [1, 1]} : vector<4x512xf32> to vector<1x512xf32>
    %109 = vector.broadcast %107 : vector<4x1xf32> to vector<4x512xf32>
    %110 = vector.broadcast %108 : vector<1x512xf32> to vector<4x512xf32>
    %111 = arith.mulf %109, %110 : vector<4x512xf32>
    %c0_36 = arith.constant 0 : index
    %c9 = arith.constant 9 : index
    %112 = vector.load %arg2[%c0_36, %c9] : memref<4x92xf32, #tpu.memory_space<vmem>>, vector<4x1xf32>
    %113 = vector.extract_strided_slice %85 {offsets = [1, 0], sizes = [1, 512], strides = [1, 1]} : vector<4x512xf32> to vector<1x512xf32>
    %114 = vector.broadcast %112 : vector<4x1xf32> to vector<4x512xf32>
    %115 = vector.broadcast %113 : vector<1x512xf32> to vector<4x512xf32>
    %116 = arith.mulf %114, %115 : vector<4x512xf32>
    %c0_37 = arith.constant 0 : index
    %c10 = arith.constant 10 : index
    %117 = vector.load %arg2[%c0_37, %c10] : memref<4x92xf32, #tpu.memory_space<vmem>>, vector<4x1xf32>
    %118 = vector.extract_strided_slice %85 {offsets = [2, 0], sizes = [1, 512], strides = [1, 1]} : vector<4x512xf32> to vector<1x512xf32>
    %119 = vector.broadcast %117 : vector<4x1xf32> to vector<4x512xf32>
    %120 = vector.broadcast %118 : vector<1x512xf32> to vector<4x512xf32>
    %121 = arith.mulf %119, %120 : vector<4x512xf32>
    %c0_38 = arith.constant 0 : index
    %c11 = arith.constant 11 : index
    %122 = vector.load %arg2[%c0_38, %c11] : memref<4x92xf32, #tpu.memory_space<vmem>>, vector<4x1xf32>
    %123 = vector.extract_strided_slice %85 {offsets = [3, 0], sizes = [1, 512], strides = [1, 1]} : vector<4x512xf32> to vector<1x512xf32>
    %124 = vector.broadcast %122 : vector<4x1xf32> to vector<4x512xf32>
    %125 = vector.broadcast %123 : vector<1x512xf32> to vector<4x512xf32>
    %126 = arith.mulf %124, %125 : vector<4x512xf32>
    %c0_39 = arith.constant 0 : index
    %c12 = arith.constant 12 : index
    %127 = vector.load %arg2[%c0_39, %c12] : memref<4x92xf32, #tpu.memory_space<vmem>>, vector<4x1xf32>
    %128 = vector.extract_strided_slice %88 {offsets = [0, 0], sizes = [1, 512], strides = [1, 1]} : vector<4x512xf32> to vector<1x512xf32>
    %129 = vector.broadcast %127 : vector<4x1xf32> to vector<4x512xf32>
    %130 = vector.broadcast %128 : vector<1x512xf32> to vector<4x512xf32>
    %131 = arith.mulf %129, %130 : vector<4x512xf32>
    %132 = arith.addf %111, %131 : vector<4x512xf32>
    %c0_40 = arith.constant 0 : index
    %c13 = arith.constant 13 : index
    %133 = vector.load %arg2[%c0_40, %c13] : memref<4x92xf32, #tpu.memory_space<vmem>>, vector<4x1xf32>
    %134 = vector.extract_strided_slice %88 {offsets = [1, 0], sizes = [1, 512], strides = [1, 1]} : vector<4x512xf32> to vector<1x512xf32>
    %135 = vector.broadcast %133 : vector<4x1xf32> to vector<4x512xf32>
    %136 = vector.broadcast %134 : vector<1x512xf32> to vector<4x512xf32>
    %137 = arith.mulf %135, %136 : vector<4x512xf32>
    %138 = arith.addf %116, %137 : vector<4x512xf32>
    %c0_41 = arith.constant 0 : index
    %c14 = arith.constant 14 : index
    %139 = vector.load %arg2[%c0_41, %c14] : memref<4x92xf32, #tpu.memory_space<vmem>>, vector<4x1xf32>
    %140 = vector.extract_strided_slice %88 {offsets = [2, 0], sizes = [1, 512], strides = [1, 1]} : vector<4x512xf32> to vector<1x512xf32>
    %141 = vector.broadcast %139 : vector<4x1xf32> to vector<4x512xf32>
    %142 = vector.broadcast %140 : vector<1x512xf32> to vector<4x512xf32>
    %143 = arith.mulf %141, %142 : vector<4x512xf32>
    %144 = arith.addf %121, %143 : vector<4x512xf32>
    %c0_42 = arith.constant 0 : index
    %c15 = arith.constant 15 : index
    %145 = vector.load %arg2[%c0_42, %c15] : memref<4x92xf32, #tpu.memory_space<vmem>>, vector<4x1xf32>
    %146 = vector.extract_strided_slice %88 {offsets = [3, 0], sizes = [1, 512], strides = [1, 1]} : vector<4x512xf32> to vector<1x512xf32>
    %147 = vector.broadcast %145 : vector<4x1xf32> to vector<4x512xf32>
    %148 = vector.broadcast %146 : vector<1x512xf32> to vector<4x512xf32>
    %149 = arith.mulf %147, %148 : vector<4x512xf32>
    %150 = arith.addf %126, %149 : vector<4x512xf32>
    %c0_43 = arith.constant 0 : index
    %c16 = arith.constant 16 : index
    %151 = vector.load %arg2[%c0_43, %c16] : memref<4x92xf32, #tpu.memory_space<vmem>>, vector<4x1xf32>
    %152 = vector.extract_strided_slice %91 {offsets = [0, 0], sizes = [1, 512], strides = [1, 1]} : vector<4x512xf32> to vector<1x512xf32>
    %153 = vector.broadcast %151 : vector<4x1xf32> to vector<4x512xf32>
    %154 = vector.broadcast %152 : vector<1x512xf32> to vector<4x512xf32>
    %155 = arith.mulf %153, %154 : vector<4x512xf32>
    %156 = arith.addf %132, %155 : vector<4x512xf32>
    %c0_44 = arith.constant 0 : index
    %c17 = arith.constant 17 : index
    %157 = vector.load %arg2[%c0_44, %c17] : memref<4x92xf32, #tpu.memory_space<vmem>>, vector<4x1xf32>
    %158 = vector.extract_strided_slice %91 {offsets = [1, 0], sizes = [1, 512], strides = [1, 1]} : vector<4x512xf32> to vector<1x512xf32>
    %159 = vector.broadcast %157 : vector<4x1xf32> to vector<4x512xf32>
    %160 = vector.broadcast %158 : vector<1x512xf32> to vector<4x512xf32>
    %161 = arith.mulf %159, %160 : vector<4x512xf32>
    %162 = arith.addf %138, %161 : vector<4x512xf32>
    %c0_45 = arith.constant 0 : index
    %c18 = arith.constant 18 : index
    %163 = vector.load %arg2[%c0_45, %c18] : memref<4x92xf32, #tpu.memory_space<vmem>>, vector<4x1xf32>
    %164 = vector.extract_strided_slice %91 {offsets = [2, 0], sizes = [1, 512], strides = [1, 1]} : vector<4x512xf32> to vector<1x512xf32>
    %165 = vector.broadcast %163 : vector<4x1xf32> to vector<4x512xf32>
    %166 = vector.broadcast %164 : vector<1x512xf32> to vector<4x512xf32>
    %167 = arith.mulf %165, %166 : vector<4x512xf32>
    %168 = arith.addf %144, %167 : vector<4x512xf32>
    %c0_46 = arith.constant 0 : index
    %c19 = arith.constant 19 : index
    %169 = vector.load %arg2[%c0_46, %c19] : memref<4x92xf32, #tpu.memory_space<vmem>>, vector<4x1xf32>
    %170 = vector.extract_strided_slice %91 {offsets = [3, 0], sizes = [1, 512], strides = [1, 1]} : vector<4x512xf32> to vector<1x512xf32>
    %171 = vector.broadcast %169 : vector<4x1xf32> to vector<4x512xf32>
    %172 = vector.broadcast %170 : vector<1x512xf32> to vector<4x512xf32>
    %173 = arith.mulf %171, %172 : vector<4x512xf32>
    %174 = arith.addf %150, %173 : vector<4x512xf32>
    %c0_47 = arith.constant 0 : index
    %c20 = arith.constant 20 : index
    %175 = vector.load %arg2[%c0_47, %c20] : memref<4x92xf32, #tpu.memory_space<vmem>>, vector<4x1xf32>
    %176 = vector.extract_strided_slice %94 {offsets = [0, 0], sizes = [1, 512], strides = [1, 1]} : vector<4x512xf32> to vector<1x512xf32>
    %177 = vector.broadcast %175 : vector<4x1xf32> to vector<4x512xf32>
    %178 = vector.broadcast %176 : vector<1x512xf32> to vector<4x512xf32>
    %179 = arith.mulf %177, %178 : vector<4x512xf32>
    %180 = arith.addf %156, %179 : vector<4x512xf32>
    %c0_48 = arith.constant 0 : index
    %c21 = arith.constant 21 : index
    %181 = vector.load %arg2[%c0_48, %c21] : memref<4x92xf32, #tpu.memory_space<vmem>>, vector<4x1xf32>
    %182 = vector.extract_strided_slice %94 {offsets = [1, 0], sizes = [1, 512], strides = [1, 1]} : vector<4x512xf32> to vector<1x512xf32>
    %183 = vector.broadcast %181 : vector<4x1xf32> to vector<4x512xf32>
    %184 = vector.broadcast %182 : vector<1x512xf32> to vector<4x512xf32>
    %185 = arith.mulf %183, %184 : vector<4x512xf32>
    %186 = arith.addf %162, %185 : vector<4x512xf32>
    %c0_49 = arith.constant 0 : index
    %c22 = arith.constant 22 : index
    %187 = vector.load %arg2[%c0_49, %c22] : memref<4x92xf32, #tpu.memory_space<vmem>>, vector<4x1xf32>
    %188 = vector.extract_strided_slice %94 {offsets = [2, 0], sizes = [1, 512], strides = [1, 1]} : vector<4x512xf32> to vector<1x512xf32>
    %189 = vector.broadcast %187 : vector<4x1xf32> to vector<4x512xf32>
    %190 = vector.broadcast %188 : vector<1x512xf32> to vector<4x512xf32>
    %191 = arith.mulf %189, %190 : vector<4x512xf32>
    %192 = arith.addf %168, %191 : vector<4x512xf32>
    %c0_50 = arith.constant 0 : index
    %c23 = arith.constant 23 : index
    %193 = vector.load %arg2[%c0_50, %c23] : memref<4x92xf32, #tpu.memory_space<vmem>>, vector<4x1xf32>
    %194 = vector.extract_strided_slice %94 {offsets = [3, 0], sizes = [1, 512], strides = [1, 1]} : vector<4x512xf32> to vector<1x512xf32>
    %195 = vector.broadcast %193 : vector<4x1xf32> to vector<4x512xf32>
    %196 = vector.broadcast %194 : vector<1x512xf32> to vector<4x512xf32>
    %197 = arith.mulf %195, %196 : vector<4x512xf32>
    %198 = arith.addf %174, %197 : vector<4x512xf32>
    %c0_51 = arith.constant 0 : index
    %c24 = arith.constant 24 : index
    %199 = vector.load %arg2[%c0_51, %c24] : memref<4x92xf32, #tpu.memory_space<vmem>>, vector<4x1xf32>
    %200 = vector.extract_strided_slice %82 {offsets = [0, 0], sizes = [1, 512], strides = [1, 1]} : vector<4x512xf32> to vector<1x512xf32>
    %201 = vector.broadcast %199 : vector<4x1xf32> to vector<4x512xf32>
    %202 = vector.broadcast %200 : vector<1x512xf32> to vector<4x512xf32>
    %203 = arith.mulf %201, %202 : vector<4x512xf32>
    %204 = arith.addf %180, %203 : vector<4x512xf32>
    %c0_52 = arith.constant 0 : index
    %c25 = arith.constant 25 : index
    %205 = vector.load %arg2[%c0_52, %c25] : memref<4x92xf32, #tpu.memory_space<vmem>>, vector<4x1xf32>
    %206 = vector.extract_strided_slice %82 {offsets = [1, 0], sizes = [1, 512], strides = [1, 1]} : vector<4x512xf32> to vector<1x512xf32>
    %207 = vector.broadcast %205 : vector<4x1xf32> to vector<4x512xf32>
    %208 = vector.broadcast %206 : vector<1x512xf32> to vector<4x512xf32>
    %209 = arith.mulf %207, %208 : vector<4x512xf32>
    %210 = arith.addf %186, %209 : vector<4x512xf32>
    %c0_53 = arith.constant 0 : index
    %c26 = arith.constant 26 : index
    %211 = vector.load %arg2[%c0_53, %c26] : memref<4x92xf32, #tpu.memory_space<vmem>>, vector<4x1xf32>
    %212 = vector.extract_strided_slice %82 {offsets = [2, 0], sizes = [1, 512], strides = [1, 1]} : vector<4x512xf32> to vector<1x512xf32>
    %213 = vector.broadcast %211 : vector<4x1xf32> to vector<4x512xf32>
    %214 = vector.broadcast %212 : vector<1x512xf32> to vector<4x512xf32>
    %215 = arith.mulf %213, %214 : vector<4x512xf32>
    %216 = arith.addf %192, %215 : vector<4x512xf32>
    %c0_54 = arith.constant 0 : index
    %c27 = arith.constant 27 : index
    %217 = vector.load %arg2[%c0_54, %c27] : memref<4x92xf32, #tpu.memory_space<vmem>>, vector<4x1xf32>
    %218 = vector.extract_strided_slice %82 {offsets = [3, 0], sizes = [1, 512], strides = [1, 1]} : vector<4x512xf32> to vector<1x512xf32>
    %219 = vector.broadcast %217 : vector<4x1xf32> to vector<4x512xf32>
    %220 = vector.broadcast %218 : vector<1x512xf32> to vector<4x512xf32>
    %221 = arith.mulf %219, %220 : vector<4x512xf32>
    %222 = arith.addf %198, %221 : vector<4x512xf32>
    %c0_55 = arith.constant 0 : index
    %c28 = arith.constant 28 : index
    %223 = vector.load %arg2[%c0_55, %c28] : memref<4x92xf32, #tpu.memory_space<vmem>>, vector<4x1xf32>
    %224 = vector.extract_strided_slice %97 {offsets = [0, 0], sizes = [1, 512], strides = [1, 1]} : vector<4x512xf32> to vector<1x512xf32>
    %225 = vector.broadcast %223 : vector<4x1xf32> to vector<4x512xf32>
    %226 = vector.broadcast %224 : vector<1x512xf32> to vector<4x512xf32>
    %227 = arith.mulf %225, %226 : vector<4x512xf32>
    %228 = arith.addf %204, %227 : vector<4x512xf32>
    %c0_56 = arith.constant 0 : index
    %c29 = arith.constant 29 : index
    %229 = vector.load %arg2[%c0_56, %c29] : memref<4x92xf32, #tpu.memory_space<vmem>>, vector<4x1xf32>
    %230 = vector.extract_strided_slice %97 {offsets = [1, 0], sizes = [1, 512], strides = [1, 1]} : vector<4x512xf32> to vector<1x512xf32>
    %231 = vector.broadcast %229 : vector<4x1xf32> to vector<4x512xf32>
    %232 = vector.broadcast %230 : vector<1x512xf32> to vector<4x512xf32>
    %233 = arith.mulf %231, %232 : vector<4x512xf32>
    %234 = arith.addf %210, %233 : vector<4x512xf32>
    %c0_57 = arith.constant 0 : index
    %c30 = arith.constant 30 : index
    %235 = vector.load %arg2[%c0_57, %c30] : memref<4x92xf32, #tpu.memory_space<vmem>>, vector<4x1xf32>
    %236 = vector.extract_strided_slice %97 {offsets = [2, 0], sizes = [1, 512], strides = [1, 1]} : vector<4x512xf32> to vector<1x512xf32>
    %237 = vector.broadcast %235 : vector<4x1xf32> to vector<4x512xf32>
    %238 = vector.broadcast %236 : vector<1x512xf32> to vector<4x512xf32>
    %239 = arith.mulf %237, %238 : vector<4x512xf32>
    %240 = arith.addf %216, %239 : vector<4x512xf32>
    %c0_58 = arith.constant 0 : index
    %c31 = arith.constant 31 : index
    %241 = vector.load %arg2[%c0_58, %c31] : memref<4x92xf32, #tpu.memory_space<vmem>>, vector<4x1xf32>
    %242 = vector.extract_strided_slice %97 {offsets = [3, 0], sizes = [1, 512], strides = [1, 1]} : vector<4x512xf32> to vector<1x512xf32>
    %243 = vector.broadcast %241 : vector<4x1xf32> to vector<4x512xf32>
    %244 = vector.broadcast %242 : vector<1x512xf32> to vector<4x512xf32>
    %245 = arith.mulf %243, %244 : vector<4x512xf32>
    %246 = arith.addf %222, %245 : vector<4x512xf32>
    %c0_59 = arith.constant 0 : index
    %c32 = arith.constant 32 : index
    %247 = vector.load %arg2[%c0_59, %c32] : memref<4x92xf32, #tpu.memory_space<vmem>>, vector<4x1xf32>
    %248 = vector.extract_strided_slice %100 {offsets = [0, 0], sizes = [1, 512], strides = [1, 1]} : vector<4x512xf32> to vector<1x512xf32>
    %249 = vector.broadcast %247 : vector<4x1xf32> to vector<4x512xf32>
    %250 = vector.broadcast %248 : vector<1x512xf32> to vector<4x512xf32>
    %251 = arith.mulf %249, %250 : vector<4x512xf32>
    %252 = arith.addf %228, %251 : vector<4x512xf32>
    %c0_60 = arith.constant 0 : index
    %c33 = arith.constant 33 : index
    %253 = vector.load %arg2[%c0_60, %c33] : memref<4x92xf32, #tpu.memory_space<vmem>>, vector<4x1xf32>
    %254 = vector.extract_strided_slice %100 {offsets = [1, 0], sizes = [1, 512], strides = [1, 1]} : vector<4x512xf32> to vector<1x512xf32>
    %255 = vector.broadcast %253 : vector<4x1xf32> to vector<4x512xf32>
    %256 = vector.broadcast %254 : vector<1x512xf32> to vector<4x512xf32>
    %257 = arith.mulf %255, %256 : vector<4x512xf32>
    %258 = arith.addf %234, %257 : vector<4x512xf32>
    %c0_61 = arith.constant 0 : index
    %c34 = arith.constant 34 : index
    %259 = vector.load %arg2[%c0_61, %c34] : memref<4x92xf32, #tpu.memory_space<vmem>>, vector<4x1xf32>
    %260 = vector.extract_strided_slice %100 {offsets = [2, 0], sizes = [1, 512], strides = [1, 1]} : vector<4x512xf32> to vector<1x512xf32>
    %261 = vector.broadcast %259 : vector<4x1xf32> to vector<4x512xf32>
    %262 = vector.broadcast %260 : vector<1x512xf32> to vector<4x512xf32>
    %263 = arith.mulf %261, %262 : vector<4x512xf32>
    %264 = arith.addf %240, %263 : vector<4x512xf32>
    %c0_62 = arith.constant 0 : index
    %c35 = arith.constant 35 : index
    %265 = vector.load %arg2[%c0_62, %c35] : memref<4x92xf32, #tpu.memory_space<vmem>>, vector<4x1xf32>
    %266 = vector.extract_strided_slice %100 {offsets = [3, 0], sizes = [1, 512], strides = [1, 1]} : vector<4x512xf32> to vector<1x512xf32>
    %267 = vector.broadcast %265 : vector<4x1xf32> to vector<4x512xf32>
    %268 = vector.broadcast %266 : vector<1x512xf32> to vector<4x512xf32>
    %269 = arith.mulf %267, %268 : vector<4x512xf32>
    %270 = arith.addf %246, %269 : vector<4x512xf32>
    %c0_63 = arith.constant 0 : index
    %c36 = arith.constant 36 : index
    %271 = vector.load %arg2[%c0_63, %c36] : memref<4x92xf32, #tpu.memory_space<vmem>>, vector<4x1xf32>
    %272 = vector.extract_strided_slice %103 {offsets = [0, 0], sizes = [1, 512], strides = [1, 1]} : vector<4x512xf32> to vector<1x512xf32>
    %273 = vector.broadcast %271 : vector<4x1xf32> to vector<4x512xf32>
    %274 = vector.broadcast %272 : vector<1x512xf32> to vector<4x512xf32>
    %275 = arith.mulf %273, %274 : vector<4x512xf32>
    %276 = arith.addf %252, %275 : vector<4x512xf32>
    %c0_64 = arith.constant 0 : index
    %c37 = arith.constant 37 : index
    %277 = vector.load %arg2[%c0_64, %c37] : memref<4x92xf32, #tpu.memory_space<vmem>>, vector<4x1xf32>
    %278 = vector.extract_strided_slice %103 {offsets = [1, 0], sizes = [1, 512], strides = [1, 1]} : vector<4x512xf32> to vector<1x512xf32>
    %279 = vector.broadcast %277 : vector<4x1xf32> to vector<4x512xf32>
    %280 = vector.broadcast %278 : vector<1x512xf32> to vector<4x512xf32>
    %281 = arith.mulf %279, %280 : vector<4x512xf32>
    %282 = arith.addf %258, %281 : vector<4x512xf32>
    %c0_65 = arith.constant 0 : index
    %c38 = arith.constant 38 : index
    %283 = vector.load %arg2[%c0_65, %c38] : memref<4x92xf32, #tpu.memory_space<vmem>>, vector<4x1xf32>
    %284 = vector.extract_strided_slice %103 {offsets = [2, 0], sizes = [1, 512], strides = [1, 1]} : vector<4x512xf32> to vector<1x512xf32>
    %285 = vector.broadcast %283 : vector<4x1xf32> to vector<4x512xf32>
    %286 = vector.broadcast %284 : vector<1x512xf32> to vector<4x512xf32>
    %287 = arith.mulf %285, %286 : vector<4x512xf32>
    %288 = arith.addf %264, %287 : vector<4x512xf32>
    %c0_66 = arith.constant 0 : index
    %c39 = arith.constant 39 : index
    %289 = vector.load %arg2[%c0_66, %c39] : memref<4x92xf32, #tpu.memory_space<vmem>>, vector<4x1xf32>
    %290 = vector.extract_strided_slice %103 {offsets = [3, 0], sizes = [1, 512], strides = [1, 1]} : vector<4x512xf32> to vector<1x512xf32>
    %291 = vector.broadcast %289 : vector<4x1xf32> to vector<4x512xf32>
    %292 = vector.broadcast %290 : vector<1x512xf32> to vector<4x512xf32>
    %293 = arith.mulf %291, %292 : vector<4x512xf32>
    %294 = arith.addf %270, %293 : vector<4x512xf32>
    %c0_67 = arith.constant 0 : index
    %c40 = arith.constant 40 : index
    %295 = vector.load %arg2[%c0_67, %c40] : memref<4x92xf32, #tpu.memory_space<vmem>>, vector<4x1xf32>
    %296 = vector.extract_strided_slice %106 {offsets = [0, 0], sizes = [1, 512], strides = [1, 1]} : vector<4x512xf32> to vector<1x512xf32>
    %297 = vector.broadcast %295 : vector<4x1xf32> to vector<4x512xf32>
    %298 = vector.broadcast %296 : vector<1x512xf32> to vector<4x512xf32>
    %299 = arith.mulf %297, %298 : vector<4x512xf32>
    %300 = arith.addf %276, %299 : vector<4x512xf32>
    %c0_68 = arith.constant 0 : index
    %c41 = arith.constant 41 : index
    %301 = vector.load %arg2[%c0_68, %c41] : memref<4x92xf32, #tpu.memory_space<vmem>>, vector<4x1xf32>
    %302 = vector.extract_strided_slice %106 {offsets = [1, 0], sizes = [1, 512], strides = [1, 1]} : vector<4x512xf32> to vector<1x512xf32>
    %303 = vector.broadcast %301 : vector<4x1xf32> to vector<4x512xf32>
    %304 = vector.broadcast %302 : vector<1x512xf32> to vector<4x512xf32>
    %305 = arith.mulf %303, %304 : vector<4x512xf32>
    %306 = arith.addf %282, %305 : vector<4x512xf32>
    %c0_69 = arith.constant 0 : index
    %c42 = arith.constant 42 : index
    %307 = vector.load %arg2[%c0_69, %c42] : memref<4x92xf32, #tpu.memory_space<vmem>>, vector<4x1xf32>
    %308 = vector.extract_strided_slice %106 {offsets = [2, 0], sizes = [1, 512], strides = [1, 1]} : vector<4x512xf32> to vector<1x512xf32>
    %309 = vector.broadcast %307 : vector<4x1xf32> to vector<4x512xf32>
    %310 = vector.broadcast %308 : vector<1x512xf32> to vector<4x512xf32>
    %311 = arith.mulf %309, %310 : vector<4x512xf32>
    %312 = arith.addf %288, %311 : vector<4x512xf32>
    %c0_70 = arith.constant 0 : index
    %c43 = arith.constant 43 : index
    %313 = vector.load %arg2[%c0_70, %c43] : memref<4x92xf32, #tpu.memory_space<vmem>>, vector<4x1xf32>
    %314 = vector.extract_strided_slice %106 {offsets = [3, 0], sizes = [1, 512], strides = [1, 1]} : vector<4x512xf32> to vector<1x512xf32>
    %315 = vector.broadcast %313 : vector<4x1xf32> to vector<4x512xf32>
    %316 = vector.broadcast %314 : vector<1x512xf32> to vector<4x512xf32>
    %317 = arith.mulf %315, %316 : vector<4x512xf32>
    %318 = arith.addf %294, %317 : vector<4x512xf32>
    %319 = arith.addf %300, %306 : vector<4x512xf32>
    %320 = arith.addf %319, %312 : vector<4x512xf32>
    %321 = arith.addf %320, %318 : vector<4x512xf32>
    %c0_71 = arith.constant 0 : index
    %c2_72 = arith.constant 2 : index
    %322 = vector.load %arg3[%c0_71, %c2_72] : memref<4x6xf32, #tpu.memory_space<vmem>>, vector<4x1xf32>
    %323 = vector.broadcast %322 : vector<4x1xf32> to vector<4x512xf32>
    %324 = arith.addf %321, %323 : vector<4x512xf32>
    %cst_73 = arith.constant 2.000000e+01 : f32
    %325 = vector.broadcast %cst_73 : f32 to vector<4x512xf32>
    %326 = arith.minimumf %324, %325 : vector<4x512xf32>
    %327 = math.exp %326 : vector<4x512xf32>
    %cst_74 = arith.constant 2.000000e+00 : f32
    %328 = vector.broadcast %cst_74 : f32 to vector<4x512xf32>
    %329 = arith.addf %327, %328 : vector<4x512xf32>
    %330 = arith.mulf %327, %329 : vector<4x512xf32>
    %331 = arith.mulf %324, %330 : vector<4x512xf32>
    %cst_75 = arith.constant 2.000000e+00 : f32
    %332 = vector.broadcast %cst_75 : f32 to vector<4x512xf32>
    %333 = arith.addf %330, %332 : vector<4x512xf32>
    %334 = tpu.reciprocal %333 : vector<4x512xf32> -> vector<4x512xf32>
    %335 = arith.mulf %331, %334 : vector<4x512xf32>
    %c0_76 = arith.constant 0 : index
    %c44 = arith.constant 44 : index
    %336 = vector.load %arg2[%c0_76, %c44] : memref<4x92xf32, #tpu.memory_space<vmem>>, vector<4x1xf32>
    %337 = vector.extract_strided_slice %335 {offsets = [0, 0], sizes = [1, 512], strides = [1, 1]} : vector<4x512xf32> to vector<1x512xf32>
    %338 = vector.broadcast %336 : vector<4x1xf32> to vector<4x512xf32>
    %339 = vector.broadcast %337 : vector<1x512xf32> to vector<4x512xf32>
    %340 = arith.mulf %338, %339 : vector<4x512xf32>
    %c0_77 = arith.constant 0 : index
    %c45 = arith.constant 45 : index
    %341 = vector.load %arg2[%c0_77, %c45] : memref<4x92xf32, #tpu.memory_space<vmem>>, vector<4x1xf32>
    %342 = vector.extract_strided_slice %335 {offsets = [1, 0], sizes = [1, 512], strides = [1, 1]} : vector<4x512xf32> to vector<1x512xf32>
    %343 = vector.broadcast %341 : vector<4x1xf32> to vector<4x512xf32>
    %344 = vector.broadcast %342 : vector<1x512xf32> to vector<4x512xf32>
    %345 = arith.mulf %343, %344 : vector<4x512xf32>
    %c0_78 = arith.constant 0 : index
    %c46 = arith.constant 46 : index
    %346 = vector.load %arg2[%c0_78, %c46] : memref<4x92xf32, #tpu.memory_space<vmem>>, vector<4x1xf32>
    %347 = vector.extract_strided_slice %335 {offsets = [2, 0], sizes = [1, 512], strides = [1, 1]} : vector<4x512xf32> to vector<1x512xf32>
    %348 = vector.broadcast %346 : vector<4x1xf32> to vector<4x512xf32>
    %349 = vector.broadcast %347 : vector<1x512xf32> to vector<4x512xf32>
    %350 = arith.mulf %348, %349 : vector<4x512xf32>
    %c0_79 = arith.constant 0 : index
    %c47 = arith.constant 47 : index
    %351 = vector.load %arg2[%c0_79, %c47] : memref<4x92xf32, #tpu.memory_space<vmem>>, vector<4x1xf32>
    %352 = vector.extract_strided_slice %335 {offsets = [3, 0], sizes = [1, 512], strides = [1, 1]} : vector<4x512xf32> to vector<1x512xf32>
    %353 = vector.broadcast %351 : vector<4x1xf32> to vector<4x512xf32>
    %354 = vector.broadcast %352 : vector<1x512xf32> to vector<4x512xf32>
    %355 = arith.mulf %353, %354 : vector<4x512xf32>
    %356 = arith.addf %340, %345 : vector<4x512xf32>
    %357 = arith.addf %356, %350 : vector<4x512xf32>
    %358 = arith.addf %357, %355 : vector<4x512xf32>
    %c0_80 = arith.constant 0 : index
    %c3_81 = arith.constant 3 : index
    %359 = vector.load %arg3[%c0_80, %c3_81] : memref<4x6xf32, #tpu.memory_space<vmem>>, vector<4x1xf32>
    %360 = vector.broadcast %359 : vector<4x1xf32> to vector<4x512xf32>
    %361 = arith.addf %358, %360 : vector<4x512xf32>
    %cst_82 = arith.constant 2.000000e+01 : f32
    %362 = vector.broadcast %cst_82 : f32 to vector<4x512xf32>
    %363 = arith.minimumf %361, %362 : vector<4x512xf32>
    %364 = math.exp %363 : vector<4x512xf32>
    %cst_83 = arith.constant 2.000000e+00 : f32
    %365 = vector.broadcast %cst_83 : f32 to vector<4x512xf32>
    %366 = arith.addf %364, %365 : vector<4x512xf32>
    %367 = arith.mulf %364, %366 : vector<4x512xf32>
    %368 = arith.mulf %361, %367 : vector<4x512xf32>
    %cst_84 = arith.constant 2.000000e+00 : f32
    %369 = vector.broadcast %cst_84 : f32 to vector<4x512xf32>
    %370 = arith.addf %367, %369 : vector<4x512xf32>
    %371 = tpu.reciprocal %370 : vector<4x512xf32> -> vector<4x512xf32>
    %372 = arith.mulf %368, %371 : vector<4x512xf32>
    %c17_i32_85 = arith.constant 17 : i32
    %373 = tpu.dynamic_rotate %372 by %c17_i32_85 dim 1 : vector<4x512xf32>, i32 -> vector<4x512xf32>
    %374 = vector.broadcast %1 : vector<1x512xf32> to vector<4x512xf32>
    %375 = arith.mulf %373, %374 : vector<4x512xf32>
    %c16_i32_86 = arith.constant 16 : i32
    %376 = tpu.dynamic_rotate %372 by %c16_i32_86 dim 1 : vector<4x512xf32>, i32 -> vector<4x512xf32>
    %377 = vector.broadcast %2 : vector<1x512xf32> to vector<4x512xf32>
    %378 = arith.mulf %376, %377 : vector<4x512xf32>
    %c15_i32_87 = arith.constant 15 : i32
    %379 = tpu.dynamic_rotate %372 by %c15_i32_87 dim 1 : vector<4x512xf32>, i32 -> vector<4x512xf32>
    %380 = vector.broadcast %3 : vector<1x512xf32> to vector<4x512xf32>
    %381 = arith.mulf %379, %380 : vector<4x512xf32>
    %c1_i32_88 = arith.constant 1 : i32
    %382 = tpu.dynamic_rotate %372 by %c1_i32_88 dim 1 : vector<4x512xf32>, i32 -> vector<4x512xf32>
    %383 = vector.broadcast %4 : vector<1x512xf32> to vector<4x512xf32>
    %384 = arith.mulf %382, %383 : vector<4x512xf32>
    %c511_i32_89 = arith.constant 511 : i32
    %385 = tpu.dynamic_rotate %372 by %c511_i32_89 dim 1 : vector<4x512xf32>, i32 -> vector<4x512xf32>
    %386 = vector.broadcast %5 : vector<1x512xf32> to vector<4x512xf32>
    %387 = arith.mulf %385, %386 : vector<4x512xf32>
    %c497_i32_90 = arith.constant 497 : i32
    %388 = tpu.dynamic_rotate %372 by %c497_i32_90 dim 1 : vector<4x512xf32>, i32 -> vector<4x512xf32>
    %389 = vector.broadcast %6 : vector<1x512xf32> to vector<4x512xf32>
    %390 = arith.mulf %388, %389 : vector<4x512xf32>
    %c496_i32_91 = arith.constant 496 : i32
    %391 = tpu.dynamic_rotate %372 by %c496_i32_91 dim 1 : vector<4x512xf32>, i32 -> vector<4x512xf32>
    %392 = vector.broadcast %7 : vector<1x512xf32> to vector<4x512xf32>
    %393 = arith.mulf %391, %392 : vector<4x512xf32>
    %c495_i32_92 = arith.constant 495 : i32
    %394 = tpu.dynamic_rotate %372 by %c495_i32_92 dim 1 : vector<4x512xf32>, i32 -> vector<4x512xf32>
    %395 = vector.broadcast %8 : vector<1x512xf32> to vector<4x512xf32>
    %396 = arith.mulf %394, %395 : vector<4x512xf32>
    %c0_93 = arith.constant 0 : index
    %c48 = arith.constant 48 : index
    %397 = vector.load %arg2[%c0_93, %c48] : memref<4x92xf32, #tpu.memory_space<vmem>>, vector<4x1xf32>
    %398 = vector.extract_strided_slice %375 {offsets = [0, 0], sizes = [1, 512], strides = [1, 1]} : vector<4x512xf32> to vector<1x512xf32>
    %399 = vector.broadcast %397 : vector<4x1xf32> to vector<4x512xf32>
    %400 = vector.broadcast %398 : vector<1x512xf32> to vector<4x512xf32>
    %401 = arith.mulf %399, %400 : vector<4x512xf32>
    %c0_94 = arith.constant 0 : index
    %c49 = arith.constant 49 : index
    %402 = vector.load %arg2[%c0_94, %c49] : memref<4x92xf32, #tpu.memory_space<vmem>>, vector<4x1xf32>
    %403 = vector.extract_strided_slice %375 {offsets = [1, 0], sizes = [1, 512], strides = [1, 1]} : vector<4x512xf32> to vector<1x512xf32>
    %404 = vector.broadcast %402 : vector<4x1xf32> to vector<4x512xf32>
    %405 = vector.broadcast %403 : vector<1x512xf32> to vector<4x512xf32>
    %406 = arith.mulf %404, %405 : vector<4x512xf32>
    %c0_95 = arith.constant 0 : index
    %c50 = arith.constant 50 : index
    %407 = vector.load %arg2[%c0_95, %c50] : memref<4x92xf32, #tpu.memory_space<vmem>>, vector<4x1xf32>
    %408 = vector.extract_strided_slice %375 {offsets = [2, 0], sizes = [1, 512], strides = [1, 1]} : vector<4x512xf32> to vector<1x512xf32>
    %409 = vector.broadcast %407 : vector<4x1xf32> to vector<4x512xf32>
    %410 = vector.broadcast %408 : vector<1x512xf32> to vector<4x512xf32>
    %411 = arith.mulf %409, %410 : vector<4x512xf32>
    %c0_96 = arith.constant 0 : index
    %c51 = arith.constant 51 : index
    %412 = vector.load %arg2[%c0_96, %c51] : memref<4x92xf32, #tpu.memory_space<vmem>>, vector<4x1xf32>
    %413 = vector.extract_strided_slice %375 {offsets = [3, 0], sizes = [1, 512], strides = [1, 1]} : vector<4x512xf32> to vector<1x512xf32>
    %414 = vector.broadcast %412 : vector<4x1xf32> to vector<4x512xf32>
    %415 = vector.broadcast %413 : vector<1x512xf32> to vector<4x512xf32>
    %416 = arith.mulf %414, %415 : vector<4x512xf32>
    %c0_97 = arith.constant 0 : index
    %c52 = arith.constant 52 : index
    %417 = vector.load %arg2[%c0_97, %c52] : memref<4x92xf32, #tpu.memory_space<vmem>>, vector<4x1xf32>
    %418 = vector.extract_strided_slice %378 {offsets = [0, 0], sizes = [1, 512], strides = [1, 1]} : vector<4x512xf32> to vector<1x512xf32>
    %419 = vector.broadcast %417 : vector<4x1xf32> to vector<4x512xf32>
    %420 = vector.broadcast %418 : vector<1x512xf32> to vector<4x512xf32>
    %421 = arith.mulf %419, %420 : vector<4x512xf32>
    %422 = arith.addf %401, %421 : vector<4x512xf32>
    %c0_98 = arith.constant 0 : index
    %c53 = arith.constant 53 : index
    %423 = vector.load %arg2[%c0_98, %c53] : memref<4x92xf32, #tpu.memory_space<vmem>>, vector<4x1xf32>
    %424 = vector.extract_strided_slice %378 {offsets = [1, 0], sizes = [1, 512], strides = [1, 1]} : vector<4x512xf32> to vector<1x512xf32>
    %425 = vector.broadcast %423 : vector<4x1xf32> to vector<4x512xf32>
    %426 = vector.broadcast %424 : vector<1x512xf32> to vector<4x512xf32>
    %427 = arith.mulf %425, %426 : vector<4x512xf32>
    %428 = arith.addf %406, %427 : vector<4x512xf32>
    %c0_99 = arith.constant 0 : index
    %c54 = arith.constant 54 : index
    %429 = vector.load %arg2[%c0_99, %c54] : memref<4x92xf32, #tpu.memory_space<vmem>>, vector<4x1xf32>
    %430 = vector.extract_strided_slice %378 {offsets = [2, 0], sizes = [1, 512], strides = [1, 1]} : vector<4x512xf32> to vector<1x512xf32>
    %431 = vector.broadcast %429 : vector<4x1xf32> to vector<4x512xf32>
    %432 = vector.broadcast %430 : vector<1x512xf32> to vector<4x512xf32>
    %433 = arith.mulf %431, %432 : vector<4x512xf32>
    %434 = arith.addf %411, %433 : vector<4x512xf32>
    %c0_100 = arith.constant 0 : index
    %c55 = arith.constant 55 : index
    %435 = vector.load %arg2[%c0_100, %c55] : memref<4x92xf32, #tpu.memory_space<vmem>>, vector<4x1xf32>
    %436 = vector.extract_strided_slice %378 {offsets = [3, 0], sizes = [1, 512], strides = [1, 1]} : vector<4x512xf32> to vector<1x512xf32>
    %437 = vector.broadcast %435 : vector<4x1xf32> to vector<4x512xf32>
    %438 = vector.broadcast %436 : vector<1x512xf32> to vector<4x512xf32>
    %439 = arith.mulf %437, %438 : vector<4x512xf32>
    %440 = arith.addf %416, %439 : vector<4x512xf32>
    %c0_101 = arith.constant 0 : index
    %c56 = arith.constant 56 : index
    %441 = vector.load %arg2[%c0_101, %c56] : memref<4x92xf32, #tpu.memory_space<vmem>>, vector<4x1xf32>
    %442 = vector.extract_strided_slice %381 {offsets = [0, 0], sizes = [1, 512], strides = [1, 1]} : vector<4x512xf32> to vector<1x512xf32>
    %443 = vector.broadcast %441 : vector<4x1xf32> to vector<4x512xf32>
    %444 = vector.broadcast %442 : vector<1x512xf32> to vector<4x512xf32>
    %445 = arith.mulf %443, %444 : vector<4x512xf32>
    %446 = arith.addf %422, %445 : vector<4x512xf32>
    %c0_102 = arith.constant 0 : index
    %c57 = arith.constant 57 : index
    %447 = vector.load %arg2[%c0_102, %c57] : memref<4x92xf32, #tpu.memory_space<vmem>>, vector<4x1xf32>
    %448 = vector.extract_strided_slice %381 {offsets = [1, 0], sizes = [1, 512], strides = [1, 1]} : vector<4x512xf32> to vector<1x512xf32>
    %449 = vector.broadcast %447 : vector<4x1xf32> to vector<4x512xf32>
    %450 = vector.broadcast %448 : vector<1x512xf32> to vector<4x512xf32>
    %451 = arith.mulf %449, %450 : vector<4x512xf32>
    %452 = arith.addf %428, %451 : vector<4x512xf32>
    %c0_103 = arith.constant 0 : index
    %c58 = arith.constant 58 : index
    %453 = vector.load %arg2[%c0_103, %c58] : memref<4x92xf32, #tpu.memory_space<vmem>>, vector<4x1xf32>
    %454 = vector.extract_strided_slice %381 {offsets = [2, 0], sizes = [1, 512], strides = [1, 1]} : vector<4x512xf32> to vector<1x512xf32>
    %455 = vector.broadcast %453 : vector<4x1xf32> to vector<4x512xf32>
    %456 = vector.broadcast %454 : vector<1x512xf32> to vector<4x512xf32>
    %457 = arith.mulf %455, %456 : vector<4x512xf32>
    %458 = arith.addf %434, %457 : vector<4x512xf32>
    %c0_104 = arith.constant 0 : index
    %c59 = arith.constant 59 : index
    %459 = vector.load %arg2[%c0_104, %c59] : memref<4x92xf32, #tpu.memory_space<vmem>>, vector<4x1xf32>
    %460 = vector.extract_strided_slice %381 {offsets = [3, 0], sizes = [1, 512], strides = [1, 1]} : vector<4x512xf32> to vector<1x512xf32>
    %461 = vector.broadcast %459 : vector<4x1xf32> to vector<4x512xf32>
    %462 = vector.broadcast %460 : vector<1x512xf32> to vector<4x512xf32>
    %463 = arith.mulf %461, %462 : vector<4x512xf32>
    %464 = arith.addf %440, %463 : vector<4x512xf32>
    %c0_105 = arith.constant 0 : index
    %c60 = arith.constant 60 : index
    %465 = vector.load %arg2[%c0_105, %c60] : memref<4x92xf32, #tpu.memory_space<vmem>>, vector<4x1xf32>
    %466 = vector.extract_strided_slice %384 {offsets = [0, 0], sizes = [1, 512], strides = [1, 1]} : vector<4x512xf32> to vector<1x512xf32>
    %467 = vector.broadcast %465 : vector<4x1xf32> to vector<4x512xf32>
    %468 = vector.broadcast %466 : vector<1x512xf32> to vector<4x512xf32>
    %469 = arith.mulf %467, %468 : vector<4x512xf32>
    %470 = arith.addf %446, %469 : vector<4x512xf32>
    %c0_106 = arith.constant 0 : index
    %c61 = arith.constant 61 : index
    %471 = vector.load %arg2[%c0_106, %c61] : memref<4x92xf32, #tpu.memory_space<vmem>>, vector<4x1xf32>
    %472 = vector.extract_strided_slice %384 {offsets = [1, 0], sizes = [1, 512], strides = [1, 1]} : vector<4x512xf32> to vector<1x512xf32>
    %473 = vector.broadcast %471 : vector<4x1xf32> to vector<4x512xf32>
    %474 = vector.broadcast %472 : vector<1x512xf32> to vector<4x512xf32>
    %475 = arith.mulf %473, %474 : vector<4x512xf32>
    %476 = arith.addf %452, %475 : vector<4x512xf32>
    %c0_107 = arith.constant 0 : index
    %c62 = arith.constant 62 : index
    %477 = vector.load %arg2[%c0_107, %c62] : memref<4x92xf32, #tpu.memory_space<vmem>>, vector<4x1xf32>
    %478 = vector.extract_strided_slice %384 {offsets = [2, 0], sizes = [1, 512], strides = [1, 1]} : vector<4x512xf32> to vector<1x512xf32>
    %479 = vector.broadcast %477 : vector<4x1xf32> to vector<4x512xf32>
    %480 = vector.broadcast %478 : vector<1x512xf32> to vector<4x512xf32>
    %481 = arith.mulf %479, %480 : vector<4x512xf32>
    %482 = arith.addf %458, %481 : vector<4x512xf32>
    %c0_108 = arith.constant 0 : index
    %c63 = arith.constant 63 : index
    %483 = vector.load %arg2[%c0_108, %c63] : memref<4x92xf32, #tpu.memory_space<vmem>>, vector<4x1xf32>
    %484 = vector.extract_strided_slice %384 {offsets = [3, 0], sizes = [1, 512], strides = [1, 1]} : vector<4x512xf32> to vector<1x512xf32>
    %485 = vector.broadcast %483 : vector<4x1xf32> to vector<4x512xf32>
    %486 = vector.broadcast %484 : vector<1x512xf32> to vector<4x512xf32>
    %487 = arith.mulf %485, %486 : vector<4x512xf32>
    %488 = arith.addf %464, %487 : vector<4x512xf32>
    %c0_109 = arith.constant 0 : index
    %c64 = arith.constant 64 : index
    %489 = vector.load %arg2[%c0_109, %c64] : memref<4x92xf32, #tpu.memory_space<vmem>>, vector<4x1xf32>
    %490 = vector.extract_strided_slice %372 {offsets = [0, 0], sizes = [1, 512], strides = [1, 1]} : vector<4x512xf32> to vector<1x512xf32>
    %491 = vector.broadcast %489 : vector<4x1xf32> to vector<4x512xf32>
    %492 = vector.broadcast %490 : vector<1x512xf32> to vector<4x512xf32>
    %493 = arith.mulf %491, %492 : vector<4x512xf32>
    %494 = arith.addf %470, %493 : vector<4x512xf32>
    %c0_110 = arith.constant 0 : index
    %c65 = arith.constant 65 : index
    %495 = vector.load %arg2[%c0_110, %c65] : memref<4x92xf32, #tpu.memory_space<vmem>>, vector<4x1xf32>
    %496 = vector.extract_strided_slice %372 {offsets = [1, 0], sizes = [1, 512], strides = [1, 1]} : vector<4x512xf32> to vector<1x512xf32>
    %497 = vector.broadcast %495 : vector<4x1xf32> to vector<4x512xf32>
    %498 = vector.broadcast %496 : vector<1x512xf32> to vector<4x512xf32>
    %499 = arith.mulf %497, %498 : vector<4x512xf32>
    %500 = arith.addf %476, %499 : vector<4x512xf32>
    %c0_111 = arith.constant 0 : index
    %c66 = arith.constant 66 : index
    %501 = vector.load %arg2[%c0_111, %c66] : memref<4x92xf32, #tpu.memory_space<vmem>>, vector<4x1xf32>
    %502 = vector.extract_strided_slice %372 {offsets = [2, 0], sizes = [1, 512], strides = [1, 1]} : vector<4x512xf32> to vector<1x512xf32>
    %503 = vector.broadcast %501 : vector<4x1xf32> to vector<4x512xf32>
    %504 = vector.broadcast %502 : vector<1x512xf32> to vector<4x512xf32>
    %505 = arith.mulf %503, %504 : vector<4x512xf32>
    %506 = arith.addf %482, %505 : vector<4x512xf32>
    %c0_112 = arith.constant 0 : index
    %c67 = arith.constant 67 : index
    %507 = vector.load %arg2[%c0_112, %c67] : memref<4x92xf32, #tpu.memory_space<vmem>>, vector<4x1xf32>
    %508 = vector.extract_strided_slice %372 {offsets = [3, 0], sizes = [1, 512], strides = [1, 1]} : vector<4x512xf32> to vector<1x512xf32>
    %509 = vector.broadcast %507 : vector<4x1xf32> to vector<4x512xf32>
    %510 = vector.broadcast %508 : vector<1x512xf32> to vector<4x512xf32>
    %511 = arith.mulf %509, %510 : vector<4x512xf32>
    %512 = arith.addf %488, %511 : vector<4x512xf32>
    %c0_113 = arith.constant 0 : index
    %c68 = arith.constant 68 : index
    %513 = vector.load %arg2[%c0_113, %c68] : memref<4x92xf32, #tpu.memory_space<vmem>>, vector<4x1xf32>
    %514 = vector.extract_strided_slice %387 {offsets = [0, 0], sizes = [1, 512], strides = [1, 1]} : vector<4x512xf32> to vector<1x512xf32>
    %515 = vector.broadcast %513 : vector<4x1xf32> to vector<4x512xf32>
    %516 = vector.broadcast %514 : vector<1x512xf32> to vector<4x512xf32>
    %517 = arith.mulf %515, %516 : vector<4x512xf32>
    %518 = arith.addf %494, %517 : vector<4x512xf32>
    %c0_114 = arith.constant 0 : index
    %c69 = arith.constant 69 : index
    %519 = vector.load %arg2[%c0_114, %c69] : memref<4x92xf32, #tpu.memory_space<vmem>>, vector<4x1xf32>
    %520 = vector.extract_strided_slice %387 {offsets = [1, 0], sizes = [1, 512], strides = [1, 1]} : vector<4x512xf32> to vector<1x512xf32>
    %521 = vector.broadcast %519 : vector<4x1xf32> to vector<4x512xf32>
    %522 = vector.broadcast %520 : vector<1x512xf32> to vector<4x512xf32>
    %523 = arith.mulf %521, %522 : vector<4x512xf32>
    %524 = arith.addf %500, %523 : vector<4x512xf32>
    %c0_115 = arith.constant 0 : index
    %c70 = arith.constant 70 : index
    %525 = vector.load %arg2[%c0_115, %c70] : memref<4x92xf32, #tpu.memory_space<vmem>>, vector<4x1xf32>
    %526 = vector.extract_strided_slice %387 {offsets = [2, 0], sizes = [1, 512], strides = [1, 1]} : vector<4x512xf32> to vector<1x512xf32>
    %527 = vector.broadcast %525 : vector<4x1xf32> to vector<4x512xf32>
    %528 = vector.broadcast %526 : vector<1x512xf32> to vector<4x512xf32>
    %529 = arith.mulf %527, %528 : vector<4x512xf32>
    %530 = arith.addf %506, %529 : vector<4x512xf32>
    %c0_116 = arith.constant 0 : index
    %c71 = arith.constant 71 : index
    %531 = vector.load %arg2[%c0_116, %c71] : memref<4x92xf32, #tpu.memory_space<vmem>>, vector<4x1xf32>
    %532 = vector.extract_strided_slice %387 {offsets = [3, 0], sizes = [1, 512], strides = [1, 1]} : vector<4x512xf32> to vector<1x512xf32>
    %533 = vector.broadcast %531 : vector<4x1xf32> to vector<4x512xf32>
    %534 = vector.broadcast %532 : vector<1x512xf32> to vector<4x512xf32>
    %535 = arith.mulf %533, %534 : vector<4x512xf32>
    %536 = arith.addf %512, %535 : vector<4x512xf32>
    %c0_117 = arith.constant 0 : index
    %c72 = arith.constant 72 : index
    %537 = vector.load %arg2[%c0_117, %c72] : memref<4x92xf32, #tpu.memory_space<vmem>>, vector<4x1xf32>
    %538 = vector.extract_strided_slice %390 {offsets = [0, 0], sizes = [1, 512], strides = [1, 1]} : vector<4x512xf32> to vector<1x512xf32>
    %539 = vector.broadcast %537 : vector<4x1xf32> to vector<4x512xf32>
    %540 = vector.broadcast %538 : vector<1x512xf32> to vector<4x512xf32>
    %541 = arith.mulf %539, %540 : vector<4x512xf32>
    %542 = arith.addf %518, %541 : vector<4x512xf32>
    %c0_118 = arith.constant 0 : index
    %c73 = arith.constant 73 : index
    %543 = vector.load %arg2[%c0_118, %c73] : memref<4x92xf32, #tpu.memory_space<vmem>>, vector<4x1xf32>
    %544 = vector.extract_strided_slice %390 {offsets = [1, 0], sizes = [1, 512], strides = [1, 1]} : vector<4x512xf32> to vector<1x512xf32>
    %545 = vector.broadcast %543 : vector<4x1xf32> to vector<4x512xf32>
    %546 = vector.broadcast %544 : vector<1x512xf32> to vector<4x512xf32>
    %547 = arith.mulf %545, %546 : vector<4x512xf32>
    %548 = arith.addf %524, %547 : vector<4x512xf32>
    %c0_119 = arith.constant 0 : index
    %c74 = arith.constant 74 : index
    %549 = vector.load %arg2[%c0_119, %c74] : memref<4x92xf32, #tpu.memory_space<vmem>>, vector<4x1xf32>
    %550 = vector.extract_strided_slice %390 {offsets = [2, 0], sizes = [1, 512], strides = [1, 1]} : vector<4x512xf32> to vector<1x512xf32>
    %551 = vector.broadcast %549 : vector<4x1xf32> to vector<4x512xf32>
    %552 = vector.broadcast %550 : vector<1x512xf32> to vector<4x512xf32>
    %553 = arith.mulf %551, %552 : vector<4x512xf32>
    %554 = arith.addf %530, %553 : vector<4x512xf32>
    %c0_120 = arith.constant 0 : index
    %c75 = arith.constant 75 : index
    %555 = vector.load %arg2[%c0_120, %c75] : memref<4x92xf32, #tpu.memory_space<vmem>>, vector<4x1xf32>
    %556 = vector.extract_strided_slice %390 {offsets = [3, 0], sizes = [1, 512], strides = [1, 1]} : vector<4x512xf32> to vector<1x512xf32>
    %557 = vector.broadcast %555 : vector<4x1xf32> to vector<4x512xf32>
    %558 = vector.broadcast %556 : vector<1x512xf32> to vector<4x512xf32>
    %559 = arith.mulf %557, %558 : vector<4x512xf32>
    %560 = arith.addf %536, %559 : vector<4x512xf32>
    %c0_121 = arith.constant 0 : index
    %c76 = arith.constant 76 : index
    %561 = vector.load %arg2[%c0_121, %c76] : memref<4x92xf32, #tpu.memory_space<vmem>>, vector<4x1xf32>
    %562 = vector.extract_strided_slice %393 {offsets = [0, 0], sizes = [1, 512], strides = [1, 1]} : vector<4x512xf32> to vector<1x512xf32>
    %563 = vector.broadcast %561 : vector<4x1xf32> to vector<4x512xf32>
    %564 = vector.broadcast %562 : vector<1x512xf32> to vector<4x512xf32>
    %565 = arith.mulf %563, %564 : vector<4x512xf32>
    %566 = arith.addf %542, %565 : vector<4x512xf32>
    %c0_122 = arith.constant 0 : index
    %c77 = arith.constant 77 : index
    %567 = vector.load %arg2[%c0_122, %c77] : memref<4x92xf32, #tpu.memory_space<vmem>>, vector<4x1xf32>
    %568 = vector.extract_strided_slice %393 {offsets = [1, 0], sizes = [1, 512], strides = [1, 1]} : vector<4x512xf32> to vector<1x512xf32>
    %569 = vector.broadcast %567 : vector<4x1xf32> to vector<4x512xf32>
    %570 = vector.broadcast %568 : vector<1x512xf32> to vector<4x512xf32>
    %571 = arith.mulf %569, %570 : vector<4x512xf32>
    %572 = arith.addf %548, %571 : vector<4x512xf32>
    %c0_123 = arith.constant 0 : index
    %c78 = arith.constant 78 : index
    %573 = vector.load %arg2[%c0_123, %c78] : memref<4x92xf32, #tpu.memory_space<vmem>>, vector<4x1xf32>
    %574 = vector.extract_strided_slice %393 {offsets = [2, 0], sizes = [1, 512], strides = [1, 1]} : vector<4x512xf32> to vector<1x512xf32>
    %575 = vector.broadcast %573 : vector<4x1xf32> to vector<4x512xf32>
    %576 = vector.broadcast %574 : vector<1x512xf32> to vector<4x512xf32>
    %577 = arith.mulf %575, %576 : vector<4x512xf32>
    %578 = arith.addf %554, %577 : vector<4x512xf32>
    %c0_124 = arith.constant 0 : index
    %c79 = arith.constant 79 : index
    %579 = vector.load %arg2[%c0_124, %c79] : memref<4x92xf32, #tpu.memory_space<vmem>>, vector<4x1xf32>
    %580 = vector.extract_strided_slice %393 {offsets = [3, 0], sizes = [1, 512], strides = [1, 1]} : vector<4x512xf32> to vector<1x512xf32>
    %581 = vector.broadcast %579 : vector<4x1xf32> to vector<4x512xf32>
    %582 = vector.broadcast %580 : vector<1x512xf32> to vector<4x512xf32>
    %583 = arith.mulf %581, %582 : vector<4x512xf32>
    %584 = arith.addf %560, %583 : vector<4x512xf32>
    %c0_125 = arith.constant 0 : index
    %c80 = arith.constant 80 : index
    %585 = vector.load %arg2[%c0_125, %c80] : memref<4x92xf32, #tpu.memory_space<vmem>>, vector<4x1xf32>
    %586 = vector.extract_strided_slice %396 {offsets = [0, 0], sizes = [1, 512], strides = [1, 1]} : vector<4x512xf32> to vector<1x512xf32>
    %587 = vector.broadcast %585 : vector<4x1xf32> to vector<4x512xf32>
    %588 = vector.broadcast %586 : vector<1x512xf32> to vector<4x512xf32>
    %589 = arith.mulf %587, %588 : vector<4x512xf32>
    %590 = arith.addf %566, %589 : vector<4x512xf32>
    %c0_126 = arith.constant 0 : index
    %c81 = arith.constant 81 : index
    %591 = vector.load %arg2[%c0_126, %c81] : memref<4x92xf32, #tpu.memory_space<vmem>>, vector<4x1xf32>
    %592 = vector.extract_strided_slice %396 {offsets = [1, 0], sizes = [1, 512], strides = [1, 1]} : vector<4x512xf32> to vector<1x512xf32>
    %593 = vector.broadcast %591 : vector<4x1xf32> to vector<4x512xf32>
    %594 = vector.broadcast %592 : vector<1x512xf32> to vector<4x512xf32>
    %595 = arith.mulf %593, %594 : vector<4x512xf32>
    %596 = arith.addf %572, %595 : vector<4x512xf32>
    %c0_127 = arith.constant 0 : index
    %c82 = arith.constant 82 : index
    %597 = vector.load %arg2[%c0_127, %c82] : memref<4x92xf32, #tpu.memory_space<vmem>>, vector<4x1xf32>
    %598 = vector.extract_strided_slice %396 {offsets = [2, 0], sizes = [1, 512], strides = [1, 1]} : vector<4x512xf32> to vector<1x512xf32>
    %599 = vector.broadcast %597 : vector<4x1xf32> to vector<4x512xf32>
    %600 = vector.broadcast %598 : vector<1x512xf32> to vector<4x512xf32>
    %601 = arith.mulf %599, %600 : vector<4x512xf32>
    %602 = arith.addf %578, %601 : vector<4x512xf32>
    %c0_128 = arith.constant 0 : index
    %c83 = arith.constant 83 : index
    %603 = vector.load %arg2[%c0_128, %c83] : memref<4x92xf32, #tpu.memory_space<vmem>>, vector<4x1xf32>
    %604 = vector.extract_strided_slice %396 {offsets = [3, 0], sizes = [1, 512], strides = [1, 1]} : vector<4x512xf32> to vector<1x512xf32>
    %605 = vector.broadcast %603 : vector<4x1xf32> to vector<4x512xf32>
    %606 = vector.broadcast %604 : vector<1x512xf32> to vector<4x512xf32>
    %607 = arith.mulf %605, %606 : vector<4x512xf32>
    %608 = arith.addf %584, %607 : vector<4x512xf32>
    %609 = arith.addf %590, %596 : vector<4x512xf32>
    %610 = arith.addf %609, %602 : vector<4x512xf32>
    %611 = arith.addf %610, %608 : vector<4x512xf32>
    %c0_129 = arith.constant 0 : index
    %c4_130 = arith.constant 4 : index
    %612 = vector.load %arg3[%c0_129, %c4_130] : memref<4x6xf32, #tpu.memory_space<vmem>>, vector<4x1xf32>
    %613 = vector.broadcast %612 : vector<4x1xf32> to vector<4x512xf32>
    %614 = arith.addf %611, %613 : vector<4x512xf32>
    %cst_131 = arith.constant 2.000000e+01 : f32
    %615 = vector.broadcast %cst_131 : f32 to vector<4x512xf32>
    %616 = arith.minimumf %614, %615 : vector<4x512xf32>
    %617 = math.exp %616 : vector<4x512xf32>
    %cst_132 = arith.constant 2.000000e+00 : f32
    %618 = vector.broadcast %cst_132 : f32 to vector<4x512xf32>
    %619 = arith.addf %617, %618 : vector<4x512xf32>
    %620 = arith.mulf %617, %619 : vector<4x512xf32>
    %621 = arith.mulf %614, %620 : vector<4x512xf32>
    %cst_133 = arith.constant 2.000000e+00 : f32
    %622 = vector.broadcast %cst_133 : f32 to vector<4x512xf32>
    %623 = arith.addf %620, %622 : vector<4x512xf32>
    %624 = tpu.reciprocal %623 : vector<4x512xf32> -> vector<4x512xf32>
    %625 = arith.mulf %621, %624 : vector<4x512xf32>
    %c0_134 = arith.constant 0 : index
    %c84 = arith.constant 84 : index
    %626 = vector.load %arg2[%c0_134, %c84] : memref<4x92xf32, #tpu.memory_space<vmem>>, vector<4x1xf32>
    %627 = vector.extract_strided_slice %625 {offsets = [0, 0], sizes = [1, 512], strides = [1, 1]} : vector<4x512xf32> to vector<1x512xf32>
    %628 = vector.broadcast %626 : vector<4x1xf32> to vector<4x512xf32>
    %629 = vector.broadcast %627 : vector<1x512xf32> to vector<4x512xf32>
    %630 = arith.mulf %628, %629 : vector<4x512xf32>
    %c0_135 = arith.constant 0 : index
    %c85 = arith.constant 85 : index
    %631 = vector.load %arg2[%c0_135, %c85] : memref<4x92xf32, #tpu.memory_space<vmem>>, vector<4x1xf32>
    %632 = vector.extract_strided_slice %625 {offsets = [1, 0], sizes = [1, 512], strides = [1, 1]} : vector<4x512xf32> to vector<1x512xf32>
    %633 = vector.broadcast %631 : vector<4x1xf32> to vector<4x512xf32>
    %634 = vector.broadcast %632 : vector<1x512xf32> to vector<4x512xf32>
    %635 = arith.mulf %633, %634 : vector<4x512xf32>
    %c0_136 = arith.constant 0 : index
    %c86 = arith.constant 86 : index
    %636 = vector.load %arg2[%c0_136, %c86] : memref<4x92xf32, #tpu.memory_space<vmem>>, vector<4x1xf32>
    %637 = vector.extract_strided_slice %625 {offsets = [2, 0], sizes = [1, 512], strides = [1, 1]} : vector<4x512xf32> to vector<1x512xf32>
    %638 = vector.broadcast %636 : vector<4x1xf32> to vector<4x512xf32>
    %639 = vector.broadcast %637 : vector<1x512xf32> to vector<4x512xf32>
    %640 = arith.mulf %638, %639 : vector<4x512xf32>
    %c0_137 = arith.constant 0 : index
    %c87 = arith.constant 87 : index
    %641 = vector.load %arg2[%c0_137, %c87] : memref<4x92xf32, #tpu.memory_space<vmem>>, vector<4x1xf32>
    %642 = vector.extract_strided_slice %625 {offsets = [3, 0], sizes = [1, 512], strides = [1, 1]} : vector<4x512xf32> to vector<1x512xf32>
    %643 = vector.broadcast %641 : vector<4x1xf32> to vector<4x512xf32>
    %644 = vector.broadcast %642 : vector<1x512xf32> to vector<4x512xf32>
    %645 = arith.mulf %643, %644 : vector<4x512xf32>
    %c0_138 = arith.constant 0 : index
    %c88 = arith.constant 88 : index
    %646 = vector.load %arg2[%c0_138, %c88] : memref<4x92xf32, #tpu.memory_space<vmem>>, vector<4x1xf32>
    %647 = vector.extract_strided_slice %45 {offsets = [0, 0], sizes = [1, 512], strides = [1, 1]} : vector<4x512xf32> to vector<1x512xf32>
    %648 = vector.broadcast %646 : vector<4x1xf32> to vector<4x512xf32>
    %649 = vector.broadcast %647 : vector<1x512xf32> to vector<4x512xf32>
    %650 = arith.mulf %648, %649 : vector<4x512xf32>
    %651 = arith.addf %630, %650 : vector<4x512xf32>
    %c0_139 = arith.constant 0 : index
    %c89 = arith.constant 89 : index
    %652 = vector.load %arg2[%c0_139, %c89] : memref<4x92xf32, #tpu.memory_space<vmem>>, vector<4x1xf32>
    %653 = vector.extract_strided_slice %45 {offsets = [1, 0], sizes = [1, 512], strides = [1, 1]} : vector<4x512xf32> to vector<1x512xf32>
    %654 = vector.broadcast %652 : vector<4x1xf32> to vector<4x512xf32>
    %655 = vector.broadcast %653 : vector<1x512xf32> to vector<4x512xf32>
    %656 = arith.mulf %654, %655 : vector<4x512xf32>
    %657 = arith.addf %635, %656 : vector<4x512xf32>
    %c0_140 = arith.constant 0 : index
    %c90 = arith.constant 90 : index
    %658 = vector.load %arg2[%c0_140, %c90] : memref<4x92xf32, #tpu.memory_space<vmem>>, vector<4x1xf32>
    %659 = vector.extract_strided_slice %45 {offsets = [2, 0], sizes = [1, 512], strides = [1, 1]} : vector<4x512xf32> to vector<1x512xf32>
    %660 = vector.broadcast %658 : vector<4x1xf32> to vector<4x512xf32>
    %661 = vector.broadcast %659 : vector<1x512xf32> to vector<4x512xf32>
    %662 = arith.mulf %660, %661 : vector<4x512xf32>
    %663 = arith.addf %640, %662 : vector<4x512xf32>
    %c0_141 = arith.constant 0 : index
    %c91 = arith.constant 91 : index
    %664 = vector.load %arg2[%c0_141, %c91] : memref<4x92xf32, #tpu.memory_space<vmem>>, vector<4x1xf32>
    %665 = vector.extract_strided_slice %45 {offsets = [3, 0], sizes = [1, 512], strides = [1, 1]} : vector<4x512xf32> to vector<1x512xf32>
    %666 = vector.broadcast %664 : vector<4x1xf32> to vector<4x512xf32>
    %667 = vector.broadcast %665 : vector<1x512xf32> to vector<4x512xf32>
    %668 = arith.mulf %666, %667 : vector<4x512xf32>
    %669 = arith.addf %645, %668 : vector<4x512xf32>
    %670 = arith.addf %651, %657 : vector<4x512xf32>
    %671 = arith.addf %670, %663 : vector<4x512xf32>
    %672 = arith.addf %671, %669 : vector<4x512xf32>
    %c0_142 = arith.constant 0 : index
    %c5_143 = arith.constant 5 : index
    %673 = vector.load %arg3[%c0_142, %c5_143] : memref<4x6xf32, #tpu.memory_space<vmem>>, vector<4x1xf32>
    %674 = vector.broadcast %673 : vector<4x1xf32> to vector<4x512xf32>
    %675 = arith.addf %672, %674 : vector<4x512xf32>
    %cst_144 = arith.constant 2.000000e+01 : f32
    %676 = vector.broadcast %cst_144 : f32 to vector<4x512xf32>
    %677 = arith.minimumf %675, %676 : vector<4x512xf32>
    %678 = math.exp %677 : vector<4x512xf32>
    %cst_145 = arith.constant 2.000000e+00 : f32
    %679 = vector.broadcast %cst_145 : f32 to vector<4x512xf32>
    %680 = arith.addf %678, %679 : vector<4x512xf32>
    %681 = arith.mulf %678, %680 : vector<4x512xf32>
    %682 = arith.mulf %675, %681 : vector<4x512xf32>
    %cst_146 = arith.constant 2.000000e+00 : f32
    %683 = vector.broadcast %cst_146 : f32 to vector<4x512xf32>
    %684 = arith.addf %681, %683 : vector<4x512xf32>
    %685 = tpu.reciprocal %684 : vector<4x512xf32> -> vector<4x512xf32>
    %686 = arith.mulf %682, %685 : vector<4x512xf32>
    %c0_147 = arith.constant 0 : index
    %c0_148 = arith.constant 0 : index
    %687 = vector.load %arg5[%c0_147, %c0_148] : memref<4x512xf32, #tpu.memory_space<vmem>>, vector<4x512xf32>
    tpu.vector_store %arg5[%c0_147, %c0_148], %686 {strides = array<i32>} : memref<4x512xf32, #tpu.memory_space<vmem>>, vector<4x512xf32>,
    return
  }
  func.func @transform_0(%arg0: i32) -> (i32, i32) {
    %c0_i32 = arith.constant 0 : i32
    %c0_i32_0 = arith.constant 0 : i32
    %c0_i32_1 = arith.constant 0 : i32
    return %c0_i32, %c0_i32_0 : i32, i32
  }
  func.func @transform_1(%arg0: i32) -> (i32, i32) {
    %c0_i32 = arith.constant 0 : i32
    %c0_i32_0 = arith.constant 0 : i32
    %c0_i32_1 = arith.constant 0 : i32
    return %c0_i32, %c0_i32_0 : i32, i32
  }
  func.func @transform_2(%arg0: i32) -> (i32, i32) {
    %c0_i32 = arith.constant 0 : i32
    %c0_i32_0 = arith.constant 0 : i32
    %c0_i32_1 = arith.constant 0 : i32
    return %c0_i32, %c0_i32_0 : i32, i32
  }
  func.func @transform_3(%arg0: i32) -> (i32, i32) {
    %c0_i32 = arith.constant 0 : i32
    %c0_i32_0 = arith.constant 0 : i32
    %c0_i32_1 = arith.constant 0 : i32
    return %c0_i32, %c0_i32_0 : i32, i32
  }
  func.func @transform_4(%arg0: i32) -> (i32, i32) {
    %c0_i32 = arith.constant 0 : i32
    %c0_i32_0 = arith.constant 0 : i32
    %c0_i32_1 = arith.constant 0 : i32
    return %c0_i32, %c0_i32_0 : i32, i32
  }
}

</mosaic_0001>

<bundles_post_ra>
// kernel: rcsp_forward.1
= control target key start
LH: loop header
LB: loop body
LE: loop exit
PB: predicated region body
PF: predicated region fallthrough
CT: control target
= control target key end

     0   :  { %v3625_v0 = vmov 2   ;;  %v3626_v1 = vmov 0   ;;  %v3627_v3 = vmov 3   ;;  %v3628_v4 = vmov 1   ;;  %s3667_s23 = smov 16   ;;  %s3668_s24 = smov 15   ;;  %s5950_s1 = inlined_call_operand.vmem [shape: f32[4,92], index: 1, kind: input, shape index: {}]   ;;  %s5951_s2 = inlined_call_operand.vmem [shape: f32[4,6], index: 2, kind: input, shape index: {}]   ;;  %s5952_s0 = inlined_call_operand.vmem [shape: f32[4,512], index: 0, kind: input, shape index: {}]   ;;  %s5953_s3 = inlined_call_operand.vmem [shape: f32[9,512], index: 3, kind: input, shape index: {}]   ;;  %s5954_s4 = inlined_call_operand.vmem [shape: f32[4,512], index: 4, kind: output, shape index: {}]  }
   0x1   :  { %3429 = vset.pattern.permute.xlu1 %v3625_v0  ;;  %3427 = vset.pattern.permute.xlu0 %v3626_v1  ;;  %v3754_v2 = vld [vmem:[%s5950_s1] sm:$0xf]  ;;  %v5957_v6 = vmov 4   ;;  %v5955_v7 = vmov 5   ;;  %v3631_v8 = vmov 7   ;;  %v3632_v9 = vmov 6  }
   0x2   :  { %127 = vperm.xlu1 %3429, %v3754_v2   ;;  %37 = vperm.xlu0 %3427, %v3754_v2   ;;  %v3764_v5 = vld [vmem:[%s5951_s2] sm:$0xf]  ;;  %v3633_v10 = vmov 9   ;;  %v3634_v11 = vmov 12   ;;  %v3635_v12 = vmov 8   ;;  %v3636_v13 = vmov 15  }
   0x3   :  { %v3637_v14 = vmov 10   ;;  %v3638_v15 = vmov 18   ;;  %v3639_v16 = vmov 11   ;;  %v3640_v17 = vmov 21   ;;  %v17_v43 = vld [vmem:[%s5952_s0] sm:$0xff]  ;;  %v18_v48 = vld [vmem:[%s5952_s0 + $0x8] sm:$0xff] }
   0x4   :  { %v3641_v18 = vmov 13   ;;  %v3642_v19 = vmov 24   ;;  %v3643_v20 = vmov 14   ;;  %v3644_v21 = vmov 27   ;;  %s3666_s0 = smov 17   ;;  %s3669_s25 = smov 1  }
   0x5   :  { %v3645_v22 = vmov 16   ;;  %v3646_v23 = vmov 30   ;;  %v3647_v24 = vmov 17   ;;  %v3648_v25 = vmov 31   ;;  %s3670_s26 = smov 127   ;;  %s3671_s27 = smov 113  }
   0x6   :  { %3430 = vset.pattern.permute.xlu1 %v3627_v3  ;;  %3428 = vset.pattern.permute.xlu0 %v3628_v4  ;;  %v3649_v26 = vmov 19   ;;  %v3650_v27 = vmov 37   ;;  %v3651_v28 = vmov 20   ;;  %v3652_v29 = vmov 22   ;;  %s3672_s28 = smov 112   ;;  %s3673_s29 = smov 111  }
   0x7   :  { %171 = vperm.xlu1 %3430, %v3754_v2   ;;  %83 = vperm.xlu0 %3428, %v3754_v2   ;;  %v3653_v30 = vmov 23   ;;  %v3654_v31 = vmov 25   ;;  %v3655_v32 = vmov 26   ;;  %v3656_v33 = vmov 28  }
   0x8   :  { %v3657_v34 = vmov 29   ;;  %v3658_v35 = vmov 32   ;;  %v3659_v36 = vmov 33   ;;  %v42_v37 = vlaneseq }
   0x9   :  { %v3660_v38 = vmov 34   ;;  %v3661_v42 = vmov 36   ;;  %v3662_v54 = vmov 35   ;;  %v3663_v55 = vmov 40  }
   0xa   :  { %v43_v39 = vshrl.u32 %v42_v37, 7 }
   0xb   :  { %3431 = vset.pattern.permute.xlu1 %v3626_v1  ;;  %3432 = vset.pattern.permute.xlu0 %v5957_v6 }
   0xc   :  { %229 = vperm.xlu1 %3431, %v3764_v5   ;;  %273 = vperm.xlu0 %3432, %v3754_v2   ;;  %v3803_v40 = vsub.s32 0, %v43_v39  ;;  %v3805_v41 = vsub.s32 2, %v43_v39  ;;  %v48_v44 = vsub.s32 4, %v43_v39  ;;  %v3811_v45 = vsub.s32 1, %v43_v39 }
   0xd   :  { %v92_v46 = vsub.s32 5, %v43_v39  ;;  %v136_v47 = vsub.s32 6, %v43_v39  ;;  %v3819_v56 = vsub.s32 3, %v43_v39  ;;  %v180_v57 = vsub.s32 7, %v43_v39 }
   0xe   :  { %6050 = vst [vmem:[#allocation2_spill] sm:$0xff] %v3803_v40  ;;  %6051 = vst [vmem:[#allocation3_spill] sm:$0xff] %v3805_v41  ;;  %v133_v49 = vrot.slane %v17_v43, %v3805_v41  ;;  %v45_v50 = vrot.slane %v17_v43, %v3803_v40  ;;  %v49_v51 = vrot.slane %v17_v43, %v48_v44 }
   0xf   :  { %6052 = vst [vmem:[#allocation4_spill] sm:$0xff] %v3811_v45  ;;  %v53_v52 = vrot.slane %v18_v48, %v3803_v40  ;;  %v57_v53 = vrot.slane %v18_v48, %v48_v44  ;;  %6053 = vst [vmem:[#allocation5_spill] sm:$0xff] %v3819_v56  ;;  %v89_v58 = vrot.slane %v17_v43, %v3811_v45 }
  0x10   :  { %3433 = vset.pattern.permute.xlu1 %v5955_v7  ;;  %3435 = vset.pattern.permute.xlu0 %v3631_v8  ;;  %v93_v59 = vrot.slane %v17_v43, %v92_v46  ;;  %v97_v60 = vrot.slane %v18_v48, %v3811_v45  ;;  %v101_v61 = vrot.slane %v18_v48, %v92_v46 }
  0x11   :  { %281 = vperm.xlu1 %3433, %v3754_v2   ;;  %297 = vperm.xlu0 %3435, %v3754_v2   ;;  %v137_v63 = vrot.slane %v17_v43, %v136_v47  ;;  %v141_v1 = vrot.slane %v18_v48, %v3805_v41  ;;  %v3826_v8 = vrot.slane %v133_v49, %v3805_v41 }
  0x15   :  { %3434 = vset.pattern.permute.xlu1 %v3632_v9  ;;  %3438 = vset.pattern.permute.xlu0 %v3633_v10  ;;  %v65_v10 = vrot.slane %v45_v50, %v3803_v40 }
  0x16   :  { %289 = vperm.xlu1 %3434, %v3754_v2   ;;  %691 = vperm.xlu0 %3438, %v3754_v2  }
  0x1a   :  { %3436 = vset.pattern.permute.xlu1 %v3628_v4  ;;  %3441 = vset.pattern.permute.xlu0 %v3634_v11  ;;  %v145_v4 = vrot.slane %v18_v48, %v136_v47  ;;  %v69_v11 = vrot.slane %v49_v51, %v3803_v40 }
  0x1b   :  { %317 = vperm.xlu1 %3436, %v3764_v5   ;;  %763 = vperm.xlu0 %3441, %v3754_v2  }
  0x1f   :  { %3437 = vset.pattern.permute.xlu1 %v3635_v12  ;;  %3444 = vset.pattern.permute.xlu0 %v3636_v13  ;;  %v73_v12 = vrot.slane %v53_v52, %v3803_v40  ;;  %v77_v13 = vrot.slane %v57_v53, %v3803_v40 }
  0x20   :  { %667 = vperm.xlu1 %3437, %v3754_v2   ;;  %847 = vperm.xlu0 %3444, %v3754_v2  }
  0x24   :  { %3439 = vset.pattern.permute.xlu1 %v3637_v14  ;;  %3447 = vset.pattern.permute.xlu0 %v3638_v15  ;;  %v177_v14 = vrot.slane %v17_v43, %v3819_v56  ;;  %v181_v15 = vrot.slane %v17_v43, %v180_v57  ;;  %v3665_v43 = vmov 41  }
  0x25   :  { %715 = vperm.xlu1 %3439, %v3754_v2   ;;  %931 = vperm.xlu0 %3447, %v3754_v2  }
  0x29   :  { %3440 = vset.pattern.permute.xlu1 %v3639_v16  ;;  %3450 = vset.pattern.permute.xlu0 %v3640_v17  ;;  %v185_v16 = vrot.slane %v18_v48, %v3819_v56  ;;  %v189_v17 = vrot.slane %v18_v48, %v180_v57 }
  0x2a   :  { %739 = vperm.xlu1 %3440, %v3754_v2   ;;  %1015 = vperm.xlu0 %3450, %v3754_v2  }
  0x2e   :  { %3442 = vset.pattern.permute.xlu1 %v3641_v18  ;;  %3453 = vset.pattern.permute.xlu0 %v3642_v19  ;;  %v3664_v18 = vmov 38   ;;  %v109_v19 = vrot.slane %v89_v58, %v3811_v45 }
  0x2f   :  { %791 = vperm.xlu1 %3442, %v3754_v2   ;;  %1099 = vperm.xlu0 %3453, %v3754_v2  }
  0x33   :  { %3443 = vset.pattern.permute.xlu1 %v3643_v20  ;;  %3456 = vset.pattern.permute.xlu0 %v3644_v21  ;;  %v113_v20 = vrot.slane %v93_v59, %v3811_v45  ;;  %v117_v21 = vrot.slane %v97_v60, %v3811_v45 }
  0x34   :  { %819 = vperm.xlu1 %3443, %v3754_v2   ;;  %1183 = vperm.xlu0 %3456, %v3754_v2  }
  0x38   :  { %3445 = vset.pattern.permute.xlu1 %v3645_v22  ;;  %3459 = vset.pattern.permute.xlu0 %v3646_v23  ;;  %v121_v22 = vrot.slane %v101_v61, %v3811_v45  ;;  %v157_v23 = vrot.slane %v137_v63, %v3805_v41 }
  0x39   :  { %875 = vperm.xlu1 %3445, %v3754_v2   ;;  %1267 = vperm.xlu0 %3459, %v3754_v2  }
  0x3d   :  { %3446 = vset.pattern.permute.xlu1 %v3647_v24  ;;  %3462 = vset.pattern.permute.xlu0 %v3648_v25  ;;  %v161_v24 = vrot.slane %v141_v1, %v3805_v41  ;;  %v165_v25 = vrot.slane %v145_v4, %v3805_v41 }
  0x3e   :  { %903 = vperm.xlu1 %3446, %v3754_v2   ;;  %1295 = vperm.xlu0 %3462, %v3754_v2  }
  0x42   :  { %3448 = vset.pattern.permute.xlu1 %v3649_v26  ;;  %3465 = vset.pattern.permute.xlu0 %v3650_v27 }
  0x43   :  { %959 = vperm.xlu1 %3448, %v3754_v2   ;;  %1463 = vperm.xlu0 %3465, %v3754_v2  }
  0x47   :  { %3449 = vset.pattern.permute.xlu1 %v3651_v28  ;;  %3468 = vset.pattern.permute.xlu0 %v3663_v55 }
  0x48   :  { %987 = vperm.xlu1 %3449, %v3754_v2  }
  0x4c   :  { %3451 = vset.pattern.permute.xlu1 %v3652_v29 }
  0x4d   :  { %1043 = vperm.xlu1 %3451, %v3754_v2  }
  0x51   :  { %3452 = vset.pattern.permute.xlu1 %v3653_v30 }
  0x52   :  { %1071 = vperm.xlu1 %3452, %v3754_v2  }
  0x56   :  { %3454 = vset.pattern.permute.xlu1 %v3654_v31 }
  0x57   :  { %1127 = vperm.xlu1 %3454, %v3754_v2  }
  0x5b   :  { %3455 = vset.pattern.permute.xlu1 %v3655_v32  ;;  %v197_v32 = vrot.slane %v177_v14, %v3819_v56 }
  0x5c   :  { %1155 = vperm.xlu1 %3455, %v3754_v2  }
  0x60   :  { %3457 = vset.pattern.permute.xlu1 %v3656_v33  ;;  %v201_v33 = vrot.slane %v181_v15, %v3819_v56 }
  0x61   :  { %1211 = vperm.xlu1 %3457, %v3754_v2  }
  0x65   :  { %3458 = vset.pattern.permute.xlu1 %v3657_v34  ;;  %v205_v34 = vrot.slane %v185_v16, %v3819_v56 }
  0x66   :  { %1239 = vperm.xlu1 %3458, %v3754_v2  }
  0x6a   :  { %3460 = vset.pattern.permute.xlu1 %v3658_v35  ;;  %v209_v35 = vrot.slane %v189_v17, %v3819_v56 }
  0x6b   :  { %1323 = vperm.xlu1 %3460, %v3754_v2  }
  0x6f   :  { %3461 = vset.pattern.permute.xlu1 %v3659_v36 }
  0x70   :  { %1351 = vperm.xlu1 %3461, %v3754_v2  }
  0x74   :  { %3463 = vset.pattern.permute.xlu1 %v3660_v38 }
  0x75   :  { %1379 = vperm.xlu1 %3463, %v3754_v2  }
  0x79   :  { %3464 = vset.pattern.permute.xlu1 %v3661_v42 }
  0x7a   :  { %1435 = vperm.xlu1 %3464, %v3754_v2  }
  0x7e   :  { %3466 = vset.pattern.permute.xlu1 %v3662_v54 }
  0x7f   :  { %1407 = vperm.xlu1 %3466, %v3754_v2  }
  0x81   :  { %v128_v62 = vpop.permute.xlu1 %127  ;;  %v38_v9 = vpop.permute.xlu0 %37 }
  0x82   :  { %v78_v26 = vmul.f32 %v65_v10, %v38_v9  ;;  %v79_v27 = vmul.f32 %v69_v11, %v38_v9  ;;  %v80_v28 = vmul.f32 %v73_v12, %v38_v9  ;;  %v81_v29 = vmul.f32 %v77_v13, %v38_v9 }
  0x83   :  { %3467 = vset.pattern.permute.xlu1 %v3664_v18  ;;  %v166_v44 = vmul.f32 %v3826_v8, %v128_v62  ;;  %v167_v46 = vmul.f32 %v157_v23, %v128_v62  ;;  %v168_v47 = vmul.f32 %v161_v24, %v128_v62  ;;  %v169_v48 = vmul.f32 %v165_v25, %v128_v62 }
  0x84   :  { %1491 = vperm.xlu1 %3467, %v3754_v2  }
  0x86   :  { %v172_v30 = vpop.permute.xlu1 %171  ;;  %v84_v31 = vpop.permute.xlu0 %83 }
  0x87   :  { %v122_v36 = vmul.f32 %v109_v19, %v84_v31  ;;  %v123_v38 = vmul.f32 %v113_v20, %v84_v31  ;;  %v124_v39 = vmul.f32 %v117_v21, %v84_v31  ;;  %v125_v42 = vmul.f32 %v121_v22, %v84_v31 }
  0x88   :  { %3469 = vset.pattern.permute.xlu1 %v3665_v43  ;;  %v210_v53 = vmul.f32 %v197_v32, %v172_v30  ;;  %v211_v54 = vmul.f32 %v201_v33, %v172_v30  ;;  %v212_v55 = vmul.f32 %v205_v34, %v172_v30  ;;  %v213_v57 = vmul.f32 %v209_v35, %v172_v30 }
  0x89   :  { %v214_v49 = vadd.f32 %v122_v36, %v78_v26  ;;  %v215_v50 = vadd.f32 %v123_v38, %v79_v27  ;;  %v216_v51 = vadd.f32 %v124_v39, %v80_v28  ;;  %v217_v52 = vadd.f32 %v125_v42, %v81_v29 }
  0x8b   :  { %v3847_v58 = vpop.permute.xlu1 %229  ;;  %v218_v59 = vadd.f32 %v214_v49, %v166_v44  ;;  %v219_v60 = vadd.f32 %v215_v50, %v167_v46  ;;  %v220_v61 = vadd.f32 %v216_v51, %v168_v47  ;;  %v221_v63 = vadd.f32 %v217_v52, %v169_v48  ;;  %v274_v1 = vpop.permute.xlu0 %273 }
  0x8c   :  { %6054 = vst [vmem:[#allocation6_spill] sm:$0xff] %v3847_v58  ;;  %v276_v16 = vmul.f32 %v274_v1, %v65_v10  ;;  %v277_v17 = vmul.f32 %v274_v1, %v69_v11  ;;  %v278_v28 = vmul.f32 %v274_v1, %v73_v12  ;;  %v279_v31 = vmul.f32 %v274_v1, %v77_v13 }
  0x8d   :  { %v3849_v4 = vadd.f32 %v218_v59, %v210_v53  ;;  %v3851_v9 = vadd.f32 %v219_v60, %v211_v54  ;;  %v3853_v62 = vadd.f32 %v220_v61, %v212_v55  ;;  %v3855_v14 = vadd.f32 %v221_v63, %v213_v57 }
  0x8f   :  { %6055 = vst [vmem:[#allocation7_spill] sm:$0xff] %v3849_v4  ;;  %6056 = vst [vmem:[#allocation8_spill] sm:$0xff] %v3851_v9 }
  0x90   :  { %6057 = vst [vmem:[#allocation9_spill] sm:$0xff] %v3853_v62  ;;  %6058 = vst [vmem:[#allocation10_spill] sm:$0xff] %v3855_v14  ;;  %v282_v15 = vpop.permute.xlu1 %281  ;;  %v298_v29 = vpop.permute.xlu0 %297 }
  0x91   :  { %v284_v18 = vmul.f32 %v282_v15, %v109_v19  ;;  %v285_v26 = vmul.f32 %v282_v15, %v113_v20  ;;  %v286_v27 = vmul.f32 %v282_v15, %v117_v21  ;;  %v287_v30 = vmul.f32 %v282_v15, %v121_v22 }
  0x92   :  { %v300_v43 = vmul.f32 %v298_v29, %v197_v32  ;;  %v301_v44 = vmul.f32 %v298_v29, %v201_v33  ;;  %v302_v49 = vmul.f32 %v298_v29, %v205_v34  ;;  %v303_v19 = vmul.f32 %v298_v29, %v209_v35 }
  0x93   :  { %v304_v36 = vadd.f32 %v284_v18, %v276_v16  ;;  %v305_v38 = vadd.f32 %v285_v26, %v277_v17  ;;  %v306_v39 = vadd.f32 %v286_v27, %v278_v28  ;;  %v307_v10 = vadd.f32 %v287_v30, %v279_v31 }
  0x95   :  { %v290_v42 = vpop.permute.xlu1 %289 }
  0x96   :  { %v292_v46 = vmul.f32 %v290_v42, %v3826_v8  ;;  %v293_v47 = vmul.f32 %v290_v42, %v157_v23  ;;  %v294_v48 = vmul.f32 %v290_v42, %v161_v24  ;;  %v295_v11 = vmul.f32 %v290_v42, %v165_v25 }
  0x98   :  { %v308_v20 = vadd.f32 %v304_v36, %v292_v46  ;;  %v309_v21 = vadd.f32 %v305_v38, %v293_v47  ;;  %v310_v12 = vadd.f32 %v306_v39, %v294_v48  ;;  %v311_v50 = vadd.f32 %v307_v10, %v295_v11 }
  0x9a   :  { %v318_v22 = vpop.permute.xlu1 %317  ;;  %v312_v13 = vadd.f32 %v308_v20, %v300_v43  ;;  %v313_v51 = vadd.f32 %v309_v21, %v301_v44  ;;  %v314_v52 = vadd.f32 %v310_v12, %v302_v49  ;;  %v315_v53 = vadd.f32 %v311_v50, %v303_v19 }
  0x9c   :  { %v320_v54 = vadd.f32 %v318_v22, %v312_v13  ;;  %v321_v32 = vadd.f32 %v318_v22, %v313_v51  ;;  %v322_v33 = vadd.f32 %v318_v22, %v314_v52  ;;  %v323_v55 = vadd.f32 %v318_v22, %v315_v53 }
  0x9e   :  { %v324_v8 = vmin.f32 %v320_v54, 20.0  ;;  %v325_v23 = vmin.f32 %v321_v32, 20.0  ;;  %v326_v24 = vmin.f32 %v322_v33, 20.0  ;;  %v327_v34 = vmin.f32 %v323_v55, 20.0 }
  0x9f   :  { %v3858_v39 = vpop.permute.xlu1 %667 }
  0xa0   :  { %v328_v57 = vmul.f32 1.442695, %v324_v8  ;;  %v330_v25 = vmul.f32 1.442695, %v325_v23  ;;  %v332_v35 = vmul.f32 1.442695, %v326_v24  ;;  %v3948_v8 = vpop.permute.xlu0 %691 }
  0xa1   :  { %v334_v59 = vmul.f32 1.442695, %v327_v34 }
  0xa2   :  { %3526 = vpow2.f32 %v328_v57  ;;  %v3674_v57 = vmov 39  }
  0xa3   :  { %3528 = vpow2.f32 %v330_v25 }
  0xa4   :  { %3530 = vpow2.f32 %v332_v35  ;;  %v3860_v43 = vpop.permute.xlu1 %715  ;;  %v3958_v24 = vpop.permute.xlu0 %763  ;;  %v3675_v35 = vmov 42  }
  0xa5   :  { %3532 = vpow2.f32 %v334_v59 }
  0xa8   :  { %v3964_v25 = vpop.permute.xlu0 %847 }
  0xa9   :  { %v3872_v12 = vpop.permute.xlu1 %739 }
  0xac   :  { %v3527_v60 = vpop.eup %3526 }
  0xad   :  { %v3529_v61 = vpop.eup %3528  ;;  %v336_v63 = vadd.f32 2.0, %v3527_v60 }
  0xae   :  { %v3531_v1 = vpop.eup %3530  ;;  %v337_v15 = vadd.f32 2.0, %v3529_v61  ;;  %v3880_v22 = vpop.permute.xlu1 %791 }
  0xaf   :  { %v3533_v16 = vpop.eup %3532  ;;  %v338_v17 = vadd.f32 2.0, %v3531_v1  ;;  %v340_v18 = vmul.f32 %v3527_v60, %v336_v63  ;;  %v3676_v60 = vmov 43   ;;  %v3971_v63 = vpop.permute.xlu0 %931 }
  0xb0   :  { %v339_v26 = vadd.f32 2.0, %v3533_v16  ;;  %v341_v27 = vmul.f32 %v3529_v61, %v337_v15  ;;  %v3677_v61 = vmov 44   ;;  %v3678_v15 = vmov 47  }
  0xb1   :  { %v342_v28 = vmul.f32 %v3531_v1, %v338_v17  ;;  %v348_v29 = vadd.f32 2.0, %v340_v18  ;;  %v344_v42 = vmul.f32 %v340_v18, %v320_v54  ;;  %v3679_v17 = vmov 45  }
  0xb2   :  { %v343_v30 = vmul.f32 %v3533_v16, %v339_v26  ;;  %v349_v31 = vadd.f32 2.0, %v341_v27  ;;  %v345_v46 = vmul.f32 %v341_v27, %v321_v32  ;;  %v3680_v26 = vmov 49  }
  0xb3   :  { %v350_v36 = vadd.f32 2.0, %v342_v28  ;;  %3534 = vrcp.f32 %v348_v29  ;;  %v346_v19 = vmul.f32 %v342_v28, %v322_v33  ;;  %v3890_v13 = vpop.permute.xlu1 %819  ;;  %v3979_v16 = vpop.permute.xlu0 %1015  ;;  %v3681_v27 = vmov 46  }
  0xb4   :  { %v351_v38 = vadd.f32 2.0, %v343_v30  ;;  %3536 = vrcp.f32 %v349_v31  ;;  %v347_v20 = vmul.f32 %v343_v30, %v323_v55  ;;  %6065 = vst [vmem:[#allocation17_spill] sm:$0xff] %v3979_v16  ;;  %v3682_v28 = vmov 53  }
  0xb5   :  { %3538 = vrcp.f32 %v350_v36  ;;  %v3683_v31 = vmov 57  }
  0xb6   :  { %3540 = vrcp.f32 %v351_v38 }
  0xb8   :  { %v3896_v51 = vpop.permute.xlu1 %875 }
  0xbd   :  { %v3535_v44 = vpop.eup %3534  ;;  %v3906_v52 = vpop.permute.xlu1 %903 }
  0xbe   :  { %v3537_v47 = vpop.eup %3536  ;;  %v3862_v48 = vmul.f32 %v3535_v44, %v344_v42  ;;  %v3684_v42 = vmov 48   ;;  %v3685_v44 = vmov 58  }
  0xbf   :  { %v3539_v49 = vpop.eup %3538  ;;  %v3864_v10 = vmul.f32 %v3537_v47, %v345_v46 }
  0xc0   :  { %v3541_v11 = vpop.eup %3540  ;;  %360 = vrot.lane.b32.xlu1 %v3862_v48, %s3666_s0  ;;  %v3870_v21 = vmul.f32 %v3539_v49, %v346_v19  ;;  %v1105_v46 = vrot.slane %v3862_v48, %v3803_v40  ;;  %v1189_v47 = vrot.slane %v3862_v48, %v3819_v56 }
  0xc1   :  { %362 = vrot.lane.b32.xlu0 %v3864_v10, %s3666_s0  ;;  %v3874_v50 = vmul.f32 %v3541_v11, %v347_v20  ;;  %v1109_v11 = vrot.slane %v3864_v10, %v3803_v40 }
  0xc2   :  { %v3912_v53 = vpop.permute.xlu1 %959  ;;  %v1113_v19 = vrot.slane %v3870_v21, %v3803_v40  ;;  %v1197_v20 = vrot.slane %v3870_v21, %v3819_v56 }
  0xc3   :  { %v1173_v9 = vrot.slane %v3874_v50, %v3805_v41 }
  0xc4   :  { %364 = vrot.lane.b32.xlu1 %v3870_v21, %s3666_s0 }
  0xc5   :  { %366 = vrot.lane.b32.xlu0 %v3874_v50, %s3666_s0 }
  0xc7   :  { %v3922_v54 = vpop.permute.xlu1 %987 }
  0xc8   :  { %400 = vrot.lane.b32.xlu1 %v3862_v48, %s3667_s23  ;;  %6059 = vst [vmem:[#allocation11_spill] sm:$0xff] %v3922_v54 }
  0xc9   :  { %402 = vrot.lane.b32.xlu0 %v3864_v10, %s3667_s23 }
  0xcc   :  { %404 = vrot.lane.b32.xlu1 %v3870_v21, %s3667_s23  ;;  %v3928_v32 = vpop.permute.xlu1 %1043 }
  0xcd   :  { %406 = vrot.lane.b32.xlu0 %v3874_v50, %s3667_s23  ;;  %6060 = vst [vmem:[#allocation12_spill] sm:$0xff] %v3928_v32 }
  0xd0   :  { %438 = vrot.lane.b32.xlu1 %v3862_v48, %s3668_s24 }
  0xd1   :  { %440 = vrot.lane.b32.xlu0 %v3864_v10, %s3668_s24  ;;  %v3938_v33 = vpop.permute.xlu1 %1071 }
  0xd2   :  { %6061 = vst [vmem:[#allocation13_spill] sm:$0xff] %v3938_v33 }
  0xd4   :  { %442 = vrot.lane.b32.xlu1 %v3870_v21, %s3668_s24 }
  0xd5   :  { %444 = vrot.lane.b32.xlu0 %v3874_v50, %s3668_s24 }
  0xd6   :  { %v3944_v55 = vpop.permute.xlu1 %1127 }
  0xd8   :  { %476 = vrot.lane.b32.xlu1 %v3862_v48, %s3669_s25 }
  0xd9   :  { %478 = vrot.lane.b32.xlu0 %v3864_v10, %s3669_s25 }
  0xdb   :  { %v3956_v23 = vpop.permute.xlu1 %1155 }
  0xdc   :  { %480 = vrot.lane.b32.xlu1 %v3870_v21, %s3669_s25 }
  0xdd   :  { %482 = vrot.lane.b32.xlu0 %v3874_v50, %s3669_s25 }
  0xe0   :  { %514 = vrot.lane.b32.xlu1 %v3862_v48, %s3670_s26  ;;  %v3962_v34 = vpop.permute.xlu1 %1211 }
  0xe1   :  { %516 = vrot.lane.b32.xlu0 %v3864_v10, %s3670_s26  ;;  %6062 = vst [vmem:[#allocation14_spill] sm:$0xff] %v3962_v34 }
  0xe4   :  { %518 = vrot.lane.b32.xlu1 %v3870_v21, %s3670_s26 }
  0xe5   :  { %520 = vrot.lane.b32.xlu0 %v3874_v50, %s3670_s26  ;;  %v3968_v59 = vpop.permute.xlu1 %1239 }
  0xe6   :  { %6063 = vst [vmem:[#allocation15_spill] sm:$0xff] %v3968_v59 }
  0xe8   :  { %552 = vrot.lane.b32.xlu1 %v3862_v48, %s3671_s27 }
  0xe9   :  { %554 = vrot.lane.b32.xlu0 %v3864_v10, %s3671_s27 }
  0xea   :  { %v3975_v1 = vpop.permute.xlu1 %1323 }
  0xeb   :  { %6064 = vst [vmem:[#allocation16_spill] sm:$0xff] %v3975_v1 }
  0xec   :  { %556 = vrot.lane.b32.xlu1 %v3870_v21, %s3671_s27 }
  0xed   :  { %558 = vrot.lane.b32.xlu0 %v3874_v50, %s3671_s27 }
  0xef   :  { %v3982_v18 = vpop.permute.xlu1 %1351 }
  0xf0   :  { %590 = vrot.lane.b32.xlu1 %v3862_v48, %s3672_s28  ;;  %6066 = vst [vmem:[#allocation18_spill] sm:$0xff] %v3982_v18 }
  0xf1   :  { %592 = vrot.lane.b32.xlu0 %v3864_v10, %s3672_s28 }
  0xf4   :  { %594 = vrot.lane.b32.xlu1 %v3870_v21, %s3672_s28  ;;  %v3986_v29 = vpop.permute.xlu1 %1379 }
  0xf5   :  { %596 = vrot.lane.b32.xlu0 %v3874_v50, %s3672_s28  ;;  %6067 = vst [vmem:[#allocation19_spill] sm:$0xff] %v3986_v29  ;;  %v3326_v29 = vld [vmem:[%s5953_s3 + $0x20] ss:$8 sm:$0xf] }
  0xf8   :  { %628 = vrot.lane.b32.xlu1 %v3862_v48, %s3673_s29 }
  0xf9   :  { %630 = vrot.lane.b32.xlu0 %v3864_v10, %s3673_s29  ;;  %v3992_v36 = vpop.permute.xlu1 %1435 }
  0xfa   :  { %6068 = vst [vmem:[#allocation20_spill] sm:$0xff] %v3992_v36  ;;  %v3690_v36 = vmov 54  }
  0xfc   :  { %632 = vrot.lane.b32.xlu1 %v3870_v21, %s3673_s29 }
  0xfd   :  { %634 = vrot.lane.b32.xlu0 %v3874_v50, %s3673_s29 }
  0xfe   :  { %v4008_v49 = vpop.permute.xlu1 %1407 }
  0xff   :  { %6071 = vst [vmem:[#allocation23_spill] sm:$0xff] %v4008_v49 }
 0x100   :  { %1575 = vperm.xlu1 %3469, %v3754_v2  }
 0x101   :  { %1547 = vperm.xlu0 %3468, %v3754_v2  }
 0x104   :  { %3470 = vset.pattern.permute.xlu1 %v3674_v57  ;;  %v3686_v57 = vmov 50  }
 0x105   :  { %3471 = vset.pattern.permute.xlu0 %v3675_v35  ;;  %1519 = vperm.xlu1 %3470, %v3754_v2  }
 0x106   :  { %1603 = vperm.xlu0 %3471, %v3754_v2  }
 0x109   :  { %3472 = vset.pattern.permute.xlu1 %v3676_v60  ;;  %v1117_v60 = vrot.slane %v3874_v50, %v3803_v40 }
 0x10a   :  { %1631 = vperm.xlu1 %3472, %v3754_v2   ;;  %3474 = vset.pattern.permute.xlu0 %v3677_v61  ;;  %v1201_v61 = vrot.slane %v3874_v50, %v3819_v56 }
 0x10b   :  { %1715 = vperm.xlu0 %3474, %v3754_v2  }
 0x10e   :  { %3473 = vset.pattern.permute.xlu1 %v3625_v0  ;;  %v1100_v0 = vpop.permute.xlu0 %1099 }
 0x10f   :  { %1671 = vperm.xlu1 %3473, %v3764_v5   ;;  %3477 = vset.pattern.permute.xlu0 %v3678_v15  ;;  %v4049_v7 = vmul.f32 %v1113_v19, %v1100_v0  ;;  %v4058_v62 = vmul.f32 %v1117_v60, %v1100_v0  ;;  %v3688_v19 = vmov 52   ;;  %v1169_v60 = vrot.slane %v3870_v21, %v3805_v41 }
 0x110   :  { %1787 = vperm.xlu0 %3477, %v3754_v2  }
 0x111   :  { %6080 = vst [vmem:[#allocation32_spill] sm:$0xff] %v4049_v7  ;;  %6083 = vst [vmem:[#allocation35_spill] sm:$0xff] %v4058_v62  ;;  %v3323_v62 = vld [vmem:[%s5953_s3 + $0x5] ss:$8 sm:$0xf] }
 0x112   :  { %v1184_v30 = vpop.permute.xlu0 %1183 }
 0x113   :  { %3475 = vset.pattern.permute.xlu1 %v3679_v17  ;;  %v3687_v17 = vmov 59   ;;  %v4053_v14 = vmul.f32 %v1197_v20, %v1184_v30  ;;  %v3321_v20 = vld [vmem:[%s5953_s3 + $0x2] ss:$8 sm:$0xf] }
 0x114   :  { %1739 = vperm.xlu1 %3475, %v3754_v2   ;;  %3480 = vset.pattern.permute.xlu0 %v3680_v26  ;;  %v1133_v26 = vrot.slane %v3862_v48, %v3811_v45  ;;  %v4096_v4 = vrot.slane %v3321_v20, %v3811_v45 }
 0x115   :  { %2019 = vperm.xlu0 %3480, %v3754_v2   ;;  %6082 = vst [vmem:[#allocation34_spill] sm:$0xff] %v4053_v14 }
 0x116   :  { %v3994_v38 = vpop.permute.xlu0 %1267  ;;  %6091 = vst [vmem:[#allocation43_spill] sm:$0xff] %v4096_v4  ;;  %v4111_v14 = vmul.f32 %v1133_v26, %v3944_v55 }
 0x117   :  { %6069 = vst [vmem:[#allocation21_spill] sm:$0xff] %v3994_v38 }
 0x118   :  { %3476 = vset.pattern.permute.xlu1 %v3681_v27  ;;  %6095 = vst [vmem:[#allocation47_spill] sm:$0xff] %v4111_v14 }
 0x119   :  { %1763 = vperm.xlu1 %3476, %v3754_v2   ;;  %3483 = vset.pattern.permute.xlu0 %v3682_v28 }
 0x11a   :  { %2119 = vperm.xlu0 %3483, %v3754_v2   ;;  %v4018_v35 = vpop.permute.xlu0 %1295 }
 0x11b   :  { %6072 = vst [vmem:[#allocation24_spill] sm:$0xff] %v4018_v35 }
 0x11d   :  { %3478 = vset.pattern.permute.xlu1 %v3627_v3  ;;  %v3999_v3 = vand.u32 127, %v42_v37  ;;  %v1193_v37 = vrot.slane %v3864_v10, %v3819_v56 }
 0x11e   :  { %1823 = vperm.xlu1 %3478, %v3764_v5   ;;  %3486 = vset.pattern.permute.xlu0 %v3683_v31  ;;  %v19_v5 = vld [vmem:[%s5953_s3] ss:$8 sm:$0xf] }
 0x11f   :  { %2231 = vperm.xlu0 %3486, %v3754_v2   ;;  %6070 = vst [vmem:[#allocation22_spill] sm:$0xff] %v3999_v3  ;;  %v4026_v15 = vrot.slane %v19_v5, %v3811_v45  ;;  %vm370_vm0 = vcmp.lt.s32.totalorder %v3999_v3, 17  ;;  %v4032_v27 = vrot.slane %v19_v5, %v3803_v40  ;;  %v4035_v28 = vrot.slane %v19_v5, %v3805_v41 }
 0x120   :  { %v4038_v31 = vrot.slane %v19_v5, %v3819_v56  ;;  %v4051_v6 = vmul.f32 %v1193_v37, %v1184_v30  ;;  %v3320_v5 = vld [vmem:[%s5953_s3 + $0x1] ss:$8 sm:$0xf]  ;;  %v4066_v37 = vpop.permute.xlu1 %1491  ;;  %vm408_vm1 = vcmp.lt.s32.totalorder %v3999_v3, 16  ;;  %vm446_vm2 = vcmp.lt.s32.totalorder %v3999_v3, 15 }
 0x121   :  { %6073 = vst [vmem:[#allocation25_spill] sm:$0xff] %v4026_v15  ;;  %6074 = vst [vmem:[#allocation26_spill] sm:$0xff] %v4032_v27  ;;  %v4083_v58 = vrot.slane %v3320_v5, %v3811_v45  ;;  %vm484_vm3 = vcmp.lt.s32.totalorder %v3999_v3, 1  ;;  %vm522_vm4 = vcmp.lt.s32.totalorder %v3999_v3, 127  ;;  %vm560_vm5 = vcmp.lt.s32.totalorder %v3999_v3, 113 }
 0x122   :  { %3479 = vset.pattern.permute.xlu1 %v3684_v42  ;;  %6075 = vst [vmem:[#allocation27_spill] sm:$0xff] %v4035_v28  ;;  %6076 = vst [vmem:[#allocation28_spill] sm:$0xff] %v4038_v31  ;;  %v4041_v42 = vmul.f32 %v1105_v46, %v1100_v0  ;;  %v4060_v46 = vmul.f32 %v1201_v61, %v1184_v30  ;;  %v4078_v61 = vpop.permute.xlu0 %1463  ;;  %vm598_vm6 = vcmp.lt.s32.totalorder %v3999_v3, 112  ;;  %vm636_vm7 = vcmp.lt.s32.totalorder %v3999_v3, 111 }
 0x123   :  { %1995 = vperm.xlu1 %3479, %v3754_v2   ;;  %3489 = vset.pattern.permute.xlu0 %v3685_v44  ;;  %v4043_v44 = vmul.f32 %v1189_v47, %v1184_v30  ;;  %6081 = vst [vmem:[#allocation33_spill] sm:$0xff] %v4051_v6  ;;  %v1141_v47 = vrot.slane %v3870_v21, %v3811_v45  ;;  %6085 = vst [vmem:[#allocation37_spill] sm:$0xff] %v4066_v37 }
 0x124   :  { %2259 = vperm.xlu0 %3489, %v3754_v2   ;;  %6077 = vst [vmem:[#allocation29_spill] sm:$0xff] %v4041_v42  ;;  %6084 = vst [vmem:[#allocation36_spill] sm:$0xff] %v4060_v46  ;;  %v1165_v30 = vrot.slane %v3864_v10, %v3805_v41  ;;  %v4093_v21 = vrot.slane %v3320_v5, %v3819_v56  ;;  %v4108_v46 = vrot.slane %v3321_v20, %v3819_v56 }
 0x125   :  { %6078 = vst [vmem:[#allocation30_spill] sm:$0xff] %v4043_v44  ;;  %6086 = vst [vmem:[#allocation38_spill] sm:$0xff] %v4078_v61  ;;  %v4105_v44 = vrot.slane %v3321_v20, %v3805_v41  ;;  %v4117_v6 = vmul.f32 %v1141_v47, %v3944_v55 }
 0x126   :  { %6087 = vst [vmem:[#allocation39_spill] sm:$0xff] %v4083_v58  ;;  %6090 = vst [vmem:[#allocation42_spill] sm:$0xff] %v4093_v21  ;;  %v4129_v26 = vmul.f32 %v1165_v30, %v3956_v23  ;;  %v3324_v30 = vld [vmem:[%s5953_s3 + $0x6] ss:$8 sm:$0xf] }
 0x127   :  { %3481 = vset.pattern.permute.xlu1 %v3686_v57  ;;  %v1137_v57 = vrot.slane %v3864_v10, %v3811_v45  ;;  %v4090_v10 = vrot.slane %v3320_v5, %v3805_v41  ;;  %6093 = vst [vmem:[#allocation45_spill] sm:$0xff] %v4105_v44  ;;  %6094 = vst [vmem:[#allocation46_spill] sm:$0xff] %v4108_v46 }
 0x128   :  { %2043 = vperm.xlu1 %3481, %v3754_v2   ;;  %3492 = vset.pattern.permute.xlu0 %v3687_v17  ;;  %v4047_v17 = vmul.f32 %v1109_v11, %v1100_v0  ;;  %v1145_v11 = vrot.slane %v3874_v50, %v3811_v45  ;;  %v1161_v0 = vrot.slane %v3862_v48, %v3805_v41  ;;  %v3322_v50 = vld [vmem:[%s5953_s3 + $0x3] ss:$8 sm:$0xf] }
 0x129   :  { %2287 = vperm.xlu0 %3492, %v3754_v2   ;;  %v4086_v48 = vrot.slane %v3320_v5, %v3803_v40  ;;  %6089 = vst [vmem:[#allocation41_spill] sm:$0xff] %v4090_v10  ;;  %v4114_v5 = vmul.f32 %v1137_v57, %v3944_v55  ;;  %6097 = vst [vmem:[#allocation49_spill] sm:$0xff] %v4117_v6  ;;  %v4133_v47 = vrot.slane %v3322_v50, %v3811_v45 }
 0x12a   :  { %6079 = vst [vmem:[#allocation31_spill] sm:$0xff] %v4047_v17  ;;  %v4120_v37 = vmul.f32 %v1145_v11, %v3944_v55  ;;  %6100 = vst [vmem:[#allocation52_spill] sm:$0xff] %v4129_v26  ;;  %v4136_v55 = vmul.f32 %v1169_v60, %v3956_v23  ;;  %v4142_v6 = vrot.slane %v3322_v50, %v3803_v40 }
 0x12b   :  { %6088 = vst [vmem:[#allocation40_spill] sm:$0xff] %v4086_v48  ;;  %6096 = vst [vmem:[#allocation48_spill] sm:$0xff] %v4114_v5  ;;  %v4153_v60 = vrot.slane %v3322_v50, %v3819_v56  ;;  %v3691_v5 = vmov 56   ;;  %v4173_v17 = vrot.slane %v3324_v30, %v3803_v40 }
 0x12c   :  { %3482 = vset.pattern.permute.xlu1 %v3688_v19  ;;  %v3689_v19 = vmov 65   ;;  %6098 = vst [vmem:[#allocation50_spill] sm:$0xff] %v4120_v37  ;;  %6101 = vst [vmem:[#allocation53_spill] sm:$0xff] %v4133_v47  ;;  %v3693_v37 = vmov 55  }
 0x12d   :  { %2091 = vperm.xlu1 %3482, %v3754_v2   ;;  %3495 = vset.pattern.permute.xlu0 %v3689_v19  ;;  %v4102_v19 = vrot.slane %v3321_v20, %v3803_v40  ;;  %v4126_v20 = vmul.f32 %v1161_v0, %v3956_v23  ;;  %6102 = vst [vmem:[#allocation54_spill] sm:$0xff] %v4136_v55  ;;  %6104 = vst [vmem:[#allocation56_spill] sm:$0xff] %v4142_v6 }
 0x12e   :  { %2455 = vperm.xlu0 %3495, %v3754_v2   ;;  %v4145_v0 = vrot.slane %v3322_v50, %v3805_v41  ;;  %6106 = vst [vmem:[#allocation58_spill] sm:$0xff] %v4153_v60  ;;  %v4163_v55 = vrot.slane %v3323_v62, %v3819_v56  ;;  %v4170_v50 = vrot.slane %v3323_v62, %v3805_v41  ;;  %6111 = vst [vmem:[#allocation63_spill] sm:$0xff] %v4173_v17  ;;  %v3695_v60 = vmov 61  }
 0x12f   :  { %6092 = vst [vmem:[#allocation44_spill] sm:$0xff] %v4102_v19  ;;  %6099 = vst [vmem:[#allocation51_spill] sm:$0xff] %v4126_v20  ;;  %v4166_v20 = vrot.slane %v3323_v62, %v3811_v45 }
 0x130   :  { %6105 = vst [vmem:[#allocation57_spill] sm:$0xff] %v4145_v0  ;;  %6108 = vst [vmem:[#allocation60_spill] sm:$0xff] %v4163_v55 }
 0x131   :  { %3484 = vset.pattern.permute.xlu1 %v3690_v36  ;;  %v4139_v36 = vmul.f32 %v1173_v9, %v3956_v23  ;;  %v4156_v9 = vrot.slane %v3323_v62, %v3803_v40  ;;  %v3325_v23 = vld [vmem:[%s5953_s3 + $0x7] ss:$8 sm:$0xf]  ;;  %6109 = vst [vmem:[#allocation61_spill] sm:$0xff] %v4166_v20  ;;  %6110 = vst [vmem:[#allocation62_spill] sm:$0xff] %v4170_v50 }
 0x132   :  { %2147 = vperm.xlu1 %3484, %v3754_v2   ;;  %v361_v57 = vpop.permute.xlu1 %360  ;;  %v4186_v61 = vrot.slane %v3325_v23, %v3803_v40 }
 0x133   :  { %6103 = vst [vmem:[#allocation55_spill] sm:$0xff] %v4139_v36  ;;  %v363_v11 = vpop.permute.xlu0 %362  ;;  %6107 = vst [vmem:[#allocation59_spill] sm:$0xff] %v4156_v9 }
 0x134   :  { %v373_v26 = vsel %vm370_vm0, %v361_v57, %v363_v11  ;;  %6115 = vst [vmem:[#allocation67_spill] sm:$0xff] %v4186_v61  ;;  %v4202_v61 = vrot.slane %v3325_v23, %v3811_v45 }
 0x135   :  { %v397_v36 = vmul.f32 %v4026_v15, %v373_v26  ;;  %v4177_v26 = vrot.slane %v3324_v30, %v3819_v56  ;;  %v4180_v15 = vrot.slane %v3324_v30, %v3811_v45 }
 0x136   :  { %3485 = vset.pattern.permute.xlu1 %v3691_v5  ;;  %v365_v7 = vpop.permute.xlu1 %364  ;;  %v4183_v5 = vrot.slane %v3324_v30, %v3805_v41  ;;  %v4199_v30 = vrot.slane %v3325_v23, %v3819_v56  ;;  %6117 = vst [vmem:[#allocation69_spill] sm:$0xff] %v4202_v61  ;;  %v3692_v61 = vmov 51  }
 0x137   :  { %v367_v42 = vpop.permute.xlu0 %366  ;;  %2203 = vperm.xlu1 %3485, %v3754_v2   ;;  %6112 = vst [vmem:[#allocation64_spill] sm:$0xff] %v4177_v26  ;;  %6113 = vst [vmem:[#allocation65_spill] sm:$0xff] %v4180_v15  ;;  %v372_v2 = vsel %vm370_vm0, %v363_v11, %v365_v7  ;;  %v677_v1 = vrot.slane %v397_v36, %v3803_v40  ;;  %v725_v15 = vrot.slane %v397_v36, %v3805_v41 }
 0x138   :  { %6114 = vst [vmem:[#allocation66_spill] sm:$0xff] %v4183_v5  ;;  %v374_v62 = vsel %vm370_vm0, %v367_v42, %v361_v57  ;;  %v371_v49 = vsel %vm370_vm0, %v365_v7, %v367_v42  ;;  %6116 = vst [vmem:[#allocation68_spill] sm:$0xff] %v4199_v30  ;;  %v4205_v57 = vrot.slane %v3325_v23, %v3805_v41 }
 0x139   :  { %v396_v42 = vmul.f32 %v4032_v27, %v374_v62  ;;  %v4209_v18 = vmul.f32 %v4035_v28, %v372_v2  ;;  %v4212_v7 = vmul.f32 %v4038_v31, %v371_v49  ;;  %v701_v5 = vrot.slane %v397_v36, %v3811_v45  ;;  %v4227_v28 = vld [vmem:[%s5950_s1] sm:$0xf] }
 0x13a   :  { %6118 = vst [vmem:[#allocation70_spill] sm:$0xff] %v4205_v57  ;;  %v401_v11 = vpop.permute.xlu1 %400  ;;  %v749_v30 = vrot.slane %v397_v36, %v3819_v56  ;;  %v4218_v23 = vrot.slane %v3326_v29, %v3803_v40  ;;  %6120 = vst [vmem:[#allocation72_spill] sm:$0xff] %v4227_v28  ;;  %v4235_v36 = vrot.slane %v3326_v29, %v3819_v56 }
 0x13b   :  { %v403_v26 = vpop.permute.xlu0 %402  ;;  %3487 = vset.pattern.permute.xlu1 %v3692_v61  ;;  %v673_v62 = vrot.slane %v396_v42, %v3803_v40  ;;  %v697_v2 = vrot.slane %v396_v42, %v3811_v45  ;;  %v721_v49 = vrot.slane %v396_v42, %v3805_v41  ;;  %v745_v31 = vrot.slane %v396_v42, %v3819_v56 }
 0x13c   :  { %6119 = vst [vmem:[#allocation71_spill] sm:$0xff] %v4218_v23  ;;  %2067 = vperm.xlu1 %3487, %v4227_v28   ;;  %v4231_v61 = vmul.f32 %v677_v1, %v3858_v39  ;;  %6121 = vst [vmem:[#allocation73_spill] sm:$0xff] %v4235_v36  ;;  %v4238_v27 = vrot.slane %v3326_v29, %v3811_v45  ;;  %v4241_v42 = vrot.slane %v3326_v29, %v3805_v41 }
 0x13d   :  { %v681_v23 = vrot.slane %v4209_v18, %v3803_v40  ;;  %v685_v57 = vrot.slane %v4212_v7, %v3803_v40  ;;  %v705_v1 = vrot.slane %v4209_v18, %v3811_v45  ;;  %v709_v17 = vrot.slane %v4212_v7, %v3811_v45 }
 0x13e   :  { %6122 = vst [vmem:[#allocation74_spill] sm:$0xff] %v4238_v27  ;;  %6123 = vst [vmem:[#allocation75_spill] sm:$0xff] %v4241_v42  ;;  %v405_v20 = vpop.permute.xlu1 %404  ;;  %v711_v36 = vmul.f32 %v701_v5, %v3948_v8  ;;  %v735_v27 = vmul.f32 %v725_v15, %v3860_v43  ;;  %v759_v29 = vmul.f32 %v749_v30, %v3872_v12 }
 0x13f   :  { %v4255_v42 = vmul.f32 %v673_v62, %v3858_v39  ;;  %v407_v35 = vpop.permute.xlu0 %406  ;;  %v4258_v38 = vmul.f32 %v697_v2, %v3948_v8  ;;  %v4261_v59 = vmul.f32 %v721_v49, %v3860_v43  ;;  %v4264_v34 = vmul.f32 %v745_v31, %v3872_v12 }
 0x140   :  { %v729_v5 = vrot.slane %v4209_v18, %v3805_v41  ;;  %3488 = vset.pattern.permute.xlu1 %v3693_v37  ;;  %v411_v15 = vsel %vm408_vm1, %v401_v11, %v403_v26  ;;  %v412_v30 = vsel %vm408_vm1, %v407_v35, %v401_v11  ;;  %v409_v62 = vsel %vm408_vm1, %v405_v20, %v407_v35 }
 0x141   :  { %v410_v2 = vsel %vm408_vm1, %v403_v26, %v405_v20  ;;  %2175 = vperm.xlu1 %3488, %v4227_v28   ;;  %v4278_v31 = vmul.f32 %v681_v23, %v3858_v39  ;;  %v4281_v49 = vmul.f32 %v685_v57, %v3858_v39  ;;  %v4284_v37 = vmul.f32 %v705_v1, %v3948_v8 }
 0x142   :  { %v4287_v50 = vmul.f32 %v709_v17, %v3948_v8  ;;  %v4289_v11 = vpop.permute.xlu1 %438  ;;  %v733_v35 = vrot.slane %v4212_v7, %v3805_v41  ;;  %v753_v20 = vrot.slane %v4209_v18, %v3819_v56  ;;  %v435_v26 = vmul.f32 %v4083_v58, %v411_v15 }
 0x143   :  { %v434_v23 = vmul.f32 %v4086_v48, %v412_v30  ;;  %v4297_v39 = vpop.permute.xlu0 %440  ;;  %v4300_v57 = vmul.f32 %v729_v5, %v3860_v43  ;;  %v757_v8 = vrot.slane %v4212_v7, %v3819_v56  ;;  %v436_v17 = vmul.f32 %v4090_v10, %v410_v2 }
 0x144   :  { %v437_v1 = vmul.f32 %v4093_v21, %v409_v62  ;;  %v773_v55 = vrot.slane %v435_v26, %v3803_v40  ;;  %v801_v18 = vrot.slane %v435_v26, %v3811_v45  ;;  %v829_v15 = vrot.slane %v435_v26, %v3805_v41 }
 0x145   :  { %v857_v30 = vrot.slane %v435_v26, %v3819_v56  ;;  %v3694_v48 = vmov 60   ;;  %v769_v5 = vrot.slane %v434_v23, %v3803_v40  ;;  %v797_v58 = vrot.slane %v434_v23, %v3811_v45  ;;  %v6173_v3 = vld [vmem:[#allocation75_spill] sm:$0xff] }
 0x146   :  { %3490 = vset.pattern.permute.xlu1 %v3694_v48  ;;  %v825_v7 = vrot.slane %v434_v23, %v3805_v41  ;;  %v853_v2 = vrot.slane %v434_v23, %v3819_v56  ;;  %v443_v62 = vpop.permute.xlu1 %442  ;;  %v783_v21 = vmul.f32 %v773_v55, %v3958_v24  ;;  %v811_v10 = vmul.f32 %v801_v18, %v3880_v22 }
 0x147   :  { %2315 = vperm.xlu1 %3490, %v4227_v28   ;;  %v839_v9 = vmul.f32 %v829_v15, %v3890_v13  ;;  %v867_v26 = vmul.f32 %v857_v30, %v3964_v25  ;;  %v445_v48 = vpop.permute.xlu0 %444  ;;  %v4320_v14 = vmul.f32 %v733_v35, %v3860_v43  ;;  %v4323_v33 = vmul.f32 %v753_v20, %v3872_v12 }
 0x148   :  { %v4326_v23 = vmul.f32 %v757_v8, %v3872_v12  ;;  %v449_v55 = vsel %vm446_vm2, %v4289_v11, %v4297_v39  ;;  %v782_v18 = vmul.f32 %v769_v5, %v3958_v24  ;;  %v810_v15 = vmul.f32 %v797_v58, %v3880_v22 }
 0x149   :  { %v838_v30 = vmul.f32 %v825_v7, %v3890_v13  ;;  %v866_v43 = vmul.f32 %v853_v2, %v3964_v25  ;;  %v4337_v35 = vadd.f32 %v783_v21, %v4231_v61  ;;  %v4339_v20 = vadd.f32 %v811_v10, %v711_v36 }
 0x14a   :  { %v4341_v12 = vadd.f32 %v839_v9, %v735_v27  ;;  %v4343_v8 = vadd.f32 %v867_v26, %v759_v29  ;;  %v777_v32 = vrot.slane %v436_v17, %v3803_v40  ;;  %v781_v5 = vrot.slane %v437_v1, %v3803_v40  ;;  %v4357_v61 = vpop.permute.xlu1 %476 }
 0x14b   :  { %3491 = vset.pattern.permute.xlu1 %v3695_v60  ;;  %v805_v58 = vrot.slane %v436_v17, %v3811_v45  ;;  %v809_v7 = vrot.slane %v437_v1, %v3811_v45  ;;  %v833_v10 = vrot.slane %v436_v17, %v3805_v41  ;;  %v837_v27 = vrot.slane %v437_v1, %v3805_v41  ;;  %v4355_v9 = vpop.permute.xlu0 %478 }
 0x14c   :  { %2343 = vperm.xlu1 %3491, %v4227_v28   ;;  %v861_v21 = vrot.slane %v436_v17, %v3819_v56  ;;  %v865_v60 = vrot.slane %v437_v1, %v3819_v56  ;;  %v784_v36 = vmul.f32 %v777_v32, %v3958_v24  ;;  %v785_v29 = vmul.f32 %v781_v5, %v3958_v24 }
 0x14d   :  { %v812_v2 = vmul.f32 %v805_v58, %v3880_v22  ;;  %v813_v26 = vmul.f32 %v809_v7, %v3880_v22  ;;  %v4364_v16 = vadd.f32 %v782_v18, %v4255_v42  ;;  %v4367_v54 = vadd.f32 %v810_v15, %v4258_v38 }
 0x14e   :  { %v4370_v17 = vadd.f32 %v838_v30, %v4261_v59  ;;  %v840_v1 = vmul.f32 %v833_v10, %v3890_v13  ;;  %v4374_v0 = vadd.f32 %v866_v43, %v4264_v34  ;;  %v841_v32 = vmul.f32 %v837_v27, %v3890_v13  ;;  %v4409_v30 = vpop.permute.xlu1 %480 }
 0x14f   :  { %v868_v24 = vmul.f32 %v861_v21, %v3964_v25  ;;  %v869_v22 = vmul.f32 %v865_v60, %v3964_v25  ;;  %v3696_v5 = vmov 62   ;;  %v4380_v42 = vadd.f32 %v784_v36, %v4278_v31  ;;  %v4407_v15 = vpop.permute.xlu0 %482 }
 0x150   :  { %3493 = vset.pattern.permute.xlu1 %v3696_v5  ;;  %v4383_v38 = vadd.f32 %v785_v29, %v4281_v49  ;;  %v4386_v59 = vadd.f32 %v812_v2, %v4284_v37  ;;  %v4389_v34 = vadd.f32 %v813_v26, %v4287_v50  ;;  %v473_v13 = vmul.f32 %v4096_v4, %v449_v55 }
 0x151   :  { %2371 = vperm.xlu1 %3493, %v4227_v28   ;;  %v450_v25 = vsel %vm446_vm2, %v445_v48, %v4289_v11  ;;  %v447_v31 = vsel %vm446_vm2, %v443_v62, %v445_v48  ;;  %v448_v49 = vsel %vm446_vm2, %v4297_v39, %v443_v62  ;;  %v4402_v37 = vadd.f32 %v840_v1, %v4300_v57 }
 0x152   :  { %v472_v50 = vmul.f32 %v4102_v19, %v450_v25  ;;  %v474_v18 = vmul.f32 %v4105_v44, %v448_v49  ;;  %v475_v55 = vmul.f32 %v4108_v46, %v447_v31  ;;  %v885_v11 = vrot.slane %v473_v13, %v3803_v40  ;;  %v6158_v44 = vld [vmem:[#allocation23_spill] sm:$0xff] }
 0x153   :  { %v913_v48 = vrot.slane %v473_v13, %v3811_v45  ;;  %v941_v43 = vrot.slane %v473_v13, %v3805_v41  ;;  %v969_v39 = vrot.slane %v473_v13, %v3819_v56  ;;  %v3697_v10 = vmov 64  }
 0x154   :  { %v881_v57 = vrot.slane %v472_v50, %v3803_v40  ;;  %v909_v62 = vrot.slane %v472_v50, %v3811_v45  ;;  %v937_v58 = vrot.slane %v472_v50, %v3805_v41  ;;  %v965_v7 = vrot.slane %v472_v50, %v3819_v56 }
 0x155   :  { %3494 = vset.pattern.permute.xlu1 %v3697_v10  ;;  %v895_v27 = vmul.f32 %v885_v11, %v3896_v51  ;;  %v923_v21 = vmul.f32 %v913_v48, %v3906_v52  ;;  %v951_v60 = vmul.f32 %v941_v43, %v3971_v63  ;;  %v979_v36 = vmul.f32 %v969_v39, %v3912_v53 }
 0x156   :  { %2427 = vperm.xlu1 %3494, %v4227_v28   ;;  %v845_v29 = vadd.f32 %v841_v32, %v4320_v14  ;;  %v4426_v2 = vadd.f32 %v868_v24, %v4323_v33  ;;  %v4429_v26 = vadd.f32 %v869_v22, %v4326_v23  ;;  %v487_v1 = vsel %vm484_vm3, %v4357_v61, %v4355_v9  ;;  %v4451_v24 = vpop.permute.xlu0 %516  ;;  %v4453_v22 = vpop.permute.xlu1 %514 }
 0x157   :  { %v894_v5 = vmul.f32 %v881_v57, %v3896_v51  ;;  %v922_v13 = vmul.f32 %v909_v62, %v3906_v52  ;;  %v950_v25 = vmul.f32 %v937_v58, %v3971_v63  ;;  %v978_v31 = vmul.f32 %v965_v7, %v3912_v53 }
 0x158   :  { %v4440_v14 = vadd.f32 %v895_v27, %v4337_v35  ;;  %v4443_v33 = vadd.f32 %v923_v21, %v4339_v20  ;;  %v4446_v23 = vadd.f32 %v951_v60, %v4341_v12  ;;  %v4449_v32 = vadd.f32 %v979_v36, %v4343_v8 }
 0x159   :  { %v889_v49 = vrot.slane %v474_v18, %v3803_v40  ;;  %v893_v50 = vrot.slane %v475_v55, %v3803_v40  ;;  %v917_v35 = vrot.slane %v474_v18, %v3811_v45  ;;  %v921_v11 = vrot.slane %v475_v55, %v3811_v45 }
 0x15a   :  { %v3698_v20 = vmov 63   ;;  %v945_v12 = vrot.slane %v474_v18, %v3805_v41  ;;  %v949_v48 = vrot.slane %v475_v55, %v3805_v41  ;;  %v973_v8 = vrot.slane %v474_v18, %v3819_v56 }
 0x15b   :  { %3496 = vset.pattern.permute.xlu1 %v3698_v20  ;;  %v977_v43 = vrot.slane %v475_v55, %v3819_v56  ;;  %v896_v39 = vmul.f32 %v889_v49, %v3896_v51  ;;  %v897_v57 = vmul.f32 %v893_v50, %v3896_v51  ;;  %v924_v62 = vmul.f32 %v917_v35, %v3906_v52 }
 0x15c   :  { %2399 = vperm.xlu1 %3496, %v4227_v28   ;;  %v925_v58 = vmul.f32 %v921_v11, %v3906_v52  ;;  %v4470_v7 = vadd.f32 %v894_v5, %v4364_v16  ;;  %v926_v10 = vadd.f32 %v922_v13, %v4367_v54  ;;  %v952_v18 = vmul.f32 %v945_v12, %v3971_v63  ;;  %v6125_v11 = vld [vmem:[#allocation11_spill] sm:$0xff]  ;;  %v6127_v12 = vld [vmem:[#allocation12_spill] sm:$0xff] }
 0x15d   :  { %v953_v55 = vmul.f32 %v949_v48, %v3971_v63  ;;  %v4476_v27 = vadd.f32 %v950_v25, %v4370_v17  ;;  %v4479_v21 = vadd.f32 %v978_v31, %v4374_v0  ;;  %v980_v51 = vmul.f32 %v973_v8, %v3912_v53  ;;  %v4495_v17 = vpop.permute.xlu0 %520  ;;  %v4497_v0 = vpop.permute.xlu1 %518  ;;  %v6128_v8 = vld [vmem:[#allocation58_spill] sm:$0xff] }
 0x15e   :  { %v981_v60 = vmul.f32 %v977_v43, %v3912_v53  ;;  %v4484_v52 = vadd.f32 %v896_v39, %v4380_v42  ;;  %v4487_v16 = vadd.f32 %v897_v57, %v4383_v38  ;;  %v4490_v54 = vadd.f32 %v924_v62, %v4386_v59 }
 0x15f   :  { %v4493_v63 = vadd.f32 %v925_v58, %v4389_v34  ;;  %v3699_v36 = vmov 66   ;;  %v4500_v53 = vadd.f32 %v952_v18, %v4402_v37  ;;  %v511_v42 = vmul.f32 %v4133_v47, %v487_v1  ;;  %v6124_v1 = vld [vmem:[#allocation57_spill] sm:$0xff] }
 0x160   :  { %3497 = vset.pattern.permute.xlu1 %v3699_v36  ;;  %v488_v38 = vsel %vm484_vm3, %v4407_v15, %v4357_v61  ;;  %v486_v59 = vsel %vm484_vm3, %v4355_v9, %v4409_v30  ;;  %v4512_v34 = vadd.f32 %v953_v55, %v845_v29  ;;  %v485_v37 = vsel %vm484_vm3, %v4409_v30, %v4407_v15  ;;  %v6126_v30 = vld [vmem:[#allocation17_spill] sm:$0xff] }
 0x161   :  { %2483 = vperm.xlu1 %3497, %v4227_v28   ;;  %v510_v5 = vmul.f32 %v4142_v6, %v488_v38  ;;  %v512_v13 = vmul.f32 %v6124_v1, %v486_v59  ;;  %v997_v61 = vrot.slane %v511_v42, %v3803_v40  ;;  %v1025_v25 = vrot.slane %v511_v42, %v3811_v45  ;;  %v6129_v58 = vld [vmem:[#allocation13_spill] sm:$0xff]  ;;  %v4536_v36 = vpop.permute.xlu0 %554 }
 0x162   :  { %v1053_v31 = vrot.slane %v511_v42, %v3805_v41  ;;  %v1081_v9 = vrot.slane %v511_v42, %v3819_v56  ;;  %v513_v43 = vmul.f32 %v6128_v8, %v485_v37  ;;  %v3700_v39 = vmov 69   ;;  %v4538_v42 = vpop.permute.xlu1 %552  ;;  %v6147_v8 = vld [vmem:[#allocation63_spill] sm:$0xff] }
 0x163   :  { %v993_v29 = vrot.slane %v510_v5, %v3803_v40  ;;  %v1021_v49 = vrot.slane %v510_v5, %v3811_v45  ;;  %v1049_v50 = vrot.slane %v510_v5, %v3805_v41  ;;  %v1077_v35 = vrot.slane %v510_v5, %v3819_v56 }
 0x164   :  { %v1007_v15 = vmul.f32 %v997_v61, %v6125_v11  ;;  %v1035_v20 = vmul.f32 %v1025_v25, %v6126_v30  ;;  %v1063_v48 = vmul.f32 %v1053_v31, %v6127_v12  ;;  %v984_v57 = vadd.f32 %v980_v51, %v4426_v2 }
 0x165   :  { %3499 = vset.pattern.permute.xlu1 %v3700_v39  ;;  %v985_v62 = vadd.f32 %v981_v60, %v4429_v26  ;;  %v1091_v18 = vmul.f32 %v1081_v9, %v6129_v58  ;;  %v1034_v55 = vmul.f32 %v1021_v49, %v6126_v30  ;;  %v1006_v38 = vmul.f32 %v993_v29, %v6125_v11  ;;  %v4579_v39 = vpop.permute.xlu0 %558 }
 0x166   :  { %2567 = vperm.xlu1 %3499, %v4227_v28   ;;  %v1062_v59 = vmul.f32 %v1049_v50, %v6127_v12  ;;  %v1090_v5 = vmul.f32 %v1077_v35, %v6129_v58  ;;  %v525_v2 = vsel %vm522_vm4, %v4453_v22, %v4451_v24  ;;  %v4549_v26 = vadd.f32 %v1007_v15, %v4440_v14 }
 0x167   :  { %v4552_v51 = vadd.f32 %v1035_v20, %v4443_v33  ;;  %v4555_v60 = vadd.f32 %v1063_v48, %v4446_v23  ;;  %v1038_v37 = vadd.f32 %v1034_v55, %v926_v10  ;;  %v1001_v61 = vrot.slane %v512_v13, %v3803_v40  ;;  %v6132_v55 = vld [vmem:[#allocation47_spill] sm:$0xff] }
 0x168   :  { %v1005_v25 = vrot.slane %v513_v43, %v3803_v40  ;;  %v1029_v31 = vrot.slane %v512_v13, %v3811_v45  ;;  %v1033_v9 = vrot.slane %v513_v43, %v3811_v45  ;;  %v4562_v29 = vadd.f32 %v1091_v18, %v4449_v32 }
 0x169   :  { %v1057_v14 = vrot.slane %v512_v13, %v3805_v41  ;;  %v1061_v33 = vrot.slane %v513_v43, %v3805_v41  ;;  %v1085_v49 = vrot.slane %v512_v13, %v3819_v56  ;;  %v3701_v23 = vmov 67  }
 0x16a   :  { %6130 = vst [vmem:[#allocation11_spill] sm:$0xff] %v4562_v29  ;;  %3500 = vset.pattern.permute.xlu1 %v3701_v23  ;;  %v1008_v10 = vmul.f32 %v1001_v61, %v6125_v11  ;;  %v1009_v50 = vmul.f32 %v1005_v25, %v6125_v11  ;;  %v1036_v35 = vmul.f32 %v1029_v31, %v6126_v30  ;;  %v4581_v11 = vpop.permute.xlu1 %556  ;;  %v6135_v25 = vld [vmem:[#allocation62_spill] sm:$0xff]  ;;  %v4633_v23 = vpop.permute.xlu0 %592 }
 0x16b   :  { %v1037_v15 = vmul.f32 %v1033_v9, %v6126_v30  ;;  %2511 = vperm.xlu1 %3500, %v4227_v28   ;;  %v4574_v32 = vadd.f32 %v1006_v38, %v4470_v7  ;;  %v1064_v20 = vmul.f32 %v1057_v14, %v6127_v12  ;;  %v1065_v13 = vmul.f32 %v1061_v33, %v6127_v12 }
 0x16c   :  { %v1089_v48 = vrot.slane %v513_v43, %v3819_v56  ;;  %v4584_v18 = vadd.f32 %v1062_v59, %v4476_v27  ;;  %v4587_v30 = vadd.f32 %v1090_v5, %v4479_v21  ;;  %v4590_v61 = vadd.f32 %v6132_v55, %v1038_v37  ;;  %v6133_v21 = vld [vmem:[#allocation59_spill] sm:$0xff] }
 0x16d   :  { %v1092_v7 = vmul.f32 %v1085_v49, %v6129_v58  ;;  %v4594_v38 = vadd.f32 %v1008_v10, %v4484_v52  ;;  %v4597_v12 = vadd.f32 %v1009_v50, %v4487_v16  ;;  %v4600_v43 = vadd.f32 %v1036_v35, %v4490_v54 }
 0x16e   :  { %6131 = vst [vmem:[#allocation17_spill] sm:$0xff] %v4587_v30  ;;  %v1041_v27 = vadd.f32 %v1037_v15, %v4493_v63  ;;  %v1093_v59 = vmul.f32 %v1089_v48, %v6129_v58  ;;  %v548_v5 = vmul.f32 %v6133_v21, %v525_v2  ;;  %v526_v37 = vsel %vm522_vm4, %v4495_v17, %v4453_v22  ;;  %v6134_v63 = vld [vmem:[#allocation60_spill] sm:$0xff]  ;;  %v4635_v10 = vpop.permute.xlu1 %590  ;;  %v6140_v48 = vld [vmem:[#allocation15_spill] sm:$0xff] }
 0x16f   :  { %v523_v52 = vsel %vm522_vm4, %v4497_v0, %v4495_v17  ;;  %v4614_v16 = vadd.f32 %v1064_v20, %v4500_v53  ;;  %v4617_v54 = vadd.f32 %v1065_v13, %v4512_v34  ;;  %v551_v58 = vmul.f32 %v6134_v63, %v526_v37  ;;  %v6137_v17 = vld [vmem:[#allocation50_spill] sm:$0xff]  ;;  %v597_v63 = vpop.permute.xlu0 %596 }
 0x170   :  { %v550_v2 = vmul.f32 %v6135_v25, %v523_v52  ;;  %v1217_v31 = vrot.slane %v548_v5, %v3803_v40  ;;  %v1245_v9 = vrot.slane %v548_v5, %v3811_v45  ;;  %v1273_v22 = vrot.slane %v548_v5, %v3805_v41  ;;  %v6139_v20 = vld [vmem:[#allocation14_spill] sm:$0xff] }
 0x171   :  { %v1301_v14 = vrot.slane %v548_v5, %v3819_v56  ;;  %v4625_v33 = vadd.f32 %v1092_v7, %v984_v57  ;;  %v1153_v53 = vadd.f32 %v6137_v17, %v1041_v27  ;;  %v1257_v49 = vrot.slane %v551_v58, %v3811_v45  ;;  %v6142_v7 = vld [vmem:[#allocation24_spill] sm:$0xff] }
 0x172   :  { %v524_v34 = vsel %vm522_vm4, %v4451_v24, %v4497_v0  ;;  %v4637_v50 = vadd.f32 %v1093_v59, %v985_v62  ;;  %v1229_v35 = vrot.slane %v551_v58, %v3803_v40  ;;  %v1285_v57 = vrot.slane %v551_v58, %v3805_v41  ;;  %v6141_v24 = vld [vmem:[#allocation21_spill] sm:$0xff] }
 0x173   :  { %6136 = vst [vmem:[#allocation12_spill] sm:$0xff] %v4625_v33  ;;  %v1313_v15 = vrot.slane %v551_v58, %v3819_v56  ;;  %v4644_v13 = vmul.f32 %v1217_v31, %v6139_v20  ;;  %v4647_v55 = vmul.f32 %v1245_v9, %v6140_v48  ;;  %v4650_v0 = vmul.f32 %v1273_v22, %v6141_v24  ;;  %v6144_v59 = vld [vmem:[#allocation61_spill] sm:$0xff]  ;;  %v6169_v33 = vld [vmem:[#allocation71_spill] sm:$0xff] }
 0x174   :  { %6138 = vst [vmem:[#allocation13_spill] sm:$0xff] %v4637_v50  ;;  %v1261_v62 = vmul.f32 %v1257_v49, %v6140_v48  ;;  %v4654_v27 = vmul.f32 %v1301_v14, %v6142_v7  ;;  %v549_v5 = vmul.f32 %v6144_v59, %v524_v34  ;;  %v1225_v37 = vrot.slane %v550_v2, %v3803_v40 }
 0x175   :  { %v1253_v52 = vrot.slane %v550_v2, %v3811_v45  ;;  %v1281_v58 = vrot.slane %v550_v2, %v3805_v41  ;;  %v1309_v31 = vrot.slane %v550_v2, %v3819_v56  ;;  %v563_v9 = vsel %vm560_vm5, %v4538_v42, %v4536_v36 }
 0x176   :  { %6143 = vst [vmem:[#allocation47_spill] sm:$0xff] %v4654_v27  ;;  %v564_v22 = vsel %vm560_vm5, %v4579_v39, %v4538_v42  ;;  %v4670_v14 = vmul.f32 %v1229_v35, %v6139_v20  ;;  %v4673_v17 = vmul.f32 %v1285_v57, %v6141_v24  ;;  %v1221_v49 = vrot.slane %v549_v5, %v3803_v40  ;;  %v595_v35 = vpop.permute.xlu1 %594  ;;  %v6160_v27 = vld [vmem:[#allocation67_spill] sm:$0xff] }
 0x177   :  { %v1249_v2 = vrot.slane %v549_v5, %v3811_v45  ;;  %v4677_v34 = vadd.f32 %v1261_v62, %v1153_v53  ;;  %v4680_v59 = vmul.f32 %v1313_v15, %v6142_v7  ;;  %v4683_v25 = vmul.f32 %v1225_v37, %v6139_v20  ;;  %v6148_v62 = vld [vmem:[#allocation64_spill] sm:$0xff] }
 0x178   :  { %6145 = vst [vmem:[#allocation50_spill] sm:$0xff] %v4673_v17  ;;  %v1277_v42 = vrot.slane %v549_v5, %v3805_v41  ;;  %v4688_v57 = vmul.f32 %v1253_v52, %v6140_v48  ;;  %v1305_v21 = vrot.slane %v549_v5, %v3819_v56  ;;  %v4692_v53 = vmul.f32 %v6147_v8, %v563_v9 }
 0x179   :  { %6146 = vst [vmem:[#allocation14_spill] sm:$0xff] %v4680_v59  ;;  %v589_v15 = vmul.f32 %v6148_v62, %v564_v22  ;;  %v4696_v1 = vmul.f32 %v1281_v58, %v6141_v24  ;;  %v4699_v37 = vmul.f32 %v1309_v31, %v6142_v7  ;;  %v561_v6 = vsel %vm560_vm5, %v4581_v11, %v4579_v39 }
 0x17a   :  { %v562_v5 = vsel %vm560_vm5, %v4536_v36, %v4581_v11  ;;  %v4710_v52 = vmul.f32 %v1221_v49, %v6139_v20  ;;  %v4713_v9 = vmul.f32 %v1249_v2, %v6140_v48  ;;  %v4716_v58 = vmul.f32 %v1277_v42, %v6141_v24  ;;  %v6152_v48 = vld [vmem:[#allocation65_spill] sm:$0xff]  ;;  %v6153_v49 = vld [vmem:[#allocation66_spill] sm:$0xff] }
 0x17b   :  { %6149 = vst [vmem:[#allocation15_spill] sm:$0xff] %v4696_v1  ;;  %6150 = vst [vmem:[#allocation21_spill] sm:$0xff] %v4699_v37  ;;  %v1357_v31 = vrot.slane %v4692_v53, %v3811_v45  ;;  %v1341_v22 = vrot.slane %v589_v15, %v3803_v40  ;;  %v1369_v39 = vrot.slane %v589_v15, %v3811_v45  ;;  %v6154_v42 = vld [vmem:[#allocation18_spill] sm:$0xff]  ;;  %v6176_v1 = vld [vmem:[#allocation35_spill] sm:$0xff] }
 0x17c   :  { %v1397_v62 = vrot.slane %v589_v15, %v3805_v41  ;;  %v1425_v36 = vrot.slane %v589_v15, %v3819_v56  ;;  %v4725_v11 = vmul.f32 %v1305_v21, %v6142_v7  ;;  %v1329_v20 = vrot.slane %v4692_v53, %v3803_v40  ;;  %v631_v7 = vpop.permute.xlu0 %630  ;;  %v6156_v15 = vld [vmem:[#allocation19_spill] sm:$0xff] }
 0x17d   :  { %v4730_v24 = vmul.f32 %v6152_v48, %v562_v5  ;;  %v4733_v2 = vmul.f32 %v6153_v49, %v561_v6  ;;  %v4736_v8 = vmul.f32 %v1357_v31, %v6154_v42  ;;  %v601_v21 = vsel %vm598_vm6, %v4635_v10, %v4633_v23  ;;  %v629_v5 = vpop.permute.xlu1 %628  ;;  %v6155_v48 = vld [vmem:[#allocation16_spill] sm:$0xff] }
 0x17e   :  { %6151 = vst [vmem:[#allocation24_spill] sm:$0xff] %v4725_v11  ;;  %v4747_v46 = vmul.f32 %v1341_v22, %v6155_v48  ;;  %v4750_v6 = vmul.f32 %v1369_v39, %v6154_v42  ;;  %v4757_v49 = vmul.f32 %v1397_v62, %v6156_v15  ;;  %v4760_v19 = vmul.f32 %v1425_v36, %v6158_v44  ;;  %v6168_v44 = vld [vmem:[#allocation38_spill] sm:$0xff] }
 0x17f   :  { %v1361_v31 = vrot.slane %v4730_v24, %v3811_v45  ;;  %v1365_v47 = vrot.slane %v4733_v2, %v3811_v45  ;;  %v1333_v4 = vrot.slane %v4730_v24, %v3803_v40  ;;  %v1337_v22 = vrot.slane %v4733_v2, %v3803_v40 }
 0x180   :  { %6157 = vst [vmem:[#allocation18_spill] sm:$0xff] %v4757_v49  ;;  %6159 = vst [vmem:[#allocation16_spill] sm:$0xff] %v4760_v19  ;;  %v4771_v30 = vmul.f32 %v6160_v27, %v601_v21  ;;  %v602_v62 = vsel %vm598_vm6, %v597_v63, %v4635_v10  ;;  %v6162_v19 = vld [vmem:[#allocation68_spill] sm:$0xff]  ;;  %v599_v37 = vsel %vm598_vm6, %v595_v35, %v597_v63  ;;  %v6164_v10 = vld [vmem:[#allocation69_spill] sm:$0xff] }
 0x181   :  { %v4779_v59 = vmul.f32 %v6162_v19, %v602_v62  ;;  %v600_v28 = vsel %vm598_vm6, %v4633_v23, %v595_v35  ;;  %v4787_v21 = vmul.f32 %v1361_v31, %v6154_v42  ;;  %v4790_v39 = vmul.f32 %v1365_v47, %v6154_v42  ;;  %v6166_v35 = vld [vmem:[#allocation70_spill] sm:$0xff]  ;;  %v635_v47 = vpop.permute.xlu0 %634  ;;  %v633_v42 = vpop.permute.xlu1 %632 }
 0x182   :  { %6161 = vst [vmem:[#allocation19_spill] sm:$0xff] %v4771_v30  ;;  %v4793_v27 = vmul.f32 %v6164_v10, %v600_v28  ;;  %v639_v62 = vsel %vm636_vm7, %v629_v5, %v631_v7  ;;  %v1441_v36 = vrot.slane %v4771_v30, %v3803_v40  ;;  %v1469_v63 = vrot.slane %v4771_v30, %v3811_v45  ;;  %v6175_v30 = vld [vmem:[#allocation32_spill] sm:$0xff] }
 0x183   :  { %6163 = vst [vmem:[#allocation76_spill] sm:$0xff] %v4779_v59  ;;  %v1481_v23 = vrot.slane %v4779_v59, %v3811_v45  ;;  %v4804_v31 = vmul.f32 %v6166_v35, %v599_v37  ;;  %v1453_v10 = vrot.slane %v4779_v59, %v3803_v40  ;;  %v4822_v28 = vmul.f32 %v6169_v33, %v639_v62  ;;  %v6171_v33 = vld [vmem:[#allocation73_spill] sm:$0xff] }
 0x184   :  { %6165 = vst [vmem:[#allocation77_spill] sm:$0xff] %v4793_v27  ;;  %v1445_v11 = vrot.slane %v4793_v27, %v3803_v40  ;;  %v1473_v37 = vrot.slane %v4793_v27, %v3811_v45  ;;  %v640_v29 = vsel %vm636_vm7, %v635_v47, %v629_v5  ;;  %v637_v19 = vsel %vm636_vm7, %v633_v42, %v635_v47  ;;  %v6172_v27 = vld [vmem:[#allocation74_spill] sm:$0xff] }
 0x185   :  { %6167 = vst [vmem:[#allocation78_spill] sm:$0xff] %v4804_v31  ;;  %v4815_v50 = vmul.f32 %v1481_v23, %v6168_v44  ;;  %v638_v56 = vsel %vm636_vm7, %v631_v7, %v633_v42  ;;  %v6170_v23 = vld [vmem:[#allocation29_spill] sm:$0xff]  ;;  %v1449_v59 = vrot.slane %v4804_v31, %v3803_v40  ;;  %v1477_v35 = vrot.slane %v4804_v31, %v3811_v45 }
 0x186   :  { %v1122_v49 = vadd.f32 %v6170_v23, %v4574_v32  ;;  %v4839_v5 = vmul.f32 %v6171_v33, %v640_v29  ;;  %v4842_v47 = vmul.f32 %v6172_v27, %v638_v56  ;;  %v4845_v7 = vmul.f32 %v6173_v3, %v637_v19  ;;  %v6174_v32 = vld [vmem:[#allocation31_spill] sm:$0xff]  ;;  %v1548_v56 = vpop.permute.xlu0 %1547  ;;  %v6177_v3 = vld [vmem:[#allocation20_spill] sm:$0xff] }
 0x187   :  { %v1123_v42 = vadd.f32 %v6174_v32, %v4549_v26  ;;  %v1342_v23 = vmul.f32 %v1329_v20, %v6155_v48  ;;  %v1124_v17 = vadd.f32 %v6175_v30, %v4594_v38  ;;  %v1125_v62 = vadd.f32 %v6176_v1, %v4597_v12  ;;  %v1576_v32 = vpop.permute.xlu1 %1575 }
 0x188   :  { %v1343_v29 = vmul.f32 %v1333_v4, %v6155_v48  ;;  %v1344_v33 = vmul.f32 %v1337_v22, %v6155_v48  ;;  %v1234_v27 = vadd.f32 %v4644_v13, %v1122_v49  ;;  %v1454_v31 = vmul.f32 %v1441_v36, %v6177_v3 }
 0x189   :  { %v1235_v19 = vadd.f32 %v4710_v52, %v1123_v42  ;;  %v1455_v26 = vmul.f32 %v1445_v11, %v6177_v3  ;;  %v1236_v20 = vadd.f32 %v4683_v25, %v1124_v17  ;;  %v1237_v30 = vadd.f32 %v4670_v14, %v1125_v62 }
 0x18a   :  { %v1456_v38 = vmul.f32 %v1449_v59, %v6177_v3  ;;  %v1553_v4 = vrot.slane %v4822_v28, %v3803_v40  ;;  %v1346_v1 = vadd.f32 %v1342_v23, %v1234_v27  ;;  %v1457_v48 = vmul.f32 %v1453_v10, %v6177_v3  ;;  %v6178_v3 = vld [vmem:[#allocation48_spill] sm:$0xff] }
 0x18b   :  { %v1347_v12 = vadd.f32 %v1343_v29, %v1235_v19  ;;  %v1557_v13 = vrot.slane %v4842_v47, %v3803_v40  ;;  %v1348_v52 = vadd.f32 %v1344_v33, %v1236_v20  ;;  %v1561_v11 = vrot.slane %v4845_v7, %v3803_v40  ;;  %v6179_v29 = vld [vmem:[#allocation49_spill] sm:$0xff] }
 0x18c   :  { %v1565_v25 = vrot.slane %v4839_v5, %v3803_v40  ;;  %v1566_v14 = vmul.f32 %v1553_v4, %v1548_v56  ;;  %v1349_v59 = vadd.f32 %v4747_v46, %v1237_v30  ;;  %v1458_v17 = vadd.f32 %v1454_v31, %v1346_v1 }
 0x18d   :  { %v1459_v49 = vadd.f32 %v1455_v26, %v1347_v12  ;;  %v1567_v22 = vmul.f32 %v1557_v13, %v1548_v56  ;;  %v1460_v27 = vadd.f32 %v1456_v38, %v1348_v52  ;;  %v1568_v36 = vmul.f32 %v1561_v11, %v1548_v56 }
 0x18e   :  { %v1569_v62 = vmul.f32 %v1565_v25, %v1548_v56  ;;  %v1151_v10 = vadd.f32 %v6178_v3, %v4552_v51  ;;  %v1461_v33 = vadd.f32 %v1457_v48, %v1349_v59  ;;  %v4875_v42 = vadd.f32 %v1566_v14, %v1458_v17  ;;  %v4906_v48 = vpop.permute.xlu1 %1519  ;;  %v6181_v14 = vld [vmem:[#allocation52_spill] sm:$0xff] }
 0x18f   :  { %v4877_v23 = vadd.f32 %v1567_v22, %v1459_v49  ;;  %v1152_v19 = vadd.f32 %v6179_v29, %v4600_v43  ;;  %v1377_v31 = vadd.f32 %v4750_v6, %v4677_v34  ;;  %v1482_v26 = vmul.f32 %v1469_v63, %v6168_v44  ;;  %v6190_v29 = vld [vmem:[#allocation19_spill] sm:$0xff] }
 0x190   :  { %v1263_v46 = vadd.f32 %v4713_v9, %v1151_v10  ;;  %v1483_v56 = vmul.f32 %v1473_v37, %v6168_v44  ;;  %v4886_v20 = vadd.f32 %v1568_v36, %v1460_v27  ;;  %v4888_v51 = vadd.f32 %v1569_v62, %v1461_v33  ;;  %v6187_v10 = vld [vmem:[#allocation15_spill] sm:$0xff] }
 0x191   :  { %v1264_v30 = vadd.f32 %v4688_v57, %v1152_v19  ;;  %v1484_v38 = vmul.f32 %v1477_v35, %v6168_v44  ;;  %v1585_v43 = vrot.slane %v4842_v47, %v3811_v45  ;;  %v1589_v34 = vrot.slane %v4845_v7, %v3811_v45  ;;  %v6180_v44 = vld [vmem:[#allocation51_spill] sm:$0xff] }
 0x192   :  { %v1375_v4 = vadd.f32 %v4787_v21, %v1263_v46  ;;  %v1593_v9 = vrot.slane %v4839_v5, %v3811_v45  ;;  %v1581_v63 = vrot.slane %v4822_v28, %v3811_v45  ;;  %v1262_v57 = vadd.f32 %v4647_v55, %v4590_v61  ;;  %v6182_v61 = vld [vmem:[#allocation54_spill] sm:$0xff] }
 0x193   :  { %v1376_v6 = vadd.f32 %v4790_v39, %v1264_v30  ;;  %v1178_v21 = vadd.f32 %v6180_v44, %v4584_v18  ;;  %v1595_v37 = vmul.f32 %v1585_v43, %v1576_v32  ;;  %v1596_v1 = vmul.f32 %v1589_v34, %v1576_v32  ;;  %v6183_v18 = vld [vmem:[#allocation55_spill] sm:$0xff]  ;;  %v6194_v43 = vld [vmem:[#allocation78_spill] sm:$0xff] }
 0x194   :  { %v1487_v35 = vadd.f32 %v1483_v56, %v1375_v4  ;;  %v1597_v12 = vmul.f32 %v1593_v9, %v1576_v32  ;;  %v1489_v52 = vadd.f32 %v4815_v50, %v1377_v31  ;;  %v1374_v39 = vadd.f32 %v4736_v8, %v1262_v57  ;;  %v6192_v31 = vld [vmem:[#allocation77_spill] sm:$0xff]  ;;  %v6196_v9 = vld [vmem:[#allocation76_spill] sm:$0xff]  ;;  %v1632_v57 = vpop.permute.xlu1 %1631 }
 0x195   :  { %v1488_v13 = vadd.f32 %v1484_v38, %v1376_v6  ;;  %v1594_v11 = vmul.f32 %v1581_v63, %v1576_v32  ;;  %v1179_v59 = vadd.f32 %v6181_v14, %v4555_v60  ;;  %v1180_v55 = vadd.f32 %v6182_v61, %v4614_v16  ;;  %v1604_v38 = vpop.permute.xlu0 %1603 }
 0x196   :  { %v1599_v25 = vadd.f32 %v1595_v37, %v1487_v35  ;;  %v1181_v17 = vadd.f32 %v6183_v18, %v4617_v54  ;;  %v1486_v49 = vadd.f32 %v1482_v26, %v1374_v39  ;;  %v1601_v27 = vadd.f32 %v1597_v12, %v1489_v52 }
 0x197   :  { %v1600_v22 = vadd.f32 %v1596_v1, %v1488_v13  ;;  %v1290_v36 = vadd.f32 %v4650_v0, %v1178_v21  ;;  %v1291_v50 = vadd.f32 %v4716_v58, %v1179_v59  ;;  %v6184_v8 = vrot.slane %v4692_v53, %v3805_v41  ;;  %v6188_v0 = vld [vmem:[#allocation50_spill] sm:$0xff]  ;;  %v6189_v58 = vld [vmem:[#allocation37_spill] sm:$0xff] }
 0x198   :  { %v6185_v60 = vrot.slane %v4730_v24, %v3805_v41  ;;  %v6186_v54 = vrot.slane %v4733_v2, %v3805_v41  ;;  %v1292_v32 = vadd.f32 %v6187_v10, %v1180_v55  ;;  %v1293_v33 = vadd.f32 %v6188_v0, %v1181_v17  ;;  %v6198_v13 = vld [vmem:[#allocation18_spill] sm:$0xff]  ;;  %v6199_v55 = vld [vmem:[#allocation5_spill] sm:$0xff]  ;;  %v6200_v10 = vld [vmem:[#allocation11_spill] sm:$0xff] }
 0x199   :  { %v1398_v62 = vmul.f32 %v6184_v8, %v6156_v15  ;;  %v6191_v19 = vrot.slane %v6190_v29, %v3805_v41  ;;  %v6193_v26 = vrot.slane %v6192_v31, %v3805_v41  ;;  %v1598_v30 = vadd.f32 %v1594_v11, %v1486_v49  ;;  %v4959_v8 = vpop.permute.xlu1 %1671 }
 0x19a   :  { %v1399_v16 = vmul.f32 %v6185_v60, %v6156_v15  ;;  %v1400_v3 = vmul.f32 %v6186_v54, %v6156_v15  ;;  %v6195_v15 = vrot.slane %v6194_v43, %v3805_v41  ;;  %v6197_v6 = vrot.slane %v6196_v9, %v3805_v41 }
 0x19b   :  { %v1510_v46 = vmul.f32 %v6191_v19, %v6189_v58  ;;  %v1511_v56 = vmul.f32 %v6193_v26, %v6189_v58  ;;  %v1609_v44 = vrot.slane %v4822_v28, %v3805_v41  ;;  %v1613_v21 = vrot.slane %v4842_v47, %v3805_v41  ;;  %v6204_v26 = vld [vmem:[#allocation13_spill] sm:$0xff] }
 0x19c   :  { %v1403_v4 = vadd.f32 %v1399_v16, %v1291_v50  ;;  %v1512_v34 = vmul.f32 %v6195_v15, %v6189_v58  ;;  %v1513_v63 = vmul.f32 %v6197_v6, %v6189_v58  ;;  %v1617_v35 = vrot.slane %v4845_v7, %v3805_v41 }
 0x19d   :  { %v1621_v37 = vrot.slane %v4839_v5, %v3805_v41  ;;  %v1402_v1 = vadd.f32 %v1398_v62, %v1290_v36  ;;  %v1404_v12 = vadd.f32 %v1400_v3, %v1292_v32  ;;  %v1405_v52 = vadd.f32 %v6198_v13, %v1293_v33  ;;  %v6201_v32 = vld [vmem:[#allocation33_spill] sm:$0xff]  ;;  %v6202_v33 = vld [vmem:[#allocation12_spill] sm:$0xff] }
 0x19e   :  { %v1515_v39 = vadd.f32 %v1511_v56, %v1403_v4  ;;  %v1622_v11 = vmul.f32 %v1609_v44, %v1604_v38  ;;  %v1623_v14 = vmul.f32 %v1613_v21, %v1604_v38  ;;  %v1624_v59 = vmul.f32 %v1617_v35, %v1604_v38  ;;  %v6205_v56 = vld [vmem:[#allocation36_spill] sm:$0xff]  ;;  %v6206_v4 = vld [vmem:[#allocation23_spill] sm:$0xff]  ;;  %v6211_v21 = vld [vmem:[#allocation14_spill] sm:$0xff] }
 0x19f   :  { %v1625_v61 = vmul.f32 %v1621_v37, %v1604_v38  ;;  %v1421_v18 = vrot.slane %v4733_v2, %v6199_v55  ;;  %v1514_v17 = vadd.f32 %v1510_v46, %v1402_v1  ;;  %v1516_v49 = vadd.f32 %v1512_v34, %v1404_v12  ;;  %v6203_v2 = vld [vmem:[#allocation34_spill] sm:$0xff]  ;;  %v4981_v34 = vpop.permute.xlu1 %1739  ;;  %v6212_v1 = vld [vmem:[#allocation17_spill] sm:$0xff] }
 0x1a0   :  { %v1517_v50 = vadd.f32 %v1513_v63, %v1405_v52  ;;  %v1627_v60 = vadd.f32 %v1623_v14, %v1515_v39  ;;  %v1658_v16 = vadd.f32 %v1598_v30, %v4875_v42  ;;  %v1659_v36 = vadd.f32 %v1599_v25, %v4877_v23  ;;  %v6208_v25 = vld [vmem:[#allocation24_spill] sm:$0xff]  ;;  %v6213_v12 = vld [vmem:[#allocation30_spill] sm:$0xff] }
 0x1a1   :  { %v1660_v62 = vadd.f32 %v1600_v22, %v4886_v20  ;;  %v1626_v54 = vadd.f32 %v1622_v11, %v1514_v17  ;;  %v1661_v3 = vadd.f32 %v1601_v27, %v4888_v51  ;;  %v1207_v0 = vadd.f32 %v6201_v32, %v6200_v10  ;;  %v6209_v51 = vld [vmem:[#allocation21_spill] sm:$0xff] }
 0x1a2   :  { %v1208_v58 = vadd.f32 %v6203_v2, %v6202_v33  ;;  %v1628_v19 = vadd.f32 %v1624_v59, %v1516_v49  ;;  %v1629_v46 = vadd.f32 %v1625_v61, %v1517_v50  ;;  %v1209_v38 = vadd.f32 %v6205_v56, %v6204_v26  ;;  %v6215_v61 = vld [vmem:[#allocation16_spill] sm:$0xff] }
 0x1a3   :  { %v6207_v42 = vrot.slane %v4692_v53, %v6199_v55  ;;  %v1663_v20 = vadd.f32 %v1659_v36, %v1627_v60  ;;  %v1319_v22 = vadd.f32 %v6208_v25, %v1207_v0  ;;  %v6210_v30 = vrot.slane %v4730_v24, %v6199_v55 }
 0x1a4   :  { %v1320_v27 = vadd.f32 %v6209_v51, %v1208_v58  ;;  %v1428_v6 = vmul.f32 %v1421_v18, %v6206_v4  ;;  %v1525_v63 = vrot.slane %v6190_v29, %v6199_v55  ;;  %v1529_v53 = vrot.slane %v6192_v31, %v6199_v55  ;;  %v6214_v31 = vld [vmem:[#allocation47_spill] sm:$0xff] }
 0x1a5   :  { %v1426_v23 = vmul.f32 %v6207_v42, %v6206_v4  ;;  %v1427_v15 = vmul.f32 %v6210_v30, %v6206_v4  ;;  %v1533_v44 = vrot.slane %v6194_v43, %v6199_v55  ;;  %v1321_v35 = vadd.f32 %v6211_v21, %v1209_v38  ;;  %v6216_v4 = vld [vmem:[#allocation72_spill] sm:$0xff] }
 0x1a6   :  { %v1537_v24 = vrot.slane %v6196_v9, %v6199_v55  ;;  %v1206_v13 = vadd.f32 %v6213_v12, %v6212_v1  ;;  %v1432_v52 = vadd.f32 %v1428_v6, %v1320_v27  ;;  %v1538_v39 = vmul.f32 %v1525_v63, %v4906_v48 }
 0x1a7   :  { %v1431_v37 = vadd.f32 %v1427_v15, %v1319_v22  ;;  %v1539_v29 = vmul.f32 %v1529_v53, %v4906_v48  ;;  %v1540_v11 = vmul.f32 %v1533_v44, %v4906_v48  ;;  %v1637_v59 = vrot.slane %v4822_v28, %v6199_v55 }
 0x1a8   :  { %v1318_v14 = vadd.f32 %v6214_v31, %v1206_v13  ;;  %v1541_v43 = vmul.f32 %v1537_v24, %v4906_v48  ;;  %v1641_v9 = vrot.slane %v4842_v47, %v6199_v55  ;;  %v1433_v18 = vadd.f32 %v6215_v61, %v1321_v35  ;;  %v5009_v48 = vpop.permute.xlu1 %1763 }
 0x1a9   :  { %v1543_v17 = vadd.f32 %v1539_v29, %v1431_v37  ;;  %v1645_v49 = vrot.slane %v4845_v7, %v6199_v55  ;;  %v1649_v50 = vrot.slane %v4839_v5, %v6199_v55  ;;  %v1544_v36 = vadd.f32 %v1540_v11, %v1432_v52 }
 0x1aa   :  { %v1430_v60 = vadd.f32 %v1426_v23, %v1318_v14  ;;  %v1650_v10 = vmul.f32 %v1637_v59, %v1632_v57  ;;  %v1651_v32 = vmul.f32 %v1641_v9, %v1632_v57  ;;  %v1545_v0 = vadd.f32 %v1541_v43, %v1433_v18 }
 0x1ab   :  { %v1652_v28 = vmul.f32 %v1645_v49, %v1632_v57  ;;  %v1653_v33 = vmul.f32 %v1649_v50, %v1632_v57  ;;  %v1664_v2 = vadd.f32 %v1660_v62, %v1628_v19  ;;  %v3702_v26 = vmov 72  }
 0x1ac   :  { %v1542_v47 = vadd.f32 %v1538_v39, %v1430_v60  ;;  %v1655_v58 = vadd.f32 %v1651_v32, %v1543_v17  ;;  %3502 = vset.pattern.permute.xlu1 %v3702_v26  ;;  %v1665_v56 = vadd.f32 %v1661_v3, %v1629_v46  ;;  %v3703_v5 = vmov 68   ;;  %v5016_v19 = vpop.permute.xlu1 %1823 }
 0x1ad   :  { %v1656_v38 = vadd.f32 %v1652_v28, %v1544_v36  ;;  %v1657_v7 = vadd.f32 %v1653_v33, %v1545_v0  ;;  %2651 = vperm.xlu1 %3502, %v6216_v4   ;;  %3498 = vset.pattern.permute.xlu0 %v3703_v5  ;;  %v1662_v42 = vadd.f32 %v1658_v16, %v1626_v54  ;;  %v3704_v27 = vmov 73  }
 0x1ae   :  { %v1654_v23 = vadd.f32 %v1650_v10, %v1542_v47  ;;  %v1667_v25 = vadd.f32 %v1663_v20, %v1655_v58  ;;  %2539 = vperm.xlu0 %3498, %v6216_v4   ;;  %v5031_v20 = vld [vmem:[%s5950_s1] sm:$0xf]  ;;  %v3705_v30 = vmov 70   ;;  %v3706_v37 = vmov 74  }
 0x1af   :  { %v1668_v22 = vadd.f32 %v1664_v2, %v1656_v38  ;;  %v1669_v51 = vadd.f32 %v1665_v56, %v1657_v7  ;;  %v3707_v24 = vmov 71   ;;  %v3708_v1 = vmov 76  }
 0x1b0   :  { %v1666_v57 = vadd.f32 %v1662_v42, %v1654_v23  ;;  %v5014_v62 = vadd.f32 %v4959_v8, %v1667_v25  ;;  %v5038_v35 = vpop.permute.xlu1 %1995  ;;  %v3709_v13 = vmov 77   ;;  %v3710_v39 = vmov 75  }
 0x1b1   :  { %v5019_v3 = vadd.f32 %v4959_v8, %v1668_v22  ;;  %v5022_v46 = vadd.f32 %v4959_v8, %v1669_v51  ;;  %3503 = vset.pattern.permute.xlu1 %v3704_v27  ;;  %v3711_v31 = vmov 80   ;;  %v3712_v36 = vmov 78  }
 0x1b2   :  { %v5025_v16 = vadd.f32 %v4959_v8, %v1666_v57  ;;  %v1679_v54 = vmin.f32 %v5014_v62, 20.0  ;;  %2679 = vperm.xlu1 %3503, %v5031_v20   ;;  %3501 = vset.pattern.permute.xlu0 %v3705_v30  ;;  %v3713_v0 = vmov 82   ;;  %v3714_v47 = vmov 81  }
 0x1b3   :  { %v1680_v15 = vmin.f32 %v5019_v3, 20.0  ;;  %v1681_v6 = vmin.f32 %v5022_v46, 20.0  ;;  %2595 = vperm.xlu0 %3501, %v5031_v20   ;;  %v3715_v26 = vmov 79  }
 0x1b4   :  { %v1678_v8 = vmin.f32 %v5025_v16, 20.0  ;;  %v1684_v63 = vmul.f32 1.442695, %v1679_v54  ;;  %v5042_v12 = vpop.permute.xlu1 %2043 }
 0x1b5   :  { %v1686_v53 = vmul.f32 1.442695, %v1680_v15  ;;  %v1688_v44 = vmul.f32 1.442695, %v1681_v6 }
 0x1b6   :  { %v1682_v21 = vmul.f32 1.442695, %v1678_v8  ;;  %3542 = vpow2.f32 %v1684_v63  ;;  %3505 = vset.pattern.permute.xlu1 %v3706_v37 }
 0x1b7   :  { %3544 = vpow2.f32 %v1686_v53  ;;  %2707 = vperm.xlu1 %3505, %v5031_v20   ;;  %3504 = vset.pattern.permute.xlu0 %v3707_v24 }
 0x1b8   :  { %3546 = vpow2.f32 %v1682_v21  ;;  %2623 = vperm.xlu0 %3504, %v5031_v20   ;;  %v5047_v59 = vpop.permute.xlu1 %2091 }
 0x1b9   :  { %3548 = vpow2.f32 %v1688_v44 }
 0x1bb   :  { %3506 = vset.pattern.permute.xlu1 %v3708_v1 }
 0x1bc   :  { %2763 = vperm.xlu1 %3506, %v5031_v20   ;;  %3507 = vset.pattern.permute.xlu0 %v3709_v13  ;;  %v5051_v2 = vpop.permute.xlu1 %2147 }
 0x1bd   :  { %2791 = vperm.xlu0 %3507, %v5031_v20  }
 0x1c0   :  { %v3543_v52 = vpop.eup %3542  ;;  %3508 = vset.pattern.permute.xlu1 %v3710_v39  ;;  %v5054_v58 = vpop.permute.xlu1 %2203 }
 0x1c1   :  { %v3545_v29 = vpop.eup %3544  ;;  %v1691_v11 = vadd.f32 2.0, %v3543_v52  ;;  %2735 = vperm.xlu1 %3508, %v5031_v20   ;;  %3510 = vset.pattern.permute.xlu0 %v3711_v31 }
 0x1c2   :  { %v3547_v14 = vpop.eup %3546  ;;  %v1692_v43 = vadd.f32 2.0, %v3545_v29  ;;  %2875 = vperm.xlu0 %3510, %v5031_v20  }
 0x1c3   :  { %v3549_v9 = vpop.eup %3548  ;;  %v1690_v61 = vadd.f32 2.0, %v3547_v14  ;;  %v1695_v18 = vmul.f32 %v3543_v52, %v1691_v11 }
 0x1c4   :  { %v1693_v17 = vadd.f32 2.0, %v3549_v9  ;;  %v1696_v49 = vmul.f32 %v3545_v29, %v1692_v43  ;;  %v5064_v15 = vpop.permute.xlu1 %2067 }
 0x1c5   :  { %v1694_v50 = vmul.f32 %v3547_v14, %v1690_v61  ;;  %v1703_v60 = vadd.f32 2.0, %v1695_v18  ;;  %3509 = vset.pattern.permute.xlu1 %v3712_v36  ;;  %v1699_v56 = vmul.f32 %v1695_v18, %v5014_v62  ;;  %v1716_v62 = vpop.permute.xlu0 %1715 }
 0x1c6   :  { %v1697_v10 = vmul.f32 %v3549_v9, %v1693_v17  ;;  %v1704_v32 = vadd.f32 2.0, %v1696_v49  ;;  %2819 = vperm.xlu1 %3509, %v5031_v20   ;;  %3513 = vset.pattern.permute.xlu0 %v3713_v0  ;;  %v1700_v7 = vmul.f32 %v1696_v49, %v5019_v3  ;;  %v3716_v3 = vmov 83  }
 0x1c7   :  { %v1702_v28 = vadd.f32 2.0, %v1694_v50  ;;  %3550 = vrcp.f32 %v1703_v60  ;;  %v1698_v5 = vmul.f32 %v1694_v50, %v5025_v16 }
 0x1c8   :  { %v1705_v33 = vadd.f32 2.0, %v1697_v10  ;;  %3552 = vrcp.f32 %v1704_v32  ;;  %v1701_v25 = vmul.f32 %v1697_v10, %v5022_v46  ;;  %v5083_v49 = vpop.permute.xlu1 %2175 }
 0x1c9   :  { %3554 = vrcp.f32 %v1702_v28  ;;  %v1788_v61 = vpop.permute.xlu0 %1787 }
 0x1ca   :  { %3556 = vrcp.f32 %v1705_v33  ;;  %3511 = vset.pattern.permute.xlu1 %v3714_v47 }
 0x1cb   :  { %2903 = vperm.xlu1 %3511, %v5031_v20  }
 0x1cf   :  { %3512 = vset.pattern.permute.xlu1 %v3715_v26 }
 0x1d0   :  { %2847 = vperm.xlu1 %3512, %v5031_v20  }
 0x1d1   :  { %v3551_v38 = vpop.eup %3550 }
 0x1d2   :  { %v3553_v4 = vpop.eup %3552  ;;  %v1711_v42 = vmul.f32 %v3551_v38, %v1699_v56 }
 0x1d3   :  { %v3555_v23 = vpop.eup %3554  ;;  %v1712_v22 = vmul.f32 %v3553_v4, %v1700_v7 }
 0x1d4   :  { %v3557_v51 = vpop.eup %3556  ;;  %v1710_v57 = vmul.f32 %v3555_v23, %v1698_v5  ;;  %v1749_v27 = vrot.slane %v1711_v42, %v3811_v45  ;;  %v1773_v54 = vrot.slane %v1711_v42, %v3805_v41  ;;  %v1725_v30 = vrot.slane %v1711_v42, %v3803_v40  ;;  %3514 = vset.pattern.permute.xlu1 %v3716_v3 }
 0x1d5   :  { %v1713_v6 = vmul.f32 %v3557_v51, %v1701_v25  ;;  %v1753_v16 = vrot.slane %v1712_v22, %v3811_v45  ;;  %v1777_v8 = vrot.slane %v1712_v22, %v3805_v41  ;;  %v1729_v46 = vrot.slane %v1712_v22, %v3803_v40  ;;  %v5089_v51 = vpop.permute.xlu1 %2315 }
 0x1d6   :  { %v1745_v63 = vrot.slane %v1710_v57, %v3811_v45  ;;  %v1759_v53 = vmul.f32 %v1749_v27, %v4981_v34  ;;  %v1769_v37 = vrot.slane %v1710_v57, %v3805_v41  ;;  %v1783_v24 = vmul.f32 %v1773_v54, %v5009_v48 }
 0x1d7   :  { %v1757_v44 = vrot.slane %v1713_v6, %v3811_v45  ;;  %v1760_v21 = vmul.f32 %v1753_v16, %v4981_v34  ;;  %v1781_v13 = vrot.slane %v1713_v6, %v3805_v41  ;;  %v1721_v52 = vrot.slane %v1710_v57, %v3803_v40 }
 0x1d8   :  { %v1758_v1 = vmul.f32 %v1745_v63, %v4981_v34  ;;  %v1733_v39 = vrot.slane %v1713_v6, %v3803_v40  ;;  %v1784_v11 = vmul.f32 %v1777_v8, %v5009_v48  ;;  %v1735_v31 = vmul.f32 %v1725_v30, %v1716_v62 }
 0x1d9   :  { %v1761_v29 = vmul.f32 %v1757_v44, %v4981_v34  ;;  %v1736_v14 = vmul.f32 %v1729_v46, %v1716_v62  ;;  %v1734_v43 = vmul.f32 %v1721_v52, %v1716_v62  ;;  %v1793_v18 = vrot.slane %v1710_v57, %v6199_v55  ;;  %v5097_v44 = vpop.permute.xlu0 %2019 }
 0x1da   :  { %v1737_v9 = vmul.f32 %v1733_v39, %v1716_v62  ;;  %v1797_v17 = vrot.slane %v1711_v42, %v6199_v55  ;;  %v1811_v50 = vadd.f32 %v1759_v53, %v1735_v31  ;;  %v1801_v36 = vrot.slane %v1712_v22, %v6199_v55  ;;  %v5095_v53 = vpop.permute.xlu1 %2343 }
 0x1db   :  { %v1812_v60 = vadd.f32 %v1760_v21, %v1736_v14  ;;  %v1805_v10 = vrot.slane %v1713_v6, %v6199_v55  ;;  %v1782_v34 = vmul.f32 %v1769_v37, %v5009_v48  ;;  %v1785_v32 = vmul.f32 %v1781_v13, %v5009_v48 }
 0x1dc   :  { %v1810_v0 = vadd.f32 %v1758_v1, %v1734_v43  ;;  %v1813_v28 = vadd.f32 %v1761_v29, %v1737_v9  ;;  %v1807_v33 = vmul.f32 %v1797_v17, %v1788_v61  ;;  %v1808_v47 = vmul.f32 %v1801_v36, %v1788_v61 }
 0x1dd   :  { %v1815_v26 = vadd.f32 %v1811_v50, %v1783_v24  ;;  %v1816_v56 = vadd.f32 %v1812_v60, %v1784_v11  ;;  %v1806_v38 = vmul.f32 %v1793_v18, %v1788_v61  ;;  %v1809_v7 = vmul.f32 %v1805_v10, %v1788_v61  ;;  %v5101_v37 = vpop.permute.xlu0 %2119 }
 0x1de   :  { %v1814_v4 = vadd.f32 %v1810_v0, %v1782_v34  ;;  %v1817_v5 = vadd.f32 %v1813_v28, %v1785_v32  ;;  %v5099_v21 = vpop.permute.xlu1 %2371 }
 0x1df   :  { %v1819_v42 = vadd.f32 %v1815_v26, %v1807_v33  ;;  %v1820_v23 = vadd.f32 %v1816_v56, %v1808_v47  ;;  %6217 = vst [vmem:[#allocation38_spill] sm:$0xff] %v5099_v21 }
 0x1e0   :  { %v1818_v25 = vadd.f32 %v1814_v4, %v1806_v38  ;;  %v1821_v22 = vadd.f32 %v1817_v5, %v1809_v7 }
 0x1e1   :  { %v1827_v57 = vadd.f32 %v5016_v19, %v1819_v42  ;;  %v1828_v48 = vadd.f32 %v5016_v19, %v1820_v23  ;;  %v5103_v9 = vpop.permute.xlu0 %2231 }
 0x1e2   :  { %v1826_v27 = vadd.f32 %v5016_v19, %v1818_v25  ;;  %v1829_v54 = vadd.f32 %v5016_v19, %v1821_v22  ;;  %v2428_v13 = vpop.permute.xlu1 %2427 }
 0x1e3   :  { %v1831_v62 = vmin.f32 %v1827_v57, 20.0  ;;  %v1832_v30 = vmin.f32 %v1828_v48, 20.0 }
 0x1e4   :  { %v1830_v3 = vmin.f32 %v1826_v27, 20.0  ;;  %v1833_v6 = vmin.f32 %v1829_v54, 20.0 }
 0x1e5   :  { %v1836_v16 = vmul.f32 1.442695, %v1831_v62  ;;  %v1838_v8 = vmul.f32 1.442695, %v1832_v30  ;;  %v5107_v34 = vpop.permute.xlu0 %2259 }
 0x1e6   :  { %v1834_v46 = vmul.f32 1.442695, %v1830_v3  ;;  %v1840_v63 = vmul.f32 1.442695, %v1833_v6  ;;  %v5105_v36 = vpop.permute.xlu1 %2399 }
 0x1e7   :  { %3558 = vpow2.f32 %v1836_v16  ;;  %6218 = vst [vmem:[#allocation29_spill] sm:$0xff] %v5105_v36 }
 0x1e8   :  { %3560 = vpow2.f32 %v1834_v46 }
 0x1e9   :  { %3562 = vpow2.f32 %v1838_v8  ;;  %v5109_v28 = vpop.permute.xlu0 %2287 }
 0x1ea   :  { %3564 = vpow2.f32 %v1840_v63  ;;  %v2484_v32 = vpop.permute.xlu1 %2483 }
 0x1ed   :  { %v2456_v46 = vpop.permute.xlu0 %2455 }
 0x1ee   :  { %v5115_v42 = vpop.permute.xlu1 %2567 }
 0x1ef   :  { %6219 = vst [vmem:[#allocation31_spill] sm:$0xff] %v5115_v42 }
 0x1f1   :  { %v3559_v19 = vpop.eup %3558 }
 0x1f2   :  { %v3561_v24 = vpop.eup %3560  ;;  %v1843_v1 = vadd.f32 2.0, %v3559_v19 }
 0x1f3   :  { %v3563_v52 = vpop.eup %3562  ;;  %v1842_v39 = vadd.f32 2.0, %v3561_v24 }
 0x1f4   :  { %v3565_v29 = vpop.eup %3564  ;;  %v1844_v11 = vadd.f32 2.0, %v3563_v52  ;;  %v1847_v31 = vmul.f32 %v3559_v19, %v1843_v1 }
 0x1f5   :  { %v1845_v14 = vadd.f32 2.0, %v3565_v29  ;;  %v1846_v43 = vmul.f32 %v3561_v24, %v1842_v39 }
 0x1f6   :  { %v1848_v61 = vmul.f32 %v3563_v52, %v1844_v11  ;;  %v1855_v18 = vadd.f32 2.0, %v1847_v31  ;;  %v1851_v0 = vmul.f32 %v1847_v31, %v1827_v57 }
 0x1f7   :  { %v1849_v17 = vmul.f32 %v3565_v29, %v1845_v14  ;;  %v1854_v50 = vadd.f32 2.0, %v1846_v43  ;;  %v1850_v47 = vmul.f32 %v1846_v43, %v1826_v27 }
 0x1f8   :  { %v1856_v60 = vadd.f32 2.0, %v1848_v61  ;;  %3566 = vrcp.f32 %v1855_v18  ;;  %v1852_v56 = vmul.f32 %v1848_v61, %v1828_v48  ;;  %v2512_v18 = vpop.permute.xlu1 %2511 }
 0x1f9   :  { %v1857_v10 = vadd.f32 2.0, %v1849_v17  ;;  %3568 = vrcp.f32 %v1854_v50  ;;  %v1853_v4 = vmul.f32 %v1849_v17, %v1829_v54 }
 0x1fa   :  { %3570 = vrcp.f32 %v1856_v60 }
 0x1fb   :  { %3572 = vrcp.f32 %v1857_v10 }
 0x202   :  { %v3567_v33 = vpop.eup %3566 }
 0x203   :  { %v3569_v26 = vpop.eup %3568  ;;  %v5111_v38 = vmul.f32 %v3567_v33, %v1851_v0 }
 0x204   :  { %v3571_v7 = vpop.eup %3570  ;;  %v5113_v5 = vmul.f32 %v3569_v26, %v1850_v47 }
 0x205   :  { %v3573_v23 = vpop.eup %3572  ;;  %v5117_v25 = vmul.f32 %v3571_v7, %v1852_v56  ;;  %v2437_v22 = vrot.slane %v5111_v38, %v3803_v40  ;;  %v2493_v57 = vrot.slane %v5111_v38, %v3805_v41  ;;  %1868 = vrot.lane.b32.xlu0 %v5111_v38, %s3666_s0  ;;  %v2465_v48 = vrot.slane %v5111_v38, %v3811_v45 }
 0x206   :  { %v1865_v27 = vmul.f32 %v3573_v23, %v1853_v4  ;;  %v2433_v54 = vrot.slane %v5113_v5, %v3803_v40  ;;  %v2489_v62 = vrot.slane %v5113_v5, %v3805_v41  ;;  %1866 = vrot.lane.b32.xlu1 %v5113_v5, %s3666_s0  ;;  %v2461_v30 = vrot.slane %v5113_v5, %v3811_v45 }
 0x207   :  { %v2441_v3 = vrot.slane %v5117_v25, %v3803_v40  ;;  %v5137_v6 = vmul.f32 %v2437_v22, %v2428_v13  ;;  %v2497_v16 = vrot.slane %v5117_v25, %v3805_v41  ;;  %v5141_v8 = vmul.f32 %v2493_v57, %v2484_v32 }
 0x208   :  { %v2445_v63 = vrot.slane %v1865_v27, %v3803_v40  ;;  %v5144_v19 = vmul.f32 %v2433_v54, %v2428_v13  ;;  %v2501_v24 = vrot.slane %v1865_v27, %v3805_v41  ;;  %v5147_v1 = vmul.f32 %v2489_v62, %v2484_v32 }
 0x209   :  { %6220 = vst [vmem:[#allocation32_spill] sm:$0xff] %v5137_v6  ;;  %6221 = vst [vmem:[#allocation35_spill] sm:$0xff] %v5141_v8  ;;  %v5149_v52 = vmul.f32 %v2441_v3, %v2428_v13  ;;  %v5151_v39 = vmul.f32 %v2497_v16, %v2484_v32  ;;  %v2469_v29 = vrot.slane %v5117_v25, %v3811_v45  ;;  %1872 = vrot.lane.b32.xlu0 %v1865_v27, %s3666_s0  ;;  %v3717_v7 = vmov 84  }
 0x20a   :  { %6222 = vst [vmem:[#allocation20_spill] sm:$0xff] %v5144_v19  ;;  %6223 = vst [vmem:[#allocation48_spill] sm:$0xff] %v5147_v1  ;;  %v2473_v11 = vrot.slane %v1865_v27, %v3811_v45  ;;  %v5157_v31 = vmul.f32 %v2445_v63, %v2428_v13  ;;  %v5159_v14 = vmul.f32 %v2501_v24, %v2484_v32  ;;  %1870 = vrot.lane.b32.xlu1 %v5117_v25, %s3666_s0  ;;  %v6237_v4 = vmov 4   ;;  %v6245_v24 = vld [vmem:[#allocation7_spill] sm:$0xff] }
 0x20b   :  { %6224 = vst [vmem:[#allocation49_spill] sm:$0xff] %v5149_v52  ;;  %6225 = vst [vmem:[#allocation51_spill] sm:$0xff] %v5151_v39  ;;  %v5161_v43 = vmul.f32 %v2461_v30, %v2456_v46  ;;  %v5163_v61 = vmul.f32 %v2465_v48, %v2456_v46  ;;  %v5167_v17 = vmul.f32 %v2469_v29, %v2456_v46  ;;  %v3720_v22 = vmov 87   ;;  %v6246_v29 = vld [vmem:[#allocation6_spill] sm:$0xff]  ;;  %v6264_v39 = vld [vmem:[#allocation28_spill] sm:$0xff] }
 0x20c   :  { %6226 = vst [vmem:[#allocation52_spill] sm:$0xff] %v5157_v31  ;;  %6227 = vst [vmem:[#allocation54_spill] sm:$0xff] %v5159_v14  ;;  %v5169_v50 = vmul.f32 %v2473_v11, %v2456_v46  ;;  %v2521_v60 = vrot.slane %v5111_v38, %v6199_v55  ;;  %v2525_v13 = vrot.slane %v5117_v25, %v6199_v55  ;;  %v3721_v57 = vmov 88   ;;  %v6272_v52 = vld [vmem:[#allocation42_spill] sm:$0xff] }
 0x20d   :  { %6228 = vst [vmem:[#allocation55_spill] sm:$0xff] %v5161_v43  ;;  %6229 = vst [vmem:[#allocation15_spill] sm:$0xff] %v5163_v61  ;;  %v2529_v10 = vrot.slane %v1865_v27, %v6199_v55  ;;  %v2517_v32 = vrot.slane %v5113_v5, %v6199_v55  ;;  %1884 = vrot.lane.b32.xlu0 %v5111_v38, %s3667_s23  ;;  %v3722_v54 = vmov 86   ;;  %v3723_v3 = vmov 90  }
 0x20e   :  { %6230 = vst [vmem:[#allocation50_spill] sm:$0xff] %v5167_v17  ;;  %6231 = vst [vmem:[#allocation37_spill] sm:$0xff] %v5169_v50  ;;  %v5178_v0 = vmul.f32 %v2521_v60, %v2512_v18  ;;  %v5180_v33 = vmul.f32 %v2525_v13, %v2512_v18  ;;  %1882 = vrot.lane.b32.xlu1 %v5113_v5, %s3667_s23  ;;  %v3724_v63 = vmov 91   ;;  %v5266_v11 = vadd.f32 %v6246_v29, %v6245_v24  ;;  %v6249_v60 = vld [vmem:[#allocation8_spill] sm:$0xff]  ;;  %v6271_v17 = vld [vmem:[#allocation41_spill] sm:$0xff] }
 0x20f   :  { %v5184_v47 = vmul.f32 %v2517_v32, %v2512_v18  ;;  %v5186_v26 = vmul.f32 %v2529_v10, %v2512_v18  ;;  %v5272_v13 = vadd.f32 %v6246_v29, %v6249_v60  ;;  %v6252_v32 = vld [vmem:[#allocation9_spill] sm:$0xff] }
 0x210   :  { %6232 = vst [vmem:[#allocation19_spill] sm:$0xff] %v5178_v0  ;;  %6233 = vst [vmem:[#allocation77_spill] sm:$0xff] %v5180_v33  ;;  %v6262_v0 = vld [vmem:[#allocation26_spill] sm:$0xff] }
 0x211   :  { %6234 = vst [vmem:[#allocation78_spill] sm:$0xff] %v5184_v47  ;;  %6235 = vst [vmem:[#allocation76_spill] sm:$0xff] %v5186_v26  ;;  %1888 = vrot.lane.b32.xlu0 %v1865_v27, %s3667_s23 }
 0x212   :  { %1886 = vrot.lane.b32.xlu1 %v5117_v25, %s3667_s23  ;;  %6247 = vst [vmem:[#allocation36_spill] sm:$0xff] %v5266_v11  ;;  %6250 = vst [vmem:[#allocation24_spill] sm:$0xff] %v5272_v13 }
 0x215   :  { %1900 = vrot.lane.b32.xlu0 %v5111_v38, %s3668_s24 }
 0x216   :  { %1898 = vrot.lane.b32.xlu1 %v5113_v5, %s3668_s24 }
 0x219   :  { %1904 = vrot.lane.b32.xlu0 %v1865_v27, %s3668_s24 }
 0x21a   :  { %1902 = vrot.lane.b32.xlu1 %v5117_v25, %s3668_s24 }
 0x21d   :  { %1916 = vrot.lane.b32.xlu0 %v5111_v38, %s3669_s25 }
 0x21e   :  { %1914 = vrot.lane.b32.xlu1 %v5113_v5, %s3669_s25 }
 0x221   :  { %1920 = vrot.lane.b32.xlu0 %v1865_v27, %s3669_s25 }
 0x222   :  { %1918 = vrot.lane.b32.xlu1 %v5117_v25, %s3669_s25 }
 0x225   :  { %1932 = vrot.lane.b32.xlu0 %v5111_v38, %s3670_s26 }
 0x226   :  { %1930 = vrot.lane.b32.xlu1 %v5113_v5, %s3670_s26 }
 0x229   :  { %1936 = vrot.lane.b32.xlu0 %v1865_v27, %s3670_s26 }
 0x22a   :  { %1934 = vrot.lane.b32.xlu1 %v5117_v25, %s3670_s26 }
 0x22c   :  { %v5237_v56 = vpop.permute.xlu1 %2651 }
 0x22d   :  { %1948 = vrot.lane.b32.xlu0 %v5111_v38, %s3671_s27  ;;  %6236 = vst [vmem:[#allocation18_spill] sm:$0xff] %v5237_v56  ;;  %v5253_v62 = vpop.permute.xlu0 %2539 }
 0x22e   :  { %1946 = vrot.lane.b32.xlu1 %v5113_v5, %s3671_s27  ;;  %6241 = vst [vmem:[#allocation33_spill] sm:$0xff] %v5253_v62 }
 0x231   :  { %1952 = vrot.lane.b32.xlu0 %v1865_v27, %s3671_s27  ;;  %v5244_v23 = vpop.permute.xlu1 %2679 }
 0x232   :  { %1950 = vrot.lane.b32.xlu1 %v5117_v25, %s3671_s27  ;;  %6238 = vst [vmem:[#allocation5_spill] sm:$0xff] %v5244_v23  ;;  %v5259_v16 = vpop.permute.xlu0 %2595 }
 0x233   :  { %6243 = vst [vmem:[#allocation34_spill] sm:$0xff] %v5259_v16 }
 0x235   :  { %1964 = vrot.lane.b32.xlu0 %v5111_v38, %s3672_s28 }
 0x236   :  { %1962 = vrot.lane.b32.xlu1 %v5113_v5, %s3672_s28  ;;  %v5248_v48 = vpop.permute.xlu1 %2707 }
 0x237   :  { %6239 = vst [vmem:[#allocation11_spill] sm:$0xff] %v5248_v48  ;;  %v5268_v18 = vpop.permute.xlu0 %2623 }
 0x238   :  { %6248 = vst [vmem:[#allocation23_spill] sm:$0xff] %v5268_v18 }
 0x239   :  { %1968 = vrot.lane.b32.xlu0 %v1865_v27, %s3672_s28 }
 0x23a   :  { %1966 = vrot.lane.b32.xlu1 %v5117_v25, %s3672_s28 }
 0x23b   :  { %v5256_v30 = vpop.permute.xlu1 %2763 }
 0x23c   :  { %6242 = vst [vmem:[#allocation12_spill] sm:$0xff] %v5256_v30 }
 0x23d   :  { %1980 = vrot.lane.b32.xlu0 %v5111_v38, %s3673_s29  ;;  %v3624_v38 = vld [vmem:[%s5951_s2] sm:$0xf] }
 0x23e   :  { %1978 = vrot.lane.b32.xlu1 %v5113_v5, %s3673_s29  ;;  %v3718_v5 = vmov 89  }
 0x240   :  { %v5261_v46 = vpop.permute.xlu1 %2735 }
 0x241   :  { %1984 = vrot.lane.b32.xlu0 %v1865_v27, %s3673_s29  ;;  %v6240_v27 = vmov 5   ;;  %6244 = vst [vmem:[#allocation13_spill] sm:$0xff] %v5261_v46 }
 0x242   :  { %1982 = vrot.lane.b32.xlu1 %v5117_v25, %s3673_s29  ;;  %v3719_v25 = vmov 85  }
 0x245   :  { %2931 = vperm.xlu0 %3513, %v5031_v20   ;;  %v5274_v10 = vpop.permute.xlu1 %2819 }
 0x246   :  { %2959 = vperm.xlu1 %3514, %v5031_v20   ;;  %6251 = vst [vmem:[#allocation21_spill] sm:$0xff] %v5274_v10  ;;  %v6263_v10 = vld [vmem:[#allocation27_spill] sm:$0xff] }
 0x249   :  { %3516 = vset.pattern.permute.xlu0 %v3717_v7  ;;  %v5278_v7 = vadd.f32 %v6246_v29, %v6252_v32 }
 0x24a   :  { %3515 = vset.pattern.permute.xlu1 %v6237_v4  ;;  %3043 = vperm.xlu0 %3516, %v5031_v20   ;;  %v237_v4 = vmin.f32 %v5272_v13, 20.0  ;;  %v6261_v13 = vld [vmem:[#allocation25_spill] sm:$0xff] }
 0x24b   :  { %2999 = vperm.xlu1 %3515, %v3624_v38   ;;  %6253 = vst [vmem:[#allocation14_spill] sm:$0xff] %v5278_v7 }
 0x24e   :  { %3519 = vset.pattern.permute.xlu0 %v3718_v5  ;;  %v238_v5 = vmin.f32 %v5278_v7, 20.0 }
 0x24f   :  { %3517 = vset.pattern.permute.xlu1 %v3719_v25  ;;  %3167 = vperm.xlu0 %3519, %v5031_v20   ;;  %v5284_v25 = vpop.permute.xlu0 %2791 }
 0x250   :  { %3067 = vperm.xlu1 %3517, %v5031_v20   ;;  %6254 = vst [vmem:[#allocation17_spill] sm:$0xff] %v5284_v25 }
 0x253   :  { %3522 = vset.pattern.permute.xlu0 %v3720_v22  ;;  %v5286_v22 = vpop.permute.xlu1 %2903 }
 0x254   :  { %3518 = vset.pattern.permute.xlu1 %v3721_v57  ;;  %3115 = vperm.xlu0 %3522, %v5031_v20   ;;  %6255 = vst [vmem:[#allocation30_spill] sm:$0xff] %v5286_v22 }
 0x255   :  { %3139 = vperm.xlu1 %3518, %v5031_v20  }
 0x257   :  { %v5290_v24 = vpop.permute.xlu1 %2847 }
 0x258   :  { %3525 = vset.pattern.permute.xlu0 %v6240_v27  ;;  %6257 = vst [vmem:[#allocation16_spill] sm:$0xff] %v5290_v24 }
 0x259   :  { %3520 = vset.pattern.permute.xlu1 %v3722_v54  ;;  %v242_v54 = vmul.f32 1.442695, %v237_v4 }
 0x25a   :  { %3091 = vperm.xlu1 %3520, %v5031_v20  }
 0x25e   :  { %3521 = vset.pattern.permute.xlu1 %v3723_v3  ;;  %v244_v3 = vmul.f32 1.442695, %v238_v5 }
 0x25f   :  { %3195 = vperm.xlu1 %3521, %v5031_v20  }
 0x263   :  { %3523 = vset.pattern.permute.xlu1 %v3724_v63  ;;  %v5288_v63 = vpop.permute.xlu0 %2875 }
 0x264   :  { %3223 = vperm.xlu1 %3523, %v5031_v20   ;;  %v236_v20 = vmin.f32 %v5266_v11, 20.0  ;;  %6256 = vst [vmem:[#allocation47_spill] sm:$0xff] %v5288_v63 }
 0x266   :  { %v240_v57 = vmul.f32 1.442695, %v236_v20 }
 0x268   :  { %3524 = vset.pattern.permute.xlu1 %v6240_v27  ;;  %3574 = vpow2.f32 %v240_v57  ;;  %v6258_v27 = vld [vmem:[#allocation10_spill] sm:$0xff] }
 0x269   :  { %3263 = vperm.xlu1 %3524, %v3624_v38   ;;  %3576 = vpow2.f32 %v242_v54  ;;  %v5294_v38 = vadd.f32 %v6246_v29, %v6258_v27 }
 0x26a   :  { %3578 = vpow2.f32 %v244_v3 }
 0x26b   :  { %6259 = vst [vmem:[#allocation72_spill] sm:$0xff] %v5294_v38  ;;  %v239_v20 = vmin.f32 %v5294_v38, 20.0 }
 0x26d   :  { %v246_v24 = vmul.f32 1.442695, %v239_v20 }
 0x26f   :  { %3580 = vpow2.f32 %v246_v24 }
 0x272   :  { %v3575_v4 = vpop.eup %3574 }
 0x273   :  { %v3577_v57 = vpop.eup %3576  ;;  %v248_v33 = vadd.f32 2.0, %v3575_v4 }
 0x274   :  { %v3579_v26 = vpop.eup %3578  ;;  %v249_v8 = vadd.f32 2.0, %v3577_v57 }
 0x275   :  { %v250_v22 = vadd.f32 2.0, %v3579_v26 }
 0x276   :  { %v5331_v24 = vmul.f32 %v3577_v57, %v249_v8 }
 0x277   :  { %v1869_v60 = vpop.permute.xlu0 %1868 }
 0x278   :  { %v1867_v32 = vpop.permute.xlu1 %1866  ;;  %6266 = vst [vmem:[#allocation6_spill] sm:$0xff] %v5331_v24 }
 0x279   :  { %v1876_v7 = vsel %vm370_vm0, %v1867_v32, %v1869_v60  ;;  %v5379_v24 = vpop.eup %3580 }
 0x27a   :  { %v1879_v47 = vmul.f32 %v1876_v7, %v6261_v13  ;;  %6270 = vst [vmem:[#allocation9_spill] sm:$0xff] %v5379_v24 }
 0x27b   :  { %v1873_v5 = vpop.permute.xlu0 %1872 }
 0x27c   :  { %v1871_v54 = vpop.permute.xlu1 %1870  ;;  %v1877_v3 = vsel %vm370_vm0, %v1873_v5, %v1867_v32  ;;  %v2005_v32 = vrot.slane %v1879_v47, %v3803_v40  ;;  %v2077_v20 = vrot.slane %v1879_v47, %v6199_v55 }
 0x27d   :  { %v1874_v29 = vsel %vm370_vm0, %v1871_v54, %v1873_v5  ;;  %v1875_v27 = vsel %vm370_vm0, %v1869_v60, %v1871_v54  ;;  %v1878_v38 = vmul.f32 %v1877_v3, %v6262_v0  ;;  %v2029_v5 = vrot.slane %v1879_v47, %v3811_v45 }
 0x27e   :  { %v5308_v14 = vmul.f32 %v1875_v27, %v6263_v10  ;;  %v5311_v13 = vmul.f32 %v1874_v29, %v6264_v39  ;;  %v2053_v60 = vrot.slane %v1879_v47, %v3805_v41  ;;  %v5319_v54 = vmul.f32 %v3575_v4, %v248_v33 }
 0x27f   :  { %v1885_v7 = vpop.permute.xlu0 %1884  ;;  %v2001_v0 = vrot.slane %v1878_v38, %v3803_v40  ;;  %v2025_v10 = vrot.slane %v1878_v38, %v3811_v45  ;;  %v2049_v39 = vrot.slane %v1878_v38, %v3805_v41  ;;  %v2073_v3 = vrot.slane %v1878_v38, %v6199_v55 }
 0x280   :  { %v1883_v63 = vpop.permute.xlu1 %1882  ;;  %6265 = vst [vmem:[#allocation7_spill] sm:$0xff] %v5319_v54  ;;  %v2009_v29 = vrot.slane %v5308_v14, %v3803_v40  ;;  %v2013_v27 = vrot.slane %v5311_v13, %v3803_v40  ;;  %v2033_v47 = vrot.slane %v5308_v14, %v3811_v45  ;;  %v2037_v1 = vrot.slane %v5311_v13, %v3811_v45 }
 0x281   :  { %v5333_v33 = vmul.f32 %v3579_v26, %v250_v22  ;;  %v2015_v4 = vmul.f32 %v2005_v32, %v5038_v35  ;;  %v2039_v38 = vmul.f32 %v2029_v5, %v5097_v44  ;;  %v2063_v30 = vmul.f32 %v2053_v60, %v5042_v12 }
 0x282   :  { %v2087_v46 = vmul.f32 %v2077_v20, %v5064_v15  ;;  %v2014_v48 = vmul.f32 %v2001_v0, %v5038_v35  ;;  %v2038_v23 = vmul.f32 %v2025_v10, %v5097_v44  ;;  %v2062_v56 = vmul.f32 %v2049_v39, %v5042_v12  ;;  %v6268_v10 = vld [vmem:[#allocation39_spill] sm:$0xff] }
 0x283   :  { %v1889_v25 = vpop.permute.xlu0 %1888  ;;  %6267 = vst [vmem:[#allocation8_spill] sm:$0xff] %v5333_v33  ;;  %v2086_v8 = vmul.f32 %v2073_v3, %v5064_v15  ;;  %v1892_v26 = vsel %vm408_vm1, %v1883_v63, %v1885_v7  ;;  %v2016_v57 = vmul.f32 %v2009_v29, %v5038_v35  ;;  %v5349_v32 = vmul.f32 %v2013_v27, %v5038_v35 }
 0x284   :  { %v1887_v54 = vpop.permute.xlu1 %1886  ;;  %v1893_v22 = vsel %vm408_vm1, %v1889_v25, %v1883_v63  ;;  %v5352_v5 = vmul.f32 %v2033_v47, %v5097_v44  ;;  %v5355_v60 = vmul.f32 %v2037_v1, %v5097_v44  ;;  %v2057_v20 = vrot.slane %v5308_v14, %v3805_v41  ;;  %v6269_v63 = vld [vmem:[#allocation40_spill] sm:$0xff] }
 0x285   :  { %v2061_v0 = vrot.slane %v5311_v13, %v3805_v41  ;;  %v1895_v39 = vmul.f32 %v1892_v26, %v6268_v10  ;;  %v1894_v3 = vmul.f32 %v1893_v22, %v6269_v63  ;;  %v2081_v35 = vrot.slane %v5308_v14, %v6199_v55 }
 0x286   :  { %v2085_v29 = vrot.slane %v5311_v13, %v6199_v55  ;;  %v1890_v44 = vsel %vm408_vm1, %v1887_v54, %v1889_v25  ;;  %v1891_v1 = vsel %vm408_vm1, %v1885_v7, %v1887_v54  ;;  %v2064_v7 = vmul.f32 %v2057_v20, %v5042_v12 }
 0x287   :  { %v2101_v27 = vrot.slane %v1895_v39, %v3803_v40  ;;  %v2129_v47 = vrot.slane %v1895_v39, %v3811_v45  ;;  %v2157_v26 = vrot.slane %v1895_v39, %v3805_v41  ;;  %v2185_v22 = vrot.slane %v1895_v39, %v6199_v55  ;;  %v1901_v10 = vpop.permute.xlu0 %1900 }
 0x288   :  { %v1899_v63 = vpop.permute.xlu1 %1898  ;;  %v2097_v14 = vrot.slane %v1894_v3, %v3803_v40  ;;  %v2125_v13 = vrot.slane %v1894_v3, %v3811_v45  ;;  %v2153_v33 = vrot.slane %v1894_v3, %v3805_v41  ;;  %v2181_v25 = vrot.slane %v1894_v3, %v6199_v55 }
 0x289   :  { %v2111_v54 = vmul.f32 %v2101_v27, %v5047_v59  ;;  %v1896_v61 = vmul.f32 %v1891_v1, %v6271_v17  ;;  %v1897_v39 = vmul.f32 %v1890_v44, %v6272_v52  ;;  %v2065_v6 = vmul.f32 %v2061_v0, %v5042_v12 }
 0x28a   :  { %v2088_v18 = vmul.f32 %v2081_v35, %v5064_v15  ;;  %v2089_v16 = vmul.f32 %v2085_v29, %v5064_v15  ;;  %v1908_v50 = vsel %vm446_vm2, %v1899_v63, %v1901_v10  ;;  %v2139_v3 = vmul.f32 %v2129_v47, %v5101_v37 }
 0x28b   :  { %v2167_v24 = vmul.f32 %v2157_v26, %v5051_v2  ;;  %v2195_v20 = vmul.f32 %v2185_v22, %v5083_v49  ;;  %v2110_v27 = vmul.f32 %v2097_v14, %v5047_v59  ;;  %v2115_v17 = vadd.f32 %v2111_v54, %v2015_v4 }
 0x28c   :  { %v2138_v52 = vmul.f32 %v2125_v13, %v5101_v37  ;;  %v2166_v12 = vmul.f32 %v2153_v33, %v5051_v2  ;;  %v2194_v0 = vmul.f32 %v2181_v25, %v5083_v49  ;;  %v2105_v15 = vrot.slane %v1896_v61, %v3803_v40  ;;  %v1905_v25 = vpop.permute.xlu0 %1904  ;;  %v1903_v54 = vpop.permute.xlu1 %1902 }
 0x28d   :  { %v2109_v35 = vrot.slane %v1897_v39, %v3803_v40  ;;  %v2133_v29 = vrot.slane %v1896_v61, %v3811_v45  ;;  %v2137_v44 = vrot.slane %v1897_v39, %v3811_v45  ;;  %v2161_v1 = vrot.slane %v1896_v61, %v3805_v41 }
 0x28e   :  { %v2165_v47 = vrot.slane %v1897_v39, %v3805_v41  ;;  %v2189_v4 = vrot.slane %v1896_v61, %v6199_v55  ;;  %v2193_v26 = vrot.slane %v1897_v39, %v6199_v55  ;;  %v2143_v22 = vadd.f32 %v2139_v3, %v2039_v38 }
 0x28f   :  { %v2112_v33 = vmul.f32 %v2105_v15, %v5047_v59  ;;  %v2113_v14 = vmul.f32 %v2109_v35, %v5047_v59  ;;  %v2140_v13 = vmul.f32 %v2133_v29, %v5101_v37  ;;  %v2171_v31 = vadd.f32 %v2167_v24, %v2063_v30  ;;  %v6276_v35 = vld [vmem:[#allocation46_spill] sm:$0xff] }
 0x290   :  { %v2199_v42 = vadd.f32 %v2195_v20, %v2087_v46  ;;  %v2114_v43 = vadd.f32 %v2110_v27, %v2014_v48  ;;  %v2141_v62 = vmul.f32 %v2137_v44, %v5101_v37  ;;  %v2142_v19 = vadd.f32 %v2138_v52, %v2038_v23  ;;  %v6273_v46 = vld [vmem:[#allocation43_spill] sm:$0xff]  ;;  %v6274_v23 = vld [vmem:[#allocation44_spill] sm:$0xff] }
 0x291   :  { %v2170_v36 = vadd.f32 %v2166_v12, %v2062_v56  ;;  %v2198_v21 = vadd.f32 %v2194_v0, %v2086_v8  ;;  %v2168_v61 = vmul.f32 %v2161_v1, %v5051_v2  ;;  %v2116_v39 = vadd.f32 %v2112_v33, %v2016_v57  ;;  %v6275_v12 = vld [vmem:[#allocation45_spill] sm:$0xff] }
 0x292   :  { %v2169_v38 = vmul.f32 %v2165_v47, %v5051_v2  ;;  %v2196_v3 = vmul.f32 %v2189_v4, %v5083_v49  ;;  %v2197_v59 = vmul.f32 %v2193_v26, %v5083_v49  ;;  %v2117_v15 = vadd.f32 %v2113_v14, %v5349_v32 }
 0x293   :  { %v2144_v30 = vadd.f32 %v2140_v13, %v5352_v5  ;;  %v1911_v48 = vmul.f32 %v1908_v50, %v6273_v46  ;;  %v1909_v37 = vsel %vm446_vm2, %v1905_v25, %v1899_v63  ;;  %v2145_v56 = vadd.f32 %v2141_v62, %v5355_v60  ;;  %v1917_v5 = vpop.permute.xlu0 %1916  ;;  %v1915_v63 = vpop.permute.xlu1 %1914 }
 0x294   :  { %v1910_v24 = vmul.f32 %v1909_v37, %v6274_v23  ;;  %v1906_v2 = vsel %vm446_vm2, %v1903_v54, %v1905_v25  ;;  %v1907_v8 = vsel %vm446_vm2, %v1901_v10, %v1903_v54  ;;  %v2172_v52 = vadd.f32 %v2168_v61, %v2064_v7 }
 0x295   :  { %v2213_v49 = vrot.slane %v1911_v48, %v3803_v40  ;;  %v2241_v57 = vrot.slane %v1911_v48, %v3811_v45  ;;  %v2269_v32 = vrot.slane %v1911_v48, %v3805_v41  ;;  %v2297_v50 = vrot.slane %v1911_v48, %v6199_v55 }
 0x296   :  { %v2209_v62 = vrot.slane %v1910_v24, %v3803_v40  ;;  %v2237_v60 = vrot.slane %v1910_v24, %v3811_v45  ;;  %v2265_v20 = vrot.slane %v1910_v24, %v3805_v41  ;;  %v2293_v27 = vrot.slane %v1910_v24, %v6199_v55 }
 0x297   :  { %v2223_v10 = vmul.f32 %v2213_v49, %v5054_v58  ;;  %v1912_v0 = vmul.f32 %v1907_v8, %v6275_v12  ;;  %v1913_v29 = vmul.f32 %v1906_v2, %v6276_v35  ;;  %v2173_v44 = vadd.f32 %v2169_v38, %v2065_v6  ;;  %v1921_v2 = vpop.permute.xlu0 %1920  ;;  %v1919_v8 = vpop.permute.xlu1 %1918 }
 0x298   :  { %v2200_v1 = vadd.f32 %v2196_v3, %v2088_v18  ;;  %v2201_v47 = vadd.f32 %v2197_v59, %v2089_v16  ;;  %v1924_v4 = vsel %vm484_vm3, %v1915_v63, %v1917_v5  ;;  %v2251_v26 = vmul.f32 %v2241_v57, %v5103_v9 }
 0x299   :  { %v2279_v33 = vmul.f32 %v2269_v32, %v5107_v34  ;;  %v2307_v14 = vmul.f32 %v2297_v50, %v5109_v28  ;;  %v2222_v7 = vmul.f32 %v2209_v62, %v5054_v58  ;;  %v2227_v13 = vadd.f32 %v2223_v10, %v2115_v17 }
 0x29a   :  { %v2250_v25 = vmul.f32 %v2237_v60, %v5103_v9  ;;  %v2278_v54 = vmul.f32 %v2265_v20, %v5107_v34  ;;  %v2306_v6 = vmul.f32 %v2293_v27, %v5109_v28  ;;  %v2217_v16 = vrot.slane %v1912_v0, %v3803_v40 }
 0x29b   :  { %v2221_v18 = vrot.slane %v1913_v29, %v3803_v40  ;;  %v2245_v61 = vrot.slane %v1912_v0, %v3811_v45  ;;  %v2249_v38 = vrot.slane %v1913_v29, %v3811_v45  ;;  %v2273_v3 = vrot.slane %v1912_v0, %v3805_v41 }
 0x29c   :  { %v2277_v59 = vrot.slane %v1913_v29, %v3805_v41  ;;  %v2301_v17 = vrot.slane %v1912_v0, %v6199_v55  ;;  %v2305_v46 = vrot.slane %v1913_v29, %v6199_v55  ;;  %v2255_v48 = vadd.f32 %v2251_v26, %v2143_v22  ;;  %v5476_v29 = vpop.permute.xlu0 %1932 }
 0x29d   :  { %v2224_v37 = vmul.f32 %v2217_v16, %v5054_v58  ;;  %v2225_v23 = vmul.f32 %v2221_v18, %v5054_v58  ;;  %v2252_v24 = vmul.f32 %v2245_v61, %v5103_v9  ;;  %v2283_v49 = vadd.f32 %v2279_v33, %v2171_v31 }
 0x29e   :  { %v5455_v57 = vadd.f32 %v2307_v14, %v2199_v42  ;;  %v5457_v32 = vadd.f32 %v2222_v7, %v2114_v43  ;;  %v2253_v50 = vmul.f32 %v2249_v38, %v5103_v9  ;;  %v2254_v62 = vadd.f32 %v2250_v25, %v2142_v19  ;;  %v6277_v42 = vld [vmem:[#allocation53_spill] sm:$0xff]  ;;  %v6278_v19 = vld [vmem:[#allocation56_spill] sm:$0xff] }
 0x29f   :  { %v2282_v60 = vadd.f32 %v2278_v54, %v2170_v36  ;;  %v2310_v20 = vadd.f32 %v2306_v6, %v2198_v21  ;;  %v2280_v22 = vmul.f32 %v2273_v3, %v5107_v34  ;;  %v2228_v27 = vadd.f32 %v2224_v37, %v2116_v39  ;;  %v6279_v7 = vld [vmem:[#allocation57_spill] sm:$0xff]  ;;  %v6280_v54 = vld [vmem:[#allocation58_spill] sm:$0xff] }
 0x2a0   :  { %v2281_v10 = vmul.f32 %v2277_v59, %v5107_v34  ;;  %v2308_v58 = vmul.f32 %v2301_v17, %v5109_v28  ;;  %v2309_v12 = vmul.f32 %v2305_v46, %v5109_v28  ;;  %v2229_v0 = vadd.f32 %v2225_v23, %v2117_v15  ;;  %v6281_v59 = vld [vmem:[#allocation38_spill] sm:$0xff]  ;;  %v6282_v46 = vld [vmem:[#allocation29_spill] sm:$0xff] }
 0x2a1   :  { %v2256_v31 = vadd.f32 %v2252_v24, %v2144_v30  ;;  %v1927_v35 = vmul.f32 %v1924_v4, %v6277_v42  ;;  %v1925_v43 = vsel %vm484_vm3, %v1921_v2, %v1915_v63  ;;  %v2257_v9 = vadd.f32 %v2253_v50, %v2145_v56  ;;  %v1931_v63 = vpop.permute.xlu1 %1930 }
 0x2a2   :  { %v1926_v36 = vmul.f32 %v1925_v43, %v6278_v19  ;;  %v1922_v21 = vsel %vm484_vm3, %v1919_v8, %v1921_v2  ;;  %v1923_v34 = vsel %vm484_vm3, %v1917_v5, %v1919_v8  ;;  %v2284_v5 = vadd.f32 %v2280_v22, %v2172_v52  ;;  %v1937_v22 = vpop.permute.xlu0 %1936 }
 0x2a3   :  { %v2325_v39 = vrot.slane %v1927_v35, %v3803_v40  ;;  %v2353_v28 = vrot.slane %v1927_v35, %v3811_v45  ;;  %v2381_v15 = vrot.slane %v1927_v35, %v3805_v41  ;;  %v2409_v30 = vrot.slane %v1927_v35, %v6199_v55 }
 0x2a4   :  { %v2321_v56 = vrot.slane %v1926_v36, %v3803_v40  ;;  %v2349_v4 = vrot.slane %v1926_v36, %v3811_v45  ;;  %v2377_v26 = vrot.slane %v1926_v36, %v3805_v41  ;;  %v2405_v33 = vrot.slane %v1926_v36, %v6199_v55 }
 0x2a5   :  { %v2335_v14 = vmul.f32 %v2325_v39, %v5089_v51  ;;  %v1928_v25 = vmul.f32 %v1923_v34, %v6279_v7  ;;  %v1929_v6 = vmul.f32 %v1922_v21, %v6280_v54  ;;  %v2285_v16 = vadd.f32 %v2281_v10, %v2173_v44 }
 0x2a6   :  { %v2312_v18 = vadd.f32 %v2308_v58, %v2200_v1  ;;  %v2313_v61 = vadd.f32 %v2309_v12, %v2201_v47  ;;  %v1940_v38 = vsel %vm522_vm4, %v1931_v63, %v5476_v29  ;;  %v2363_v3 = vmul.f32 %v2353_v28, %v5095_v53  ;;  %v1935_v28 = vpop.permute.xlu1 %1934 }
 0x2a7   :  { %v2391_v17 = vmul.f32 %v2381_v15, %v6281_v59  ;;  %v2419_v37 = vmul.f32 %v2409_v30, %v6282_v46  ;;  %v2334_v52 = vmul.f32 %v2321_v56, %v5089_v51  ;;  %v2339_v23 = vadd.f32 %v2335_v14, %v2227_v13  ;;  %v6283_v14 = vld [vmem:[#allocation59_spill] sm:$0xff] }
 0x2a8   :  { %v2362_v24 = vmul.f32 %v2349_v4, %v5095_v53  ;;  %v2390_v2 = vmul.f32 %v2377_v26, %v6281_v59  ;;  %v2418_v44 = vmul.f32 %v2405_v33, %v6282_v46  ;;  %v2329_v1 = vrot.slane %v1928_v25, %v3803_v40 }
 0x2a9   :  { %v2333_v47 = vrot.slane %v1929_v6, %v3803_v40  ;;  %v2357_v8 = vrot.slane %v1928_v25, %v3811_v45  ;;  %v2361_v50 = vrot.slane %v1929_v6, %v3811_v45  ;;  %v2385_v10 = vrot.slane %v1928_v25, %v3805_v41 }
 0x2aa   :  { %v2389_v58 = vrot.slane %v1929_v6, %v3805_v41  ;;  %v2413_v13 = vrot.slane %v1928_v25, %v6199_v55  ;;  %v2417_v12 = vrot.slane %v1929_v6, %v6199_v55  ;;  %v2367_v42 = vadd.f32 %v2363_v3, %v2255_v48  ;;  %v5524_v25 = vpop.permute.xlu0 %1948 }
 0x2ab   :  { %v2336_v35 = vmul.f32 %v2329_v1, %v5089_v51  ;;  %v2337_v43 = vmul.f32 %v2333_v47, %v5089_v51  ;;  %v2364_v19 = vmul.f32 %v2357_v8, %v5095_v53  ;;  %v5506_v36 = vadd.f32 %v2391_v17, %v2283_v49  ;;  %v6285_v17 = vld [vmem:[#allocation20_spill] sm:$0xff] }
 0x2ac   :  { %v2365_v21 = vmul.f32 %v2361_v50, %v5095_v53  ;;  %v2392_v34 = vmul.f32 %v2385_v10, %v6281_v59  ;;  %v2393_v39 = vmul.f32 %v2389_v58, %v6281_v59  ;;  %v5512_v15 = vadd.f32 %v2419_v37, %v5455_v57  ;;  %v6286_v37 = vld [vmem:[#allocation33_spill] sm:$0xff]  ;;  %v6289_v47 = vld [vmem:[#allocation52_spill] sm:$0xff]  ;;  %v6291_v58 = vld [vmem:[#allocation34_spill] sm:$0xff] }
 0x2ad   :  { %v2338_v48 = vadd.f32 %v2334_v52, %v5457_v32  ;;  %v2366_v30 = vadd.f32 %v2362_v24, %v2254_v62  ;;  %v5515_v56 = vadd.f32 %v2390_v2, %v2282_v60  ;;  %v5517_v51 = vadd.f32 %v2418_v44, %v2310_v20  ;;  %v6284_v20 = vld [vmem:[#allocation60_spill] sm:$0xff]  ;;  %v6287_v24 = vld [vmem:[#allocation55_spill] sm:$0xff]  ;;  %v6290_v50 = vld [vmem:[#allocation37_spill] sm:$0xff] }
 0x2ae   :  { %v2340_v4 = vadd.f32 %v2336_v35, %v2228_v27  ;;  %v2420_v49 = vmul.f32 %v2413_v13, %v6282_v46  ;;  %v2421_v53 = vmul.f32 %v2417_v12, %v6282_v46  ;;  %v2341_v26 = vadd.f32 %v2337_v43, %v2229_v0  ;;  %v6288_v44 = vld [vmem:[#allocation31_spill] sm:$0xff]  ;;  %v6293_v35 = vld [vmem:[#allocation32_spill] sm:$0xff] }
 0x2af   :  { %v2368_v33 = vadd.f32 %v2364_v19, %v2256_v31  ;;  %v1942_v7 = vmul.f32 %v1940_v38, %v6283_v14  ;;  %v1941_v57 = vsel %vm522_vm4, %v1937_v22, %v1931_v63  ;;  %v2369_v32 = vadd.f32 %v2365_v21, %v2257_v9  ;;  %v6292_v12 = vld [vmem:[#allocation23_spill] sm:$0xff]  ;;  %v1953_v19 = vpop.permute.xlu0 %1952 }
 0x2b0   :  { %v5526_v62 = vadd.f32 %v2392_v34, %v2284_v5  ;;  %v5528_v60 = vadd.f32 %v2393_v39, %v2285_v16  ;;  %v1945_v27 = vmul.f32 %v1941_v57, %v6284_v20  ;;  %v1947_v16 = vpop.permute.xlu1 %1946  ;;  %v5539_v3 = vadd.f32 %v2420_v49, %v2312_v18 }
 0x2b1   :  { %v2545_v54 = vrot.slane %v1942_v7, %v3803_v40  ;;  %v2573_v6 = vrot.slane %v1942_v7, %v3811_v45  ;;  %v2601_v0 = vrot.slane %v1942_v7, %v3805_v41  ;;  %v2629_v31 = vrot.slane %v1942_v7, %v6199_v55  ;;  %v6295_v7 = vld [vmem:[#allocation49_spill] sm:$0xff] }
 0x2b2   :  { %v2557_v38 = vrot.slane %v1945_v27, %v3803_v40  ;;  %v2585_v63 = vrot.slane %v1945_v27, %v3811_v45  ;;  %v2613_v9 = vrot.slane %v1945_v27, %v3805_v41  ;;  %v2641_v5 = vrot.slane %v1945_v27, %v6199_v55 }
 0x2b3   :  { %v5541_v59 = vadd.f32 %v2421_v53, %v2313_v61  ;;  %v2450_v46 = vadd.f32 %v6285_v17, %v2338_v48  ;;  %v2558_v52 = vmul.f32 %v2545_v54, %v6286_v37  ;;  %v2478_v2 = vadd.f32 %v6287_v24, %v2366_v30  ;;  %v6294_v53 = vld [vmem:[#allocation62_spill] sm:$0xff]  ;;  %v6297_v54 = vld [vmem:[#allocation15_spill] sm:$0xff] }
 0x2b4   :  { %v2586_v1 = vmul.f32 %v2573_v6, %v6288_v44  ;;  %v2453_v8 = vadd.f32 %v6289_v47, %v2341_v26  ;;  %v2481_v10 = vadd.f32 %v6290_v50, %v2369_v32  ;;  %v5550_v13 = vmul.f32 %v2601_v0, %v6291_v58  ;;  %v6296_v32 = vld [vmem:[#allocation61_spill] sm:$0xff] }
 0x2b5   :  { %v5553_v18 = vmul.f32 %v2629_v31, %v6292_v12  ;;  %v2561_v61 = vmul.f32 %v2557_v38, %v6286_v37  ;;  %v2451_v43 = vadd.f32 %v6293_v35, %v2339_v23  ;;  %v2589_v21 = vmul.f32 %v2585_v63, %v6288_v44 }
 0x2b6   :  { %v5559_v34 = vmul.f32 %v2613_v9, %v6291_v58  ;;  %v5562_v39 = vmul.f32 %v2641_v5, %v6292_v12  ;;  %v1938_v48 = vsel %vm522_vm4, %v1935_v28, %v1937_v22  ;;  %v2562_v30 = vadd.f32 %v2558_v52, %v2450_v46  ;;  %v1951_v22 = vpop.permute.xlu1 %1950  ;;  %v6299_v46 = vld [vmem:[#allocation64_spill] sm:$0xff]  ;;  %v6300_v52 = vld [vmem:[#allocation50_spill] sm:$0xff] }
 0x2b7   :  { %v1939_v49 = vsel %vm522_vm4, %v5476_v29, %v1935_v28  ;;  %v1944_v26 = vmul.f32 %v1938_v48, %v6294_v53  ;;  %v1956_v23 = vsel %vm560_vm5, %v1947_v16, %v5524_v25  ;;  %v2590_v14 = vadd.f32 %v2586_v1, %v2478_v2  ;;  %v6298_v28 = vld [vmem:[#allocation63_spill] sm:$0xff] }
 0x2b8   :  { %v2452_v57 = vadd.f32 %v6295_v7, %v2340_v4  ;;  %v1943_v20 = vmul.f32 %v1939_v49, %v6296_v32  ;;  %v1957_v27 = vsel %vm560_vm5, %v1953_v19, %v1947_v16  ;;  %v2479_v6 = vadd.f32 %v6297_v54, %v2367_v42 }
 0x2b9   :  { %v2553_v0 = vrot.slane %v1944_v26, %v3803_v40  ;;  %v2581_v29 = vrot.slane %v1944_v26, %v3811_v45  ;;  %v1958_v31 = vmul.f32 %v1956_v23, %v6298_v28  ;;  %v2609_v4 = vrot.slane %v1944_v26, %v3805_v41 }
 0x2ba   :  { %v2549_v38 = vrot.slane %v1943_v20, %v3803_v40  ;;  %v2577_v63 = vrot.slane %v1943_v20, %v3811_v45  ;;  %v2637_v9 = vrot.slane %v1944_v26, %v6199_v55  ;;  %v2565_v5 = vadd.f32 %v2561_v61, %v2453_v8 }
 0x2bb   :  { %v2593_v17 = vadd.f32 %v2589_v21, %v2481_v10  ;;  %v2605_v16 = vrot.slane %v1943_v20, %v3805_v41  ;;  %v1961_v42 = vmul.f32 %v1957_v27, %v6299_v46  ;;  %v2480_v24 = vadd.f32 %v6300_v52, %v2368_v33  ;;  %v5595_v10 = vpop.permute.xlu0 %1964  ;;  %v6301_v27 = vld [vmem:[#allocation18_spill] sm:$0xff]  ;;  %v6307_v46 = vld [vmem:[#allocation65_spill] sm:$0xff] }
 0x2bc   :  { %v2560_v2 = vmul.f32 %v2553_v0, %v6286_v37  ;;  %v2588_v1 = vmul.f32 %v2581_v29, %v6288_v44  ;;  %v2633_v47 = vrot.slane %v1943_v20, %v6199_v55  ;;  %v2559_v50 = vmul.f32 %v2549_v38, %v6286_v37  ;;  %v1963_v37 = vpop.permute.xlu1 %1962  ;;  %v6303_v38 = vld [vmem:[#allocation11_spill] sm:$0xff] }
 0x2bd   :  { %v2587_v35 = vmul.f32 %v2577_v63, %v6288_v44  ;;  %v2657_v48 = vrot.slane %v1958_v31, %v3803_v40  ;;  %v2685_v8 = vrot.slane %v1958_v31, %v3811_v45  ;;  %v5598_v61 = vmul.f32 %v2609_v4, %v6291_v58  ;;  %v6304_v4 = vld [vmem:[#allocation66_spill] sm:$0xff] }
 0x2be   :  { %v5601_v33 = vmul.f32 %v2637_v9, %v6292_v12  ;;  %v2713_v21 = vrot.slane %v1958_v31, %v3805_v41  ;;  %v1954_v49 = vsel %vm560_vm5, %v1951_v22, %v1953_v19  ;;  %v5607_v44 = vmul.f32 %v2605_v16, %v6291_v58  ;;  %v6302_v19 = vld [vmem:[#allocation5_spill] sm:$0xff] }
 0x2bf   :  { %v2741_v53 = vrot.slane %v1958_v31, %v6199_v55  ;;  %v2669_v26 = vrot.slane %v1961_v42, %v3803_v40  ;;  %v2697_v23 = vrot.slane %v1961_v42, %v3811_v45  ;;  %v2564_v7 = vadd.f32 %v2560_v2, %v2452_v57  ;;  %v6305_v9 = vld [vmem:[#allocation13_spill] sm:$0xff] }
 0x2c0   :  { %v2592_v32 = vadd.f32 %v2588_v1, %v2480_v24  ;;  %v5613_v20 = vmul.f32 %v2633_v47, %v6292_v12  ;;  %v2670_v54 = vmul.f32 %v2657_v48, %v6301_v27  ;;  %v2563_v0 = vadd.f32 %v2559_v50, %v2451_v43  ;;  %v1969_v24 = vpop.permute.xlu0 %1968 }
 0x2c1   :  { %v2591_v29 = vadd.f32 %v2587_v35, %v2479_v6  ;;  %v2698_v28 = vmul.f32 %v2685_v8, %v6302_v19  ;;  %v5618_v58 = vmul.f32 %v2713_v21, %v6303_v38  ;;  %v2725_v31 = vrot.slane %v1961_v42, %v3805_v41 }
 0x2c2   :  { %v2753_v63 = vrot.slane %v1961_v42, %v6199_v55  ;;  %v1955_v57 = vsel %vm560_vm5, %v5524_v25, %v1951_v22  ;;  %v1960_v12 = vmul.f32 %v1954_v49, %v6304_v4  ;;  %v5627_v16 = vmul.f32 %v2741_v53, %v6305_v9  ;;  %v1967_v25 = vpop.permute.xlu1 %1966 }
 0x2c3   :  { %v2673_v43 = vmul.f32 %v2669_v26, %v6301_v27  ;;  %v2701_v6 = vmul.f32 %v2697_v23, %v6302_v19  ;;  %v1959_v52 = vmul.f32 %v1955_v57, %v6307_v46  ;;  %v2674_v2 = vadd.f32 %v2670_v54, %v2562_v30 }
 0x2c4   :  { %6306 = vst [vmem:[#allocation10_spill] sm:$0xff] %v5627_v16  ;;  %v2665_v1 = vrot.slane %v1960_v12, %v3803_v40  ;;  %v2693_v42 = vrot.slane %v1960_v12, %v3811_v45  ;;  %v2721_v47 = vrot.slane %v1960_v12, %v3805_v41  ;;  %v2702_v22 = vadd.f32 %v2698_v28, %v2590_v14 }
 0x2c5   :  { %v2661_v50 = vrot.slane %v1959_v52, %v3803_v40  ;;  %v2749_v35 = vrot.slane %v1960_v12, %v6199_v55  ;;  %v1972_v48 = vsel %vm598_vm6, %v1963_v37, %v5595_v10  ;;  %v5641_v8 = vmul.f32 %v2725_v31, %v6303_v38  ;;  %v6308_v31 = vld [vmem:[#allocation67_spill] sm:$0xff] }
 0x2c6   :  { %v5644_v30 = vmul.f32 %v2753_v63, %v6305_v9  ;;  %v2689_v21 = vrot.slane %v1959_v52, %v3811_v45  ;;  %v2717_v49 = vrot.slane %v1959_v52, %v3805_v41  ;;  %v2677_v53 = vadd.f32 %v2673_v43, %v2565_v5 }
 0x2c7   :  { %v2705_v14 = vadd.f32 %v2701_v6, %v2593_v17  ;;  %v2672_v26 = vmul.f32 %v2665_v1, %v6301_v27  ;;  %v2745_v23 = vrot.slane %v1959_v52, %v6199_v55  ;;  %v2700_v54 = vmul.f32 %v2693_v42, %v6302_v19  ;;  %v6309_v17 = vld [vmem:[#allocation68_spill] sm:$0xff]  ;;  %v1981_v6 = vpop.permute.xlu0 %1980  ;;  %v1979_v1 = vpop.permute.xlu1 %1978 }
 0x2c8   :  { %v5652_v28 = vmul.f32 %v2721_v47, %v6303_v38  ;;  %v5655_v57 = vmul.f32 %v1972_v48, %v6308_v31  ;;  %v1973_v63 = vsel %vm598_vm6, %v1969_v24, %v1963_v37  ;;  %v2671_v4 = vmul.f32 %v2661_v50, %v6301_v27  ;;  %v6313_v31 = vld [vmem:[#allocation69_spill] sm:$0xff] }
 0x2c9   :  { %v5661_v5 = vmul.f32 %v2749_v35, %v6305_v9  ;;  %v5664_v12 = vmul.f32 %v1973_v63, %v6309_v17  ;;  %v1970_v43 = vsel %vm598_vm6, %v1967_v25, %v1969_v24  ;;  %v2699_v46 = vmul.f32 %v2689_v21, %v6302_v19  ;;  %v6311_v21 = vld [vmem:[#allocation70_spill] sm:$0xff] }
 0x2ca   :  { %v5670_v52 = vmul.f32 %v2717_v49, %v6303_v38  ;;  %v2769_v37 = vrot.slane %v5655_v57, %v3803_v40  ;;  %v2797_v27 = vrot.slane %v5655_v57, %v3811_v45  ;;  %v2676_v42 = vadd.f32 %v2672_v26, %v2564_v7  ;;  %v6310_v38 = vld [vmem:[#allocation12_spill] sm:$0xff]  ;;  %v6312_v7 = vld [vmem:[#allocation17_spill] sm:$0xff] }
 0x2cb   :  { %v5677_v47 = vmul.f32 %v2745_v23, %v6305_v9  ;;  %v2781_v24 = vrot.slane %v5664_v12, %v3803_v40  ;;  %v2809_v19 = vrot.slane %v5664_v12, %v3811_v45  ;;  %v2704_v50 = vadd.f32 %v2700_v54, %v2592_v32 }
 0x2cc   :  { %v2782_v35 = vmul.f32 %v2769_v37, %v6310_v38  ;;  %v1971_v48 = vsel %vm598_vm6, %v5595_v10, %v1967_v25  ;;  %v5688_v49 = vmul.f32 %v1970_v43, %v6311_v21  ;;  %v2810_v26 = vmul.f32 %v2797_v27, %v6312_v7 }
 0x2cd   :  { %v2785_v9 = vmul.f32 %v2781_v24, %v6310_v38  ;;  %v2813_v23 = vmul.f32 %v2809_v19, %v6312_v7  ;;  %v5694_v63 = vmul.f32 %v1971_v48, %v6313_v31  ;;  %v2675_v17 = vadd.f32 %v2671_v4, %v2563_v0  ;;  %v1985_v0 = vpop.permute.xlu0 %1984  ;;  %v1983_v19 = vpop.permute.xlu1 %1982  ;;  %v6317_v4 = vld [vmem:[#allocation71_spill] sm:$0xff] }
 0x2ce   :  { %v2703_v32 = vadd.f32 %v2699_v46, %v2591_v29  ;;  %v2777_v54 = vrot.slane %v5688_v49, %v3803_v40  ;;  %v2805_v10 = vrot.slane %v5688_v49, %v3811_v45  ;;  %v2825_v25 = vrot.slane %v5655_v57, %v3805_v41 }
 0x2cf   :  { %v2773_v43 = vrot.slane %v5694_v63, %v3803_v40  ;;  %v2801_v37 = vrot.slane %v5694_v63, %v3811_v45  ;;  %v1988_v27 = vsel %vm636_vm7, %v1979_v1, %v1981_v6  ;;  %v5708_v29 = vadd.f32 %v2782_v35, %v2674_v2 }
 0x2d0   :  { %v2837_v46 = vrot.slane %v5664_v12, %v3805_v41  ;;  %v5716_v48 = vadd.f32 %v2810_v26, %v2702_v22  ;;  %v5718_v21 = vadd.f32 %v2785_v9, %v2677_v53  ;;  %v5720_v31 = vadd.f32 %v2813_v23, %v2705_v14  ;;  %v6318_v26 = vld [vmem:[#allocation73_spill] sm:$0xff] }
 0x2d1   :  { %6314 = vst [vmem:[#allocation22_spill] sm:$0xff] %v5708_v29  ;;  %v2784_v16 = vmul.f32 %v2777_v54, %v6310_v38  ;;  %v2812_v2 = vmul.f32 %v2805_v10, %v6312_v7  ;;  %v2829_v35 = vrot.slane %v5694_v63, %v3805_v41  ;;  %v5727_v29 = vmul.f32 %v1988_v27, %v6317_v4 }
 0x2d2   :  { %6315 = vst [vmem:[#allocation25_spill] sm:$0xff] %v5716_v48  ;;  %6316 = vst [vmem:[#allocation26_spill] sm:$0xff] %v5720_v31  ;;  %v1989_v24 = vsel %vm636_vm7, %v1985_v0, %v1979_v1  ;;  %v2783_v22 = vmul.f32 %v2773_v43, %v6310_v38  ;;  %v2811_v53 = vmul.f32 %v2801_v37, %v6312_v7  ;;  %v6319_v1 = vld [vmem:[#allocation75_spill] sm:$0xff]  ;;  %v6320_v37 = vld [vmem:[#allocation74_spill] sm:$0xff] }
 0x2d3   :  { %v5734_v14 = vmul.f32 %v1989_v24, %v6318_v26  ;;  %v1986_v9 = vsel %vm636_vm7, %v1983_v19, %v1985_v0  ;;  %v2881_v23 = vrot.slane %v5727_v29, %v3803_v40  ;;  %v2909_v54 = vrot.slane %v5727_v29, %v3811_v45  ;;  %v6321_v24 = vld [vmem:[#allocation48_spill] sm:$0xff] }
 0x2d4   :  { %v1987_v10 = vsel %vm636_vm7, %v1981_v6, %v1983_v19  ;;  %v5745_v27 = vmul.f32 %v1986_v9, %v6319_v1  ;;  %v2833_v38 = vrot.slane %v5688_v49, %v3805_v41  ;;  %v2857_v4 = vrot.slane %v5694_v63, %v6199_v55  ;;  %v6323_v63 = vld [vmem:[#allocation30_spill] sm:$0xff] }
 0x2d5   :  { %v2893_v7 = vrot.slane %v5734_v14, %v3803_v40  ;;  %v2921_v43 = vrot.slane %v5734_v14, %v3811_v45  ;;  %v5754_v0 = vmul.f32 %v1987_v10, %v6320_v37  ;;  %v2861_v11 = vrot.slane %v5688_v49, %v6199_v55  ;;  %v6322_v37 = vld [vmem:[#allocation47_spill] sm:$0xff] }
 0x2d6   :  { %v2889_v6 = vrot.slane %v5745_v27, %v3803_v40  ;;  %v2506_v19 = vadd.f32 %v6321_v24, %v5515_v56  ;;  %v5764_v26 = vadd.f32 %v2783_v22, %v2675_v17  ;;  %v5766_v9 = vadd.f32 %v2784_v16, %v2676_v42  ;;  %v6325_v42 = vld [vmem:[#allocation35_spill] sm:$0xff] }
 0x2d7   :  { %v5768_v1 = vadd.f32 %v2811_v53, %v2703_v32  ;;  %v5770_v10 = vadd.f32 %v2812_v2, %v2704_v50  ;;  %v5773_v48 = vmul.f32 %v2881_v23, %v6322_v37  ;;  %v5776_v31 = vmul.f32 %v2909_v54, %v6323_v63  ;;  %v6326_v32 = vld [vmem:[#allocation51_spill] sm:$0xff]  ;;  %v6327_v23 = vld [vmem:[#allocation54_spill] sm:$0xff] }
 0x2d8   :  { %v5779_v49 = vmul.f32 %v2893_v7, %v6322_v37  ;;  %v2917_v56 = vrot.slane %v5745_v27, %v3811_v45  ;;  %v5784_v17 = vmul.f32 %v2921_v43, %v6323_v63  ;;  %v2885_v16 = vrot.slane %v5754_v0, %v3803_v40  ;;  %v2932_v43 = vpop.permute.xlu0 %2931 }
 0x2d9   :  { %6324 = vst [vmem:[#allocation27_spill] sm:$0xff] %v5776_v31  ;;  %v2507_v50 = vadd.f32 %v6325_v42, %v5506_v36  ;;  %v2508_v2 = vadd.f32 %v6326_v32, %v5526_v62  ;;  %v2896_v22 = vmul.f32 %v2889_v6, %v6322_v37  ;;  %v2913_v53 = vrot.slane %v5754_v0, %v3811_v45  ;;  %v6328_v31 = vld [vmem:[#allocation21_spill] sm:$0xff] }
 0x2da   :  { %v2509_v54 = vadd.f32 %v6327_v23, %v5528_v60  ;;  %v2618_v7 = vadd.f32 %v5550_v13, %v2506_v19  ;;  %v2838_v36 = vmul.f32 %v2825_v25, %v6328_v31  ;;  %v2839_v42 = vmul.f32 %v2829_v35, %v6328_v31 }
 0x2db   :  { %v2619_v24 = vadd.f32 %v5607_v44, %v2507_v50  ;;  %v2620_v40 = vadd.f32 %v5598_v61, %v2508_v2  ;;  %v2937_v32 = vrot.slane %v5727_v29, %v3805_v41  ;;  %v2941_v60 = vrot.slane %v5754_v0, %v3805_v41 }
 0x2dc   :  { %v2621_v62 = vadd.f32 %v5559_v34, %v2509_v54  ;;  %v2730_v6 = vadd.f32 %v5618_v58, %v2618_v7  ;;  %v2840_v13 = vmul.f32 %v2833_v38, %v6328_v31  ;;  %v2841_v44 = vmul.f32 %v2837_v46, %v6328_v31  ;;  %v6329_v7 = vld [vmem:[#allocation19_spill] sm:$0xff] }
 0x2dd   :  { %v2945_v61 = vrot.slane %v5745_v27, %v3805_v41  ;;  %v2949_v25 = vrot.slane %v5734_v14, %v3805_v41  ;;  %v2731_v34 = vadd.f32 %v5670_v52, %v2619_v24  ;;  %v2732_v58 = vadd.f32 %v5652_v28, %v2620_v40 }
 0x2de   :  { %v2950_v35 = vmul.f32 %v2937_v32, %v2932_v43  ;;  %v2951_v19 = vmul.f32 %v2941_v60, %v2932_v43  ;;  %v2733_v50 = vadd.f32 %v5641_v8, %v2621_v62  ;;  %v2842_v2 = vadd.f32 %v2838_v36, %v2730_v6  ;;  %v6330_v32 = vld [vmem:[#allocation77_spill] sm:$0xff]  ;;  %v6331_v36 = vld [vmem:[#allocation76_spill] sm:$0xff] }
 0x2df   :  { %v2952_v23 = vmul.f32 %v2945_v61, %v2932_v43  ;;  %v2953_v54 = vmul.f32 %v2949_v25, %v2932_v43  ;;  %v2895_v38 = vmul.f32 %v2885_v16, %v6322_v37  ;;  %v2924_v46 = vmul.f32 %v2917_v56, %v6323_v63 }
 0x2e0   :  { %v2843_v31 = vadd.f32 %v2839_v42, %v2731_v34  ;;  %v2535_v45 = vadd.f32 %v6329_v7, %v5512_v15  ;;  %v2923_v41 = vmul.f32 %v2913_v53, %v6323_v63  ;;  %v2844_v52 = vadd.f32 %v2840_v13, %v2732_v58  ;;  %v6332_v42 = vld [vmem:[#allocation16_spill] sm:$0xff]  ;;  %v6336_v58 = vld [vmem:[#allocation26_spill] sm:$0xff] }
 0x2e1   :  { %v2845_v24 = vadd.f32 %v2841_v44, %v2733_v50  ;;  %v2954_v40 = vadd.f32 %v2950_v35, %v2842_v2  ;;  %v2536_v8 = vadd.f32 %v6330_v32, %v5539_v3  ;;  %v2537_v43 = vadd.f32 %v6331_v36, %v5541_v59  ;;  %v2960_v59 = vpop.permute.xlu1 %2959  ;;  %v6337_v35 = vld [vmem:[#allocation22_spill] sm:$0xff]  ;;  %v6340_v2 = vld [vmem:[#allocation27_spill] sm:$0xff] }
 0x2e2   :  { %v2955_v28 = vadd.f32 %v2951_v19, %v2843_v31  ;;  %v2647_v37 = vadd.f32 %v5613_v20, %v2535_v45  ;;  %v2956_v16 = vadd.f32 %v2952_v23, %v2844_v52  ;;  %v6333_v15 = vrot.slane %v5655_v57, %v6199_v55 }
 0x2e3   :  { %v2957_v56 = vadd.f32 %v2953_v54, %v2845_v24  ;;  %v2867_v63 = vmul.f32 %v2857_v4, %v6332_v42  ;;  %v2648_v53 = vadd.f32 %v5601_v33, %v2536_v8  ;;  %v2649_v6 = vadd.f32 %v5562_v39, %v2537_v43  ;;  %v6335_v33 = vld [vmem:[#allocation78_spill] sm:$0xff]  ;;  %v6341_v24 = vld [vmem:[#allocation9_spill] sm:$0xff] }
 0x2e4   :  { %v2866_v62 = vmul.f32 %v6333_v15, %v6332_v42  ;;  %v2759_v3 = vadd.f32 %v5677_v47, %v2647_v37  ;;  %v2868_v60 = vmul.f32 %v2861_v11, %v6332_v42  ;;  %v6334_v45 = vrot.slane %v5664_v12, %v6199_v55  ;;  %v6342_v37 = vld [vmem:[#allocation7_spill] sm:$0xff] }
 0x2e5   :  { %v2965_v57 = vrot.slane %v5727_v29, %v6199_v55  ;;  %v2969_v4 = vrot.slane %v5754_v0, %v6199_v55  ;;  %v2534_v13 = vadd.f32 %v6335_v33, %v5517_v51  ;;  %v2760_v39 = vadd.f32 %v5661_v5, %v2648_v53  ;;  %v6343_v53 = vld [vmem:[#allocation6_spill] sm:$0xff] }
 0x2e6   :  { %v2869_v20 = vmul.f32 %v6334_v45, %v6332_v42  ;;  %v2761_v47 = vadd.f32 %v5644_v30, %v2649_v6  ;;  %v2973_v11 = vrot.slane %v5745_v27, %v6199_v55  ;;  %v2977_v12 = vrot.slane %v5734_v14, %v6199_v55 }
 0x2e7   :  { %v2871_v44 = vadd.f32 %v2867_v63, %v2759_v3  ;;  %v2979_v61 = vmul.f32 %v2969_v4, %v2960_v59  ;;  %v2899_v29 = vadd.f32 %v2895_v38, %v5764_v26  ;;  %v2900_v25 = vadd.f32 %v2896_v22, %v5766_v9  ;;  %v6338_v26 = vld [vmem:[#allocation10_spill] sm:$0xff] }
 0x2e8   :  { %v2646_v0 = vadd.f32 %v5553_v18, %v2534_v13  ;;  %v2980_v34 = vmul.f32 %v2973_v11, %v2960_v59  ;;  %v2901_v51 = vadd.f32 %v5779_v49, %v5718_v21  ;;  %v2927_v30 = vadd.f32 %v2923_v41, %v5768_v1  ;;  %v6339_v18 = vld [vmem:[#allocation25_spill] sm:$0xff] }
 0x2e9   :  { %v2981_v5 = vmul.f32 %v2977_v12, %v2960_v59  ;;  %v2928_v27 = vadd.f32 %v2924_v46, %v5770_v10  ;;  %v2929_v14 = vadd.f32 %v5784_v17, %v6336_v58  ;;  %v2898_v19 = vadd.f32 %v5773_v48, %v6337_v35  ;;  %v3000_v48 = vpop.permute.xlu1 %2999 }
 0x2ea   :  { %v2758_v50 = vadd.f32 %v6338_v26, %v2646_v0  ;;  %v2978_v9 = vmul.f32 %v2965_v57, %v2960_v59  ;;  %v2987_v22 = vadd.f32 %v2927_v30, %v2899_v29  ;;  %v2926_v23 = vadd.f32 %v6340_v2, %v6339_v18  ;;  %v6345_v26 = vld [vmem:[#allocation24_spill] sm:$0xff] }
 0x2eb   :  { %v2872_v54 = vadd.f32 %v2868_v60, %v2760_v39  ;;  %v2873_v21 = vadd.f32 %v2869_v20, %v2761_v47  ;;  %v2988_v49 = vadd.f32 %v2928_v27, %v2900_v25  ;;  %v2989_v41 = vadd.f32 %v2929_v14, %v2901_v51 }
 0x2ec   :  { %v2870_v1 = vadd.f32 %v2866_v62, %v2758_v50  ;;  %v2983_v38 = vadd.f32 %v2979_v61, %v2871_v44  ;;  %v2991_v10 = vadd.f32 %v2987_v22, %v2955_v28  ;;  %v2986_v46 = vadd.f32 %v2926_v23, %v2898_v19  ;;  %v6344_v28 = vld [vmem:[#allocation8_spill] sm:$0xff] }
 0x2ed   :  { %v2984_v31 = vadd.f32 %v2980_v34, %v2872_v54  ;;  %v2985_v17 = vadd.f32 %v2981_v5, %v2873_v21  ;;  %v2992_v7 = vadd.f32 %v2988_v49, %v2956_v16  ;;  %v2993_v52 = vadd.f32 %v2989_v41, %v2957_v56  ;;  %v5883_v12 = vpop.permute.xlu1 %3067  ;;  %v6347_v23 = vld [vmem:[#allocation36_spill] sm:$0xff]  ;;  %v5894_v41 = vpop.permute.xlu0 %3043 }
 0x2ee   :  { %v251_v32 = vadd.f32 2.0, %v6341_v24  ;;  %v2982_v8 = vadd.f32 %v2978_v9, %v2870_v1  ;;  %v2995_v36 = vadd.f32 %v2991_v10, %v2983_v38  ;;  %v2990_v43 = vadd.f32 %v2986_v46, %v2954_v40  ;;  %v6346_v9 = vld [vmem:[#allocation14_spill] sm:$0xff]  ;;  %v6348_v21 = vld [vmem:[#allocation72_spill] sm:$0xff] }
 0x2ef   :  { %v260_v42 = vadd.f32 2.0, %v6342_v37  ;;  %v2996_v15 = vadd.f32 %v2992_v7, %v2984_v31  ;;  %v2997_v63 = vadd.f32 %v2993_v52, %v2985_v17  ;;  %v261_v6 = vadd.f32 2.0, %v6343_v53 }
 0x2f0   :  { %v2994_v62 = vadd.f32 %v2990_v43, %v2982_v8  ;;  %v5869_v3 = vadd.f32 %v3000_v48, %v2995_v36  ;;  %v262_v60 = vadd.f32 2.0, %v6344_v28  ;;  %v255_v56 = vmul.f32 %v6341_v24, %v251_v32  ;;  %v6349_v8 = vld [vmem:[#allocation4_spill] sm:$0xff] }
 0x2f1   :  { %v5872_v59 = vadd.f32 %v3000_v48, %v2996_v15  ;;  %v5874_v16 = vadd.f32 %v3000_v48, %v2997_v63  ;;  %3582 = vrcp.f32 %v260_v42  ;;  %v3140_v25 = vpop.permute.xlu1 %3139  ;;  %v257_v50 = vmul.f32 %v6343_v53, %v6345_v26  ;;  %v3168_v42 = vpop.permute.xlu0 %3167  ;;  %v6350_v63 = vld [vmem:[#allocation2_spill] sm:$0xff] }
 0x2f2   :  { %v5877_v45 = vadd.f32 %v3000_v48, %v2994_v62  ;;  %v3007_v40 = vmin.f32 %v5869_v3, 20.0  ;;  %3584 = vrcp.f32 %v261_v6  ;;  %v263_v47 = vadd.f32 2.0, %v255_v56 }
 0x2f3   :  { %v3008_v20 = vmin.f32 %v5872_v59, 20.0  ;;  %v3009_v57 = vmin.f32 %v5874_v16, 20.0  ;;  %3586 = vrcp.f32 %v262_v60  ;;  %v258_v22 = vmul.f32 %v6344_v28, %v6346_v9  ;;  %v6351_v60 = vld [vmem:[#allocation3_spill] sm:$0xff] }
 0x2f4   :  { %v3006_v4 = vmin.f32 %v5877_v45, 20.0  ;;  %v3012_v33 = vmul.f32 1.442695, %v3007_v40  ;;  %v256_v54 = vmul.f32 %v6342_v37, %v6347_v23  ;;  %v259_v49 = vmul.f32 %v255_v56, %v6348_v21 }
 0x2f5   :  { %v3014_v13 = vmul.f32 1.442695, %v3008_v20  ;;  %v3016_v39 = vmul.f32 1.442695, %v3009_v57  ;;  %v5885_v35 = vpop.permute.xlu1 %3091 }
 0x2f6   :  { %v3010_v11 = vmul.f32 1.442695, %v3006_v4  ;;  %3588 = vpow2.f32 %v3012_v33 }
 0x2f7   :  { %3590 = vpow2.f32 %v3014_v13 }
 0x2f8   :  { %3592 = vpow2.f32 %v3010_v11 }
 0x2f9   :  { %3594 = vpow2.f32 %v3016_v39  ;;  %v3196_v32 = vpop.permute.xlu1 %3195 }
 0x2fa   :  { %3596 = vrcp.f32 %v263_v47 }
 0x2fb   :  { %v3583_v44 = vpop.eup %3582 }
 0x2fc   :  { %v3585_v61 = vpop.eup %3584  ;;  %v268_v7 = vmul.f32 %v3583_v44, %v256_v54 }
 0x2fd   :  { %v3587_v29 = vpop.eup %3586  ;;  %v269_v10 = vmul.f32 %v3585_v61, %v257_v50 }
 0x2fe   :  { %v270_v46 = vmul.f32 %v3587_v29, %v258_v22  ;;  %v3173_v15 = vrot.slane %v268_v7, %v6349_v8  ;;  %v3145_v28 = vrot.slane %v268_v7, %v6350_v63  ;;  %v3201_v57 = vrot.slane %v268_v7, %v6351_v60 }
 0x2ff   :  { %v3177_v36 = vrot.slane %v269_v10, %v6349_v8  ;;  %v3149_v53 = vrot.slane %v269_v10, %v6350_v63  ;;  %v3205_v56 = vrot.slane %v269_v10, %v6351_v60  ;;  %v3233_v4 = vrot.slane %v269_v10, %v6199_v55 }
 0x300   :  { %v3589_v0 = vpop.eup %3588  ;;  %v3181_v43 = vrot.slane %v270_v46, %v6349_v8  ;;  %v3153_v6 = vrot.slane %v270_v46, %v6350_v63  ;;  %v3209_v40 = vrot.slane %v270_v46, %v6351_v60  ;;  %v3237_v33 = vrot.slane %v270_v46, %v6199_v55 }
 0x301   :  { %v3591_v34 = vpop.eup %3590  ;;  %v3019_v51 = vadd.f32 2.0, %v3589_v0  ;;  %v3186_v13 = vmul.f32 %v3173_v15, %v3168_v42  ;;  %v3187_v39 = vmul.f32 %v3177_v36, %v3168_v42  ;;  %v3229_v11 = vrot.slane %v268_v7, %v6199_v55 }
 0x302   :  { %v3593_v30 = vpop.eup %3592  ;;  %v3020_v5 = vadd.f32 2.0, %v3591_v34  ;;  %v3188_v44 = vmul.f32 %v3181_v43, %v3168_v42  ;;  %v3158_v29 = vmul.f32 %v3145_v28, %v3140_v25  ;;  %v3215_v26 = vmul.f32 %v3205_v56, %v3196_v32 }
 0x303   :  { %v3595_v27 = vpop.eup %3594  ;;  %v3018_v58 = vadd.f32 2.0, %v3593_v30  ;;  %v3023_v14 = vmul.f32 %v3589_v0, %v3019_v51  ;;  %v3159_v0 = vmul.f32 %v3149_v53, %v3140_v25  ;;  %v3216_v50 = vmul.f32 %v3209_v40, %v3196_v32 }
 0x304   :  { %v3597_v19 = vpop.eup %3596  ;;  %v3021_v18 = vadd.f32 2.0, %v3595_v27  ;;  %v3024_v2 = vmul.f32 %v3591_v34, %v3020_v5  ;;  %v3224_v34 = vpop.permute.xlu1 %3223 }
 0x305   :  { %v3022_v1 = vmul.f32 %v3593_v30, %v3018_v58  ;;  %v3031_v38 = vadd.f32 2.0, %v3023_v14  ;;  %v271_v52 = vmul.f32 %v3597_v19, %v259_v49  ;;  %v3027_v51 = vmul.f32 %v3023_v14, %v5869_v3 }
 0x306   :  { %v3025_v31 = vmul.f32 %v3595_v27, %v3021_v18  ;;  %v3032_v17 = vadd.f32 2.0, %v3024_v2  ;;  %v3160_v30 = vmul.f32 %v3153_v6, %v3140_v25  ;;  %v3214_v27 = vmul.f32 %v3201_v57, %v3196_v32 }
 0x307   :  { %v3030_v48 = vadd.f32 2.0, %v3022_v1  ;;  %3598 = vrcp.f32 %v3031_v38  ;;  %v3185_v37 = vrot.slane %v271_v52, %v6349_v8  ;;  %v3157_v62 = vrot.slane %v271_v52, %v6350_v63 }
 0x308   :  { %v3033_v24 = vadd.f32 2.0, %v3025_v31  ;;  %3600 = vrcp.f32 %v3032_v17  ;;  %v3213_v20 = vrot.slane %v271_v52, %v6351_v60  ;;  %v3241_v47 = vrot.slane %v271_v52, %v6199_v55 }
 0x309   :  { %3602 = vrcp.f32 %v3030_v48  ;;  %v3189_v61 = vmul.f32 %v3185_v37, %v3168_v42  ;;  %v3161_v5 = vmul.f32 %v3157_v62, %v3140_v25  ;;  %v3028_v19 = vmul.f32 %v3024_v2, %v5872_v59 }
 0x30a   :  { %3604 = vrcp.f32 %v3033_v24  ;;  %v3217_v9 = vmul.f32 %v3213_v20, %v3196_v32  ;;  %v3026_v18 = vmul.f32 %v3022_v1, %v5877_v45  ;;  %v3242_v54 = vmul.f32 %v3229_v11, %v3224_v34  ;;  %v3116_v11 = vpop.permute.xlu0 %3115 }
 0x30b   :  { %v3243_v21 = vmul.f32 %v3233_v4, %v3224_v34  ;;  %v3029_v38 = vmul.f32 %v3025_v31, %v5874_v16  ;;  %v3244_v3 = vmul.f32 %v3237_v33, %v3224_v34  ;;  %v3245_v14 = vmul.f32 %v3241_v47, %v3224_v34 }
 0x311   :  { %v3599_v58 = vpop.eup %3598 }
 0x312   :  { %v3601_v22 = vpop.eup %3600  ;;  %v3039_v23 = vmul.f32 %v3599_v58, %v3027_v51 }
 0x313   :  { %v3603_v49 = vpop.eup %3602  ;;  %v3040_v10 = vmul.f32 %v3601_v22, %v3028_v19 }
 0x314   :  { %v3605_v25 = vpop.eup %3604  ;;  %v3038_v46 = vmul.f32 %v3603_v49, %v3026_v18  ;;  %v3077_v17 = vrot.slane %v3039_v23, %v6349_v8  ;;  %v3053_v59 = vrot.slane %v3039_v23, %v6350_v63  ;;  %v3101_v2 = vrot.slane %v3039_v23, %v6351_v60 }
 0x315   :  { %v3041_v7 = vmul.f32 %v3605_v25, %v3029_v38  ;;  %v3081_v45 = vrot.slane %v3040_v10, %v6349_v8  ;;  %v3057_v1 = vrot.slane %v3040_v10, %v6350_v63  ;;  %v3105_v52 = vrot.slane %v3040_v10, %v6351_v60 }
 0x316   :  { %v3073_v16 = vrot.slane %v3038_v46, %v6349_v8  ;;  %v3087_v31 = vmul.f32 %v3077_v17, %v5883_v12  ;;  %v3063_v48 = vmul.f32 %v3053_v59, %v5894_v41  ;;  %v3049_v24 = vrot.slane %v3038_v46, %v6350_v63 }
 0x317   :  { %v3085_v32 = vrot.slane %v3041_v7, %v6349_v8  ;;  %v3088_v36 = vmul.f32 %v3081_v45, %v5883_v12  ;;  %v3061_v43 = vrot.slane %v3041_v7, %v6350_v63  ;;  %v3064_v37 = vmul.f32 %v3057_v1, %v5894_v41 }
 0x318   :  { %v3086_v42 = vmul.f32 %v3073_v16, %v5883_v12  ;;  %v3191_v15 = vadd.f32 %v3187_v39, %v3087_v31  ;;  %v3062_v53 = vmul.f32 %v3049_v24, %v5894_v41  ;;  %v3163_v6 = vadd.f32 %v3159_v0, %v3063_v48 }
 0x319   :  { %v3089_v62 = vmul.f32 %v3085_v32, %v5883_v12  ;;  %v3192_v28 = vadd.f32 %v3188_v44, %v3088_v36  ;;  %v3065_v56 = vmul.f32 %v3061_v43, %v5894_v41  ;;  %v3164_v40 = vadd.f32 %v3160_v30, %v3064_v37 }
 0x31a   :  { %v3190_v20 = vadd.f32 %v3186_v13, %v3086_v42  ;;  %v3162_v8 = vadd.f32 %v3158_v29, %v3062_v53  ;;  %v3109_v57 = vrot.slane %v3041_v7, %v6351_v60  ;;  %v3097_v63 = vrot.slane %v3038_v46, %v6351_v60 }
 0x31b   :  { %v3193_v4 = vadd.f32 %v3189_v61, %v3089_v62  ;;  %v3165_v33 = vadd.f32 %v3161_v5, %v3065_v56  ;;  %v3111_v47 = vmul.f32 %v3101_v2, %v5885_v35  ;;  %v3112_v39 = vmul.f32 %v3105_v52, %v5885_v35 }
 0x31c   :  { %v3110_v0 = vmul.f32 %v3097_v63, %v5885_v35  ;;  %v3113_v12 = vmul.f32 %v3109_v57, %v5885_v35  ;;  %v3121_v41 = vrot.slane %v3038_v46, %v6199_v55  ;;  %v3125_v13 = vrot.slane %v3039_v23, %v6199_v55 }
 0x31d   :  { %v3219_v44 = vadd.f32 %v3215_v26, %v3111_v47  ;;  %v3220_v29 = vadd.f32 %v3216_v50, %v3112_v39  ;;  %v3129_v34 = vrot.slane %v3040_v10, %v6199_v55  ;;  %v3133_v60 = vrot.slane %v3041_v7, %v6199_v55  ;;  %v3264_v10 = vpop.permute.xlu1 %3263 }
 0x31e   :  { %v3218_v61 = vadd.f32 %v3214_v27, %v3110_v0  ;;  %v3221_v51 = vadd.f32 %v3217_v9, %v3113_v12  ;;  %v3134_v30 = vmul.f32 %v3121_v41, %v3116_v11  ;;  %v3135_v5 = vmul.f32 %v3125_v13, %v3116_v11 }
 0x31f   :  { %v3136_v58 = vmul.f32 %v3129_v34, %v3116_v11  ;;  %v3137_v19 = vmul.f32 %v3133_v60, %v3116_v11  ;;  %v3251_v22 = vadd.f32 %v3191_v15, %v3163_v6  ;;  %v3252_v18 = vadd.f32 %v3192_v28, %v3164_v40 }
 0x320   :  { %v3246_v49 = vadd.f32 %v3242_v54, %v3134_v30  ;;  %v3247_v35 = vadd.f32 %v3243_v21, %v3135_v5  ;;  %v3253_v38 = vadd.f32 %v3193_v4, %v3165_v33  ;;  %v3250_v25 = vadd.f32 %v3190_v20, %v3162_v8 }
 0x321   :  { %v3248_v46 = vadd.f32 %v3244_v3, %v3136_v58  ;;  %v3249_v23 = vadd.f32 %v3245_v14, %v3137_v19  ;;  %v3255_v26 = vadd.f32 %v3251_v22, %v3219_v44  ;;  %v3256_v50 = vadd.f32 %v3252_v18, %v3220_v29 }
 0x322   :  { %v3257_v17 = vadd.f32 %v3253_v38, %v3221_v51  ;;  %v3254_v59 = vadd.f32 %v3250_v25, %v3218_v61 }
 0x323   :  { %v3259_v55 = vadd.f32 %v3255_v26, %v3247_v35  ;;  %v3260_v27 = vadd.f32 %v3256_v50, %v3248_v46 }
 0x324   :  { %v3261_v9 = vadd.f32 %v3257_v17, %v3249_v23  ;;  %v3258_v2 = vadd.f32 %v3254_v59, %v3246_v49 }
 0x325   :  { %v3267_v7 = vadd.f32 %v3264_v10, %v3259_v55  ;;  %v3268_v45 = vadd.f32 %v3264_v10, %v3260_v27 }
 0x326   :  { %v3266_v1 = vadd.f32 %v3264_v10, %v3258_v2  ;;  %v3269_v52 = vadd.f32 %v3264_v10, %v3261_v9 }
 0x327   :  { %v3271_v16 = vmin.f32 %v3267_v7, 20.0  ;;  %v3272_v54 = vmin.f32 %v3268_v45, 20.0 }
 0x328   :  { %v3270_v21 = vmin.f32 %v3266_v1, 20.0  ;;  %v3273_v31 = vmin.f32 %v3269_v52, 20.0 }
 0x329   :  { %v3276_v48 = vmul.f32 1.442695, %v3271_v16  ;;  %v3278_v3 = vmul.f32 1.442695, %v3272_v54 }
 0x32a   :  { %v3274_v14 = vmul.f32 1.442695, %v3270_v21  ;;  %v3280_v24 = vmul.f32 1.442695, %v3273_v31 }
 0x32b   :  { %3606 = vpow2.f32 %v3276_v48 }
 0x32c   :  { %3608 = vpow2.f32 %v3274_v14 }
 0x32d   :  { %3610 = vpow2.f32 %v3278_v3 }
 0x32e   :  { %3612 = vpow2.f32 %v3280_v24 }
 0x335   :  { %v3607_v32 = vpop.eup %3606 }
 0x336   :  { %v3609_v36 = vpop.eup %3608  ;;  %v3283_v43 = vadd.f32 2.0, %v3607_v32 }
 0x337   :  { %v3611_v37 = vpop.eup %3610  ;;  %v3282_v42 = vadd.f32 2.0, %v3609_v36 }
 0x338   :  { %v3613_v15 = vpop.eup %3612  ;;  %v3284_v53 = vadd.f32 2.0, %v3611_v37  ;;  %v3287_v6 = vmul.f32 %v3607_v32, %v3283_v43 }
 0x339   :  { %v3285_v62 = vadd.f32 2.0, %v3613_v15  ;;  %v3286_v28 = vmul.f32 %v3609_v36, %v3282_v42 }
 0x33a   :  { %v3288_v56 = vmul.f32 %v3611_v37, %v3284_v53  ;;  %v3295_v40 = vadd.f32 2.0, %v3287_v6  ;;  %v3291_v4 = vmul.f32 %v3287_v6, %v3267_v7 }
 0x33b   :  { %v3289_v20 = vmul.f32 %v3613_v15, %v3285_v62  ;;  %v3294_v8 = vadd.f32 2.0, %v3286_v28  ;;  %v3290_v47 = vmul.f32 %v3286_v28, %v3266_v1 }
 0x33c   :  { %v3296_v57 = vadd.f32 2.0, %v3288_v56  ;;  %3614 = vrcp.f32 %v3295_v40  ;;  %v3292_v11 = vmul.f32 %v3288_v56, %v3268_v45 }
 0x33d   :  { %v3297_v63 = vadd.f32 2.0, %v3289_v20  ;;  %3616 = vrcp.f32 %v3294_v8  ;;  %v3293_v41 = vmul.f32 %v3289_v20, %v3269_v52 }
 0x33e   :  { %3618 = vrcp.f32 %v3296_v57 }
 0x33f   :  { %3620 = vrcp.f32 %v3297_v63 }
 0x346   :  { %v3615_v33 = vpop.eup %3614 }
 0x347   :  { %v3617_v39 = vpop.eup %3616  ;;  %v3303_v0 = vmul.f32 %v3615_v33, %v3291_v4 }
 0x348   :  { %v3619_v12 = vpop.eup %3618  ;;  %v3302_v13 = vmul.f32 %v3617_v39, %v3290_v47 }
 0x349   :  { %v3621_v44 = vpop.eup %3620  ;;  %v3304_v29 = vmul.f32 %v3619_v12, %v3292_v11 }
 0x34a   :  { %v3305_v34 = vmul.f32 %v3621_v44, %v3293_v41  ;;  %v3310_v60 = vcombine.low %v3302_v13, %v3303_v0 }
 0x34c   :  { %v3311_v61 = vcombine.low %v3304_v29, %v3305_v34  ;;  %3314 = vst [vmem:[%s5954_s4] sm:$0xff] %v3310_v60 }
 0x34e   :  { %3315 = vst [vmem:[%s5954_s4 + $0x8] sm:$0xff] %v3311_v61 }

</bundles_post_ra>
